<compile_context>
chip_gen: v6e
topology: v6e:2x2x1
jax: 0.10.0
libtpu: 0.0.40
codegen_flags: <defaults>
</compile_context>

<pallas_src>
import jax
import jax.numpy as jnp
from jax import lax
from jax.experimental import pallas as pl
from jax.experimental.pallas import tpu as pltpu


# ----------------------------- kernel helpers ------------------------------

def _leaky_relu(x, slope=0.2):
    return jnp.where(x > 0, x, slope * x)


def _im2col_3x3(p):
    """p: (H+2, W+2, C) padded activation -> (H*W, 9*C) tap matrix.

    Tap order (ky, kx, cin) matches the (3, 3, Cin, Cout) -> (9*Cin, Cout)
    weight reshape used in the wrapper.  All slices are static windowed reads
    of the already-padded buffer — no zero-concat / shift copies.
    """
    Hp, Wp, C = p.shape
    H, W = Hp - 2, Wp - 2
    taps = []
    for ky in range(3):
        for kx in range(3):
            taps.append(p[ky:ky + H, kx:kx + W, :].reshape(H * W, C))
    return jnp.concatenate(taps, axis=-1)


# --------------------------------- kernel ----------------------------------

def _residual_block_sn_kernel(xp_ref, w1_ref, b1_ref, w2_ref, b2_ref, o_ref,
                              ypad_ref):
    # xp_ref : (H+2, W+2, CP) f32   spatially pre-padded input image
    # w*_ref : (9*CP, CP)           im2col weight matrices (matmul dtype)
    # b*_ref : (1, CP) f32
    # o_ref  : (H, W, CP) f32
    # ypad_ref: (H+2, W+2, CP) VMEM scratch (matmul dtype) for conv2's halo
    Hp, Wp, CP = xp_ref.shape
    H, W = Hp - 2, Wp - 2
    mm_dtype = w1_ref.dtype

    xp = xp_ref[...]                                   # f32, used for residual
    x_mm = xp.astype(mm_dtype)                         # cast once for the MXU

    # ---- conv1: single im2col matmul (K = 9*CP), f32 accumulation ----
    col1 = _im2col_3x3(x_mm)                           # (H*W, 9*CP)
    y1 = jnp.dot(col1, w1_ref[...], preferred_element_type=jnp.float32)
    y1 = _leaky_relu(y1 + b1_ref[...])                 # bias + LeakyReLU in f32

    # ---- zero-padded intermediate: conv2's halo must be exact zeros ----
    ypad_ref[...] = jnp.zeros_like(ypad_ref)
    ypad_ref[pl.ds(1, H), pl.ds(1, W), :] = y1.reshape(H, W, CP).astype(mm_dtype)

    # ---- conv2: single im2col matmul ----
    col2 = _im2col_3x3(ypad_ref[...])
    y2 = jnp.dot(col2, w2_ref[...], preferred_element_type=jnp.float32)
    y2 = y2 + b2_ref[...]

    # ---- residual add + LeakyReLU, all in f32 ----
    x_in = xp[1:H + 1, 1:W + 1, :].reshape(H * W, CP)
    out = _leaky_relu(x_in + y2)
    o_ref[...] = out.reshape(H, W, CP).astype(o_ref.dtype)


# ------------------------------ glue / wrapper ------------------------------

def _spectral_normalize(w_oihw, u, n_power_iterations=1, eps=1e-12):
    """Eval-style torch.nn.utils.spectral_norm: divide weight by estimated sigma.
    (Stateless: u is not persisted — matches inference-mode semantics.)"""
    w_mat = w_oihw.reshape(w_oihw.shape[0], -1)        # (Cout, Cin*kh*kw)

    def _norm(v):
        return v / (jnp.linalg.norm(v) + eps)

    v = None
    for _ in range(n_power_iterations):
        v = _norm(w_mat.T @ u)
        u = _norm(w_mat @ v)
    sigma = u @ (w_mat @ v)
    return w_oihw / sigma


def _prep_weight(w_oihw, CP, mm_dtype):
    """(Cout, Cin, 3, 3) -> channel-padded (9*CP, CP) im2col weight matrix."""
    cout, cin, kh, kw = w_oihw.shape
    w_hwio = jnp.transpose(w_oihw, (2, 3, 1, 0)).astype(jnp.float32)
    w_hwio = jnp.pad(w_hwio, ((0, 0), (0, 0), (0, CP - cin), (0, CP - cout)))
    return w_hwio.reshape(kh * kw * CP, CP).astype(mm_dtype)


def residual_block_sn_nhwc(x_nhwc, w1_oihw, b1, w2_oihw, b2,
                           *, matmul_dtype=jnp.bfloat16):
    """NHWC entry point. In an end-to-end NHWC, channel-aligned network the
    pad/slice below are no-ops and no activation transposes are needed."""
    N, H, W, C = x_nhwc.shape
    CP = 128 * pl.cdiv(C, 128)                 # lane-dense channel count

    # One-time layout glue (conv1 halo + channel pad to 128 lanes).
    xp = jnp.pad(x_nhwc.astype(jnp.float32),
                 ((0, 0), (1, 1), (1, 1), (0, CP - C)))
    w1m = _prep_weight(w1_oihw, CP, matmul_dtype)
    w2m = _prep_weight(w2_oihw, CP, matmul_dtype)
    b1m = jnp.pad(b1.astype(jnp.float32), (0, CP - C)).reshape(1, CP)
    b2m = jnp.pad(b2.astype(jnp.float32), (0, CP - C)).reshape(1, CP)

    # VMEM budget for the chosen blocks (headroom, capped below v7x's 64 MiB).
    mm_item = jnp.dtype(matmul_dtype).itemsize
    xp_b = (H + 2) * (W + 2) * CP * 4
    out_b = H * W * CP * 4
    w_b = 9 * CP * CP * mm_item
    col_b = H * W * 9 * CP * mm_item
    ypad_b = (H + 2) * (W + 2) * CP * mm_item
    est = 2 * (xp_b + out_b + 2 * w_b) + ypad_b + 2 * col_b + 4 * out_b
    vmem_limit = int(min(max(2 * est, 32 * 1024 * 1024), 48 * 1024 * 1024))

    out_padded = pl.pallas_call(
        _residual_block_sn_kernel,
        out_shape=jax.ShapeDtypeStruct((N, H, W, CP), jnp.float32),
        grid_spec=pltpu.PrefetchScalarGridSpec(
            num_scalar_prefetch=0,
            grid=(N,),
            in_specs=[
                pl.BlockSpec((None, H + 2, W + 2, CP), lambda n: (n, 0, 0, 0)),
                pl.BlockSpec((9 * CP, CP), lambda n: (0, 0)),
                pl.BlockSpec((1, CP), lambda n: (0, 0)),
                pl.BlockSpec((9 * CP, CP), lambda n: (0, 0)),
                pl.BlockSpec((1, CP), lambda n: (0, 0)),
            ],
            out_specs=pl.BlockSpec((None, H, W, CP), lambda n: (n, 0, 0, 0)),
            scratch_shapes=[pltpu.VMEM((H + 2, W + 2, CP), matmul_dtype)],
        ),
        compiler_params=pltpu.CompilerParams(
            dimension_semantics=("parallel",),   # batch across TCs (v7x megacore)
            vmem_limit_bytes=vmem_limit,
        ),
    )(xp, w1m, b1m, w2m, b2m)

    return out_padded[..., :C]


def residual_block_sn(x_nchw, params, *, matmul_dtype=jnp.bfloat16):
    """PyTorch-layout wrapper: x (N, C, H, W) f32 -> (N, C, H, W) f32."""
    w1 = _spectral_normalize(params["w1"], params["u1"])
    w2 = _spectral_normalize(params["w2"], params["u2"])
    x_nhwc = jnp.transpose(x_nchw, (0, 2, 3, 1))
    out_nhwc = residual_block_sn_nhwc(x_nhwc, w1, params["b1"], w2, params["b2"],
                                      matmul_dtype=matmul_dtype)
    return jnp.transpose(out_nhwc, (0, 3, 1, 2))


# ----------------------------- pure-JAX reference ----------------------------

def _reference(x_nchw, params):
    w1 = _spectral_normalize(params["w1"], params["u1"])
    w2 = _spectral_normalize(params["w2"], params["u2"])
    dn = ("NCHW", "OIHW", "NCHW")

    def conv(x, w, b):
        y = lax.conv_general_dilated(x, w, (1, 1), "SAME", dimension_numbers=dn)
        return y + b[None, :, None, None]

    def lrelu(v):
        return jnp.where(v > 0, v, 0.2 * v)

    y = lrelu(conv(x_nchw, w1, params["b1"]))
    y = conv(y, w2, params["b2"])
    return lrelu(x_nchw + y)


# ---------------------------------- main ------------------------------------

if __name__ == "__main__":
    key = jax.random.PRNGKey(0)
    k_x, k_w1, k_b1, k_w2, k_b2, k_u1, k_u2 = jax.random.split(key, 7)

    N, C, H, W = 2, 4, 16, 16
    x = jax.random.normal(k_x, (N, C, H, W), dtype=jnp.float32)

    # Synthetic params matching nn.Conv2d(C, C, 3, padding=1) init shapes.
    fan_in = C * 3 * 3
    bound = 1.0 / jnp.sqrt(fan_in)
    params = {
        "w1": jax.random.uniform(k_w1, (C, C, 3, 3), jnp.float32, -bound, bound),
        "b1": jax.random.uniform(k_b1, (C,), jnp.float32, -bound, bound),
        "w2": jax.random.uniform(k_w2, (C, C, 3, 3), jnp.float32, -bound, bound),
        "b2": jax.random.uniform(k_b2, (C,), jnp.float32, -bound, bound),
        "u1": jax.random.normal(k_u1, (C,), jnp.float32),
        "u2": jax.random.normal(k_u2, (C,), jnp.float32),
    }

    ref = _reference(x, params)

    # f32 matmul path: exact-semantics check.
    out_f32 = residual_block_sn(x, params, matmul_dtype=jnp.float32)
    jax.block_until_ready(out_f32)
    assert out_f32.shape == (N, C, H, W)
    assert jnp.allclose(out_f32, ref, atol=1e-3, rtol=1e-3), \
        "f32 kernel mismatch vs JAX reference"

    # bf16-MXU fast path (default): f32 accumulation, looser tolerance.
    out_bf16 = residual_block_sn(x, params)
    jax.block_until_ready(out_bf16)
    assert out_bf16.shape == (N, C, H, W)
    assert jnp.allclose(out_bf16, ref, atol=5e-2, rtol=5e-2), \
        "bf16 kernel mismatch vs JAX reference"

    print("KERNEL_OK")
</pallas_src>

<mosaic_0001>
module attributes {stable_mosaic.version = 11 : i64} {
  func.func @_residual_block_sn_kernel(%arg0: i32, %arg1: memref<1x18x18x128xf32, #tpu.memory_space<vmem>>, %arg2: memref<1152x128xf32, #tpu.memory_space<vmem>>, %arg3: memref<1x128xf32, #tpu.memory_space<vmem>>, %arg4: memref<1152x128xf32, #tpu.memory_space<vmem>>, %arg5: memref<1x128xf32, #tpu.memory_space<vmem>>, %arg6: memref<1x16x16x128xf32, #tpu.memory_space<vmem>>, %arg7: memref<18x18x128xf32, #tpu.memory_space<vmem>>) attributes {dimension_semantics = [#tpu.dimension_semantics<parallel>], iteration_bounds = array<i64: 2>, scalar_prefetch = 0 : i64, scratch_operands = 1 : i64, tpu.core_type = #tpu.core_type<tc>, window_params = [{transform_indices = @transform_0, window_bounds = array<i64: 1, 18, 18, 128>}, {pipeline_mode = #tpu.pipeline_mode<synchronous>, transform_indices = @transform_1, window_bounds = array<i64: 1152, 128>}, {pipeline_mode = #tpu.pipeline_mode<synchronous>, transform_indices = @transform_2, window_bounds = array<i64: 1, 128>}, {pipeline_mode = #tpu.pipeline_mode<synchronous>, transform_indices = @transform_3, window_bounds = array<i64: 1152, 128>}, {pipeline_mode = #tpu.pipeline_mode<synchronous>, transform_indices = @transform_4, window_bounds = array<i64: 1, 128>}, {transform_indices = @transform_5, window_bounds = array<i64: 1, 16, 16, 128>}]} {
    %c0 = arith.constant 0 : index
    %c0_0 = arith.constant 0 : index
    %c0_1 = arith.constant 0 : index
    %c0_2 = arith.constant 0 : index
    %0 = vector.load %arg1[%c0, %c0_0, %c0_1, %c0_2] : memref<1x18x18x128xf32, #tpu.memory_space<vmem>>, vector<1x18x18x128xf32>
    %1 = vector.shape_cast %0 : vector<1x18x18x128xf32> to vector<18x18x128xf32>
    %2 = vector.extract_strided_slice %1 {offsets = [0, 0, 0], sizes = [16, 16, 128], strides = [1, 1, 1]} : vector<18x18x128xf32> to vector<16x16x128xf32>
    %3 = vector.shape_cast %2 : vector<16x16x128xf32> to vector<256x128xf32>
    %4 = vector.extract_strided_slice %1 {offsets = [0, 1, 0], sizes = [16, 16, 128], strides = [1, 1, 1]} : vector<18x18x128xf32> to vector<16x16x128xf32>
    %5 = vector.shape_cast %4 : vector<16x16x128xf32> to vector<256x128xf32>
    %6 = vector.extract_strided_slice %1 {offsets = [0, 2, 0], sizes = [16, 16, 128], strides = [1, 1, 1]} : vector<18x18x128xf32> to vector<16x16x128xf32>
    %7 = vector.shape_cast %6 : vector<16x16x128xf32> to vector<256x128xf32>
    %8 = vector.extract_strided_slice %1 {offsets = [1, 0, 0], sizes = [16, 16, 128], strides = [1, 1, 1]} : vector<18x18x128xf32> to vector<16x16x128xf32>
    %9 = vector.shape_cast %8 : vector<16x16x128xf32> to vector<256x128xf32>
    %10 = vector.extract_strided_slice %1 {offsets = [1, 1, 0], sizes = [16, 16, 128], strides = [1, 1, 1]} : vector<18x18x128xf32> to vector<16x16x128xf32>
    %11 = vector.shape_cast %10 : vector<16x16x128xf32> to vector<256x128xf32>
    %12 = vector.extract_strided_slice %1 {offsets = [1, 2, 0], sizes = [16, 16, 128], strides = [1, 1, 1]} : vector<18x18x128xf32> to vector<16x16x128xf32>
    %13 = vector.shape_cast %12 : vector<16x16x128xf32> to vector<256x128xf32>
    %14 = vector.extract_strided_slice %1 {offsets = [2, 0, 0], sizes = [16, 16, 128], strides = [1, 1, 1]} : vector<18x18x128xf32> to vector<16x16x128xf32>
    %15 = vector.shape_cast %14 : vector<16x16x128xf32> to vector<256x128xf32>
    %16 = vector.extract_strided_slice %1 {offsets = [2, 1, 0], sizes = [16, 16, 128], strides = [1, 1, 1]} : vector<18x18x128xf32> to vector<16x16x128xf32>
    %17 = vector.shape_cast %16 : vector<16x16x128xf32> to vector<256x128xf32>
    %18 = vector.extract_strided_slice %1 {offsets = [2, 2, 0], sizes = [16, 16, 128], strides = [1, 1, 1]} : vector<18x18x128xf32> to vector<16x16x128xf32>
    %19 = vector.shape_cast %18 : vector<16x16x128xf32> to vector<256x128xf32>
    %20 = tpu.concatenate %3, %5, %7, %9, %11, %13, %15, %17, %19 in 1 : vector<256x128xf32>, vector<256x128xf32>, vector<256x128xf32>, vector<256x128xf32>, vector<256x128xf32>, vector<256x128xf32>, vector<256x128xf32>, vector<256x128xf32>, vector<256x128xf32> -> vector<256x1152xf32>
    %c0_3 = arith.constant 0 : index
    %c0_4 = arith.constant 0 : index
    %21 = vector.load %arg2[%c0_3, %c0_4] : memref<1152x128xf32, #tpu.memory_space<vmem>>, vector<1152x128xf32>
    %cst = arith.constant dense<0.000000e+00> : vector<256x128xf32>
    %22 = tpu.matmul %20, %21, %cst {dimension_numbers = #tpu.dot_dimension_numbers<[1], [0], [0], [1], [0, 0, 1, 1], [], []>} : vector<256x1152xf32>, vector<1152x128xf32>, vector<256x128xf32> -> vector<256x128xf32>
    %c0_5 = arith.constant 0 : index
    %c0_6 = arith.constant 0 : index
    %23 = vector.load %arg3[%c0_5, %c0_6] : memref<1x128xf32, #tpu.memory_space<vmem>>, vector<1x128xf32>
    %24 = vector.broadcast %23 : vector<1x128xf32> to vector<256x128xf32>
    %25 = arith.addf %22, %24 : vector<256x128xf32>
    %cst_7 = arith.constant 0.000000e+00 : f32
    %26 = vector.broadcast %cst_7 : f32 to vector<256x128xf32>
    %27 = arith.cmpf ogt, %25, %26 : vector<256x128xf32>
    %cst_8 = arith.constant 2.000000e-01 : f32
    %28 = vector.broadcast %cst_8 : f32 to vector<256x128xf32>
    %29 = arith.mulf %28, %25 : vector<256x128xf32>
    %30 = arith.select %27, %25, %29 : vector<256x128xi1>, vector<256x128xf32>
    %cst_9 = arith.constant 0.000000e+00 : f32
    %31 = vector.broadcast %cst_9 : f32 to vector<18x18x128xf32>
    %c0_10 = arith.constant 0 : index
    %c0_11 = arith.constant 0 : index
    %c0_12 = arith.constant 0 : index
    %32 = vector.load %arg7[%c0_10, %c0_11, %c0_12] : memref<18x18x128xf32, #tpu.memory_space<vmem>>, vector<18x18x128xf32>
    tpu.vector_store %arg7[%c0_10, %c0_11, %c0_12], %31 {strides = array<i32>} : memref<18x18x128xf32, #tpu.memory_space<vmem>>, vector<18x18x128xf32>,
    %33 = vector.shape_cast %30 : vector<256x128xf32> to vector<16x16x128xf32>
    %c1 = arith.constant 1 : index
    %c1_13 = arith.constant 1 : index
    %c0_14 = arith.constant 0 : index
    %34 = vector.load %arg7[%c1, %c1_13, %c0_14] : memref<18x18x128xf32, #tpu.memory_space<vmem>>, vector<16x16x128xf32>
    tpu.vector_store %arg7[%c1, %c1_13, %c0_14], %33 {strides = array<i32>} : memref<18x18x128xf32, #tpu.memory_space<vmem>>, vector<16x16x128xf32>,
    %c0_15 = arith.constant 0 : index
    %c0_16 = arith.constant 0 : index
    %c0_17 = arith.constant 0 : index
    %35 = vector.load %arg7[%c0_15, %c0_16, %c0_17] : memref<18x18x128xf32, #tpu.memory_space<vmem>>, vector<18x18x128xf32>
    %36 = vector.extract_strided_slice %35 {offsets = [0, 0, 0], sizes = [16, 16, 128], strides = [1, 1, 1]} : vector<18x18x128xf32> to vector<16x16x128xf32>
    %37 = vector.shape_cast %36 : vector<16x16x128xf32> to vector<256x128xf32>
    %38 = vector.extract_strided_slice %35 {offsets = [0, 1, 0], sizes = [16, 16, 128], strides = [1, 1, 1]} : vector<18x18x128xf32> to vector<16x16x128xf32>
    %39 = vector.shape_cast %38 : vector<16x16x128xf32> to vector<256x128xf32>
    %40 = vector.extract_strided_slice %35 {offsets = [0, 2, 0], sizes = [16, 16, 128], strides = [1, 1, 1]} : vector<18x18x128xf32> to vector<16x16x128xf32>
    %41 = vector.shape_cast %40 : vector<16x16x128xf32> to vector<256x128xf32>
    %42 = vector.extract_strided_slice %35 {offsets = [1, 0, 0], sizes = [16, 16, 128], strides = [1, 1, 1]} : vector<18x18x128xf32> to vector<16x16x128xf32>
    %43 = vector.shape_cast %42 : vector<16x16x128xf32> to vector<256x128xf32>
    %44 = vector.extract_strided_slice %35 {offsets = [1, 1, 0], sizes = [16, 16, 128], strides = [1, 1, 1]} : vector<18x18x128xf32> to vector<16x16x128xf32>
    %45 = vector.shape_cast %44 : vector<16x16x128xf32> to vector<256x128xf32>
    %46 = vector.extract_strided_slice %35 {offsets = [1, 2, 0], sizes = [16, 16, 128], strides = [1, 1, 1]} : vector<18x18x128xf32> to vector<16x16x128xf32>
    %47 = vector.shape_cast %46 : vector<16x16x128xf32> to vector<256x128xf32>
    %48 = vector.extract_strided_slice %35 {offsets = [2, 0, 0], sizes = [16, 16, 128], strides = [1, 1, 1]} : vector<18x18x128xf32> to vector<16x16x128xf32>
    %49 = vector.shape_cast %48 : vector<16x16x128xf32> to vector<256x128xf32>
    %50 = vector.extract_strided_slice %35 {offsets = [2, 1, 0], sizes = [16, 16, 128], strides = [1, 1, 1]} : vector<18x18x128xf32> to vector<16x16x128xf32>
    %51 = vector.shape_cast %50 : vector<16x16x128xf32> to vector<256x128xf32>
    %52 = vector.extract_strided_slice %35 {offsets = [2, 2, 0], sizes = [16, 16, 128], strides = [1, 1, 1]} : vector<18x18x128xf32> to vector<16x16x128xf32>
    %53 = vector.shape_cast %52 : vector<16x16x128xf32> to vector<256x128xf32>
    %54 = tpu.concatenate %37, %39, %41, %43, %45, %47, %49, %51, %53 in 1 : vector<256x128xf32>, vector<256x128xf32>, vector<256x128xf32>, vector<256x128xf32>, vector<256x128xf32>, vector<256x128xf32>, vector<256x128xf32>, vector<256x128xf32>, vector<256x128xf32> -> vector<256x1152xf32>
    %c0_18 = arith.constant 0 : index
    %c0_19 = arith.constant 0 : index
    %55 = vector.load %arg4[%c0_18, %c0_19] : memref<1152x128xf32, #tpu.memory_space<vmem>>, vector<1152x128xf32>
    %cst_20 = arith.constant dense<0.000000e+00> : vector<256x128xf32>
    %56 = tpu.matmul %54, %55, %cst_20 {dimension_numbers = #tpu.dot_dimension_numbers<[1], [0], [0], [1], [0, 0, 1, 1], [], []>} : vector<256x1152xf32>, vector<1152x128xf32>, vector<256x128xf32> -> vector<256x128xf32>
    %c0_21 = arith.constant 0 : index
    %c0_22 = arith.constant 0 : index
    %57 = vector.load %arg5[%c0_21, %c0_22] : memref<1x128xf32, #tpu.memory_space<vmem>>, vector<1x128xf32>
    %58 = vector.broadcast %57 : vector<1x128xf32> to vector<256x128xf32>
    %59 = arith.addf %56, %58 : vector<256x128xf32>
    %60 = vector.extract_strided_slice %1 {offsets = [1, 1, 0], sizes = [16, 16, 128], strides = [1, 1, 1]} : vector<18x18x128xf32> to vector<16x16x128xf32>
    %61 = vector.shape_cast %60 : vector<16x16x128xf32> to vector<256x128xf32>
    %62 = arith.addf %61, %59 : vector<256x128xf32>
    %cst_23 = arith.constant 0.000000e+00 : f32
    %63 = vector.broadcast %cst_23 : f32 to vector<256x128xf32>
    %64 = arith.cmpf ogt, %62, %63 : vector<256x128xf32>
    %cst_24 = arith.constant 2.000000e-01 : f32
    %65 = vector.broadcast %cst_24 : f32 to vector<256x128xf32>
    %66 = arith.mulf %65, %62 : vector<256x128xf32>
    %67 = arith.select %64, %62, %66 : vector<256x128xi1>, vector<256x128xf32>
    %68 = vector.shape_cast %67 : vector<256x128xf32> to vector<16x16x128xf32>
    %c0_25 = arith.constant 0 : index
    %c0_26 = arith.constant 0 : index
    %c0_27 = arith.constant 0 : index
    %c0_28 = arith.constant 0 : index
    %69 = vector.load %arg6[%c0_25, %c0_26, %c0_27, %c0_28] : memref<1x16x16x128xf32, #tpu.memory_space<vmem>>, vector<1x16x16x128xf32>
    %70 = vector.shape_cast %69 : vector<1x16x16x128xf32> to vector<16x16x128xf32>
    %71 = vector.shape_cast %68 : vector<16x16x128xf32> to vector<1x16x16x128xf32>
    tpu.vector_store %arg6[%c0_25, %c0_26, %c0_27, %c0_28], %71 {strides = array<i32>} : memref<1x16x16x128xf32, #tpu.memory_space<vmem>>, vector<1x16x16x128xf32>,
    return
  }
  func.func @transform_0(%arg0: i32) -> (i32, i32, i32, i32) {
    %c0_i32 = arith.constant 0 : i32
    %c0_i32_0 = arith.constant 0 : i32
    %c0_i32_1 = arith.constant 0 : i32
    %c0_i32_2 = arith.constant 0 : i32
    return %arg0, %c0_i32, %c0_i32_0, %c0_i32_1 : i32, i32, i32, i32
  }
  func.func @transform_1(%arg0: i32) -> (i32, i32) {
    %c0_i32 = arith.constant 0 : i32
    %c0_i32_0 = arith.constant 0 : i32
    %c0_i32_1 = arith.constant 0 : i32
    return %c0_i32, %c0_i32_0 : i32, i32
  }
  func.func @transform_2(%arg0: i32) -> (i32, i32) {
    %c0_i32 = arith.constant 0 : i32
    %c0_i32_0 = arith.constant 0 : i32
    %c0_i32_1 = arith.constant 0 : i32
    return %c0_i32, %c0_i32_0 : i32, i32
  }
  func.func @transform_3(%arg0: i32) -> (i32, i32) {
    %c0_i32 = arith.constant 0 : i32
    %c0_i32_0 = arith.constant 0 : i32
    %c0_i32_1 = arith.constant 0 : i32
    return %c0_i32, %c0_i32_0 : i32, i32
  }
  func.func @transform_4(%arg0: i32) -> (i32, i32) {
    %c0_i32 = arith.constant 0 : i32
    %c0_i32_0 = arith.constant 0 : i32
    %c0_i32_1 = arith.constant 0 : i32
    return %c0_i32, %c0_i32_0 : i32, i32
  }
  func.func @transform_5(%arg0: i32) -> (i32, i32, i32, i32) {
    %c0_i32 = arith.constant 0 : i32
    %c0_i32_0 = arith.constant 0 : i32
    %c0_i32_1 = arith.constant 0 : i32
    %c0_i32_2 = arith.constant 0 : i32
    return %arg0, %c0_i32, %c0_i32_0, %c0_i32_1 : i32, i32, i32, i32
  }
}

</mosaic_0001>

<bundles_post_ra>
// kernel: tpu_custom_call.1
= control target key start
LH: loop header
LB: loop body
LE: loop exit
PB: predicated region body
PF: predicated region fallthrough
CT: control target
= control target key end

     0   :  { %10 = vsyncpa [#allocation4], 0  ;;  %s7124_s0 = inlined_call_operand.vmem [shape: f32[2,18,18,128], index: 0, kind: input, shape index: {}]   ;;  %s7125_s1 = inlined_call_operand.vmem [shape: f32[1152,128], index: 1, kind: input, shape index: {}]   ;;  %s7126_s2 = inlined_call_operand.vmem [shape: f32[1,128], index: 2, kind: input, shape index: {}]   ;;  %s7127_s3 = inlined_call_operand.hbm [shape: f32[1152,128], index: 3, kind: input, shape index: {}]   ;;  %s7128_s4 = inlined_call_operand.vmem [shape: f32[1,128], index: 4, kind: input, shape index: {}]   ;;  %s7129_s5 = inlined_call_operand.hbm [shape: f32[2,16,16,128], index: 5, kind: output, shape index: {}]  }
   0x1   :  { %11 = vsyncpa [#allocation5], 0 }
   0x2   :  { %13 = vsyncpa [#allocation5 + $0x1], 0  ;;  %s4411_s18 = smov 0   ;;  %s4413_s19 = smov 0  }
   0x3   :  { %s4415_s20 = smov 0   ;;  %s4417_s21 = smov 0  }
   0x4 LB: > { %s4432_s22 = sadd.s32 4294967295, %s4372_s21   ;;  %s3943_s23 = sadd.s32 4294967294, %s4372_s21   ;;  %s4372_s21 = sphi %s4417_s21, %s7455_s21   ;;  %s4368_s20 = sphi %s4415_s20, %s7454_s20   ;;  %s4364_s19 = sphi %s4413_s19, %s7453_s19   ;;  %s4360_s18 = sphi %s4411_s18, %s7452_s18  }
   0x5   : > { %s4436_s24 = sadd.s32 1, %s4372_s21   ;;  %s136_s25 = sadd.s32 1, %s4368_s20 }
   0x6   : > { %s133_s26 = ssub.s32 %s4372_s21, %s4436_s24  ;;  %p146_p0 = scmp.ne.s32.totalorder %s4368_s20, %s4364_s19 }
   0x7   : > { %p134_p1 = scmp.eq.s32.totalorder %s133_s26, 0  ;;  %p147_p2 = scmp.eq.s32.totalorder %s4432_s22, 1 }
   0x8   : > { %p152_p3 = scmp.ne.s32.totalorder %s4364_s19, %s4360_s18  ;;  %p153_p4 = scmp.eq.s32.totalorder %s3943_s23, 1 }
   0x9   : > { %s4447_s27 = scalar_select %p134_p1, %s4368_s20, %s136_s25  }
   0xa   : > { %p4449_p5 = por %p147_p2, %p146_p0  ;;  %p4453_p6 = por %p153_p4, %p152_p3 }
   0xb   : > { %p3944_p7 = scmp.ge.s32.totalorder %s4372_s21, 1  ;;  %p160_p8 = scmp.lt.s32.totalorder %s4372_s21, 3 }
   0xc   : > { %s7265_s29 = scalar_select %p4453_p6, 1, 0 }
   0xd   : > { %p4230_p9 = scmp.eq.s32.totalorder %s4432_s22, 0  ;;  %p4460_p10 = pnand %p3944_p7, %p160_p8 }
   0xe   : > { %s4374_s6 = smov [#allocation3]  }
   0xf   : > { %s178_s7 = sshll.u32 %s4374_s6, 4  ;;  %p4222_p11 = pneg %p4460_p10  ;;  %s179_s7 = int_to_ptr.vmem [resolvable:$true] %s178_s7 }
  0x10   : > { %s4293_s8 = scalar_lea.vmem %s179_s7, 18432  ;;  %p4301_p3 = scmp.lt.s32.totalorder %s179_s7, %s179_s7 }
  0x11   : > { %p4223_p12 = pnand %p4230_p9, %p4222_p11  ;;  %p4294_p0 = scmp.ne.s32.totalorder %s179_s7, %s4293_s8 }
  0x12   : > { %p4302_p4 = scmp.lt.s32.totalorder %s4293_s8, %s4293_s8 }
  0x13   : > { %p4284_p13 = pneg %p4223_p12 }
  0x14   : > { %p4303_p6 = por %p4302_p4, %p4301_p3 }
  0x15   : > { %p4296_p1 = pnand %p4294_p0, %p4284_p13 }
  0x17   : > { %p4297_p2 = pneg %p4296_p1 }
  0x19   : > { %p4304_p7 = pnand %p4303_p6, %p4297_p2 }
  0x1b   : > { %4307 = shalt.err (!%p4304_p7)
}
  0x1c   : > { %s4375_s9 = smov 128   ;;  %s4376_s10 = smov 8  }
  0x1d   : > { %4225 = dma.hbm_to_vmem [thread:$0]  (!%p4223_p12), %s7127_s3, 18432, %s179_s7, [#allocation4], %s4375_s9, %s4375_s9, %s4376_s10  }
  0x1e   : > { %205 = sbr.rel (%p4460_p10) target bundleno = 1094 (0x446), region = 40 }
  0x23   : > { %4351 = dma.done.wait (%p4230_p9), [#allocation4], 18432  }
  0x24   : > { %4353 = vsyncadd (%p4230_p9), [#allocation4], 4294948864  ;;  %v4377_v0 = vmov 0.0   ;;  %v615_v1 = vld [vmem:[%s7125_s1 + $0x78] sm:$0xff]  ;;  %v614_v2 = vld [vmem:[%s7125_s1 + $0x70] sm:$0xff]  ;;  %p233_p6 = scmp.lt.s32.totalorder %s4432_s22, 1 }
  0x25   : > { %751 = vmatprep.subr.mxu0 %v4377_v0  ;;  %1972 = vst [vmem:[#allocation2] sm:$0xff] %v4377_v0  ;;  %1974 = vst [vmem:[#allocation2 + $0x10] sm:$0x3] %v4377_v0  ;;  %976 = vmatprep.subr.mxu1 %v4377_v0  ;;  %v647_v3 = vld [vmem:[%s7125_s1 + $0x178] sm:$0xff]  ;;  %v646_v4 = vld [vmem:[%s7125_s1 + $0x170] sm:$0xff]  ;;  %vm340_vm0 = vcmask 1046528  }
  0x26   : > { %1975 = vst [vmem:[#allocation2 + $0x18] sm:$0xff] %v4377_v0  ;;  %1976 = vst [vmem:[#allocation2 + $0x20] sm:$0xff] %v4377_v0  ;;  %752 = vmatpush1.msra.mxu0 %v615_v1  ;;  %977 = vmatpush1.msra.mxu1 %v647_v3  ;;  %v613_v5 = vld [vmem:[%s7125_s1 + $0x68] sm:$0xff]  ;;  %v612_v7 = vld [vmem:[%s7125_s1 + $0x60] sm:$0xff]  ;;  %s234_s30 = scalar_select %p233_p6, %s4432_s22, 1  ;;  %vm453_vm1 = vcmask 1045504  }
  0x27   : > { %1977 = vst [vmem:[#allocation2 + $0x28] sm:$0x3] %v4377_v0  ;;  %1978 = vst [vmem:[#allocation2 + $0x30] sm:$0xff] %v4377_v0  ;;  %753 = vmatprep.subr.mxu0 %v4377_v0  ;;  %978 = vmatprep.subr.mxu1 %v4377_v0  ;;  %v645_v6 = vld [vmem:[%s7125_s1 + $0x168] sm:$0xff]  ;;  %v644_v8 = vld [vmem:[%s7125_s1 + $0x160] sm:$0xff]  ;;  %s230_s17 = sand.u32 1, %s4364_s19  }
  0x28   : > { %1979 = vst [vmem:[#allocation2 + $0x38] sm:$0xff] %v4377_v0  ;;  %1980 = vst [vmem:[#allocation2 + $0x40] sm:$0x3] %v4377_v0  ;;  %754 = vmatpush1.msra.mxu0 %v614_v2  ;;  %979 = vmatpush1.msra.mxu1 %v646_v4  ;;  %v611_v9 = vld [vmem:[%s7125_s1 + $0x58] sm:$0xff]  ;;  %v610_v11 = vld [vmem:[%s7125_s1 + $0x50] sm:$0xff]  ;;  %s4215_s14 = smul.u32 432, %s234_s30 }
  0x29   : > { %1981 = vst [vmem:[#allocation2 + $0x48] sm:$0xff] %v4377_v0  ;;  %1982 = vst [vmem:[#allocation2 + $0x50] sm:$0xff] %v4377_v0  ;;  %755 = vmatprep.subr.mxu0 %v4377_v0  ;;  %980 = vmatprep.subr.mxu1 %v4377_v0  ;;  %v643_v10 = vld [vmem:[%s7125_s1 + $0x158] sm:$0xff]  ;;  %v642_v12 = vld [vmem:[%s7125_s1 + $0x150] sm:$0xff]  ;;  %s3949_s23 = sshll.u32 %s230_s17, 8  ;;  %s3958_s26 = sshll.u32 %s4432_s22, 12 }
  0x2a   : > { %1983 = vst [vmem:[#allocation2 + $0x58] sm:$0x3] %v4377_v0  ;;  %1984 = vst [vmem:[#allocation2 + $0x60] sm:$0xff] %v4377_v0  ;;  %756 = vmatpush1.msra.mxu0 %v613_v5  ;;  %981 = vmatpush1.msra.mxu1 %v645_v6  ;;  %v609_v13 = vld [vmem:[%s7125_s1 + $0x48] sm:$0xff]  ;;  %v608_v15 = vld [vmem:[%s7125_s1 + $0x40] sm:$0xff]  ;;  %s4739_s9 = scalar_lea.vmem %s7124_s0, %s4215_s14  ;;  %s6978_s25 = scalar_lea.vmem [#allocation6], %s3949_s23 }
  0x2b   : > { %1985 = vst [vmem:[#allocation2 + $0x68] sm:$0xff] %v4377_v0  ;;  %1986 = vst [vmem:[#allocation2 + $0x70] sm:$0x3] %v4377_v0  ;;  %757 = vmatprep.subr.mxu0 %v4377_v0  ;;  %982 = vmatprep.subr.mxu1 %v4377_v0  ;;  %v641_v14 = vld [vmem:[%s7125_s1 + $0x148] sm:$0xff]  ;;  %v640_v16 = vld [vmem:[%s7125_s1 + $0x140] sm:$0xff]  ;;  %s3869_s30 = sshll.u32 %s6978_s25, 4  ;;  %s7077_s8 = scalar_lea.hbm %s7129_s5, %s3958_s26  ;;  %s7079_s30 = int_to_ptr.vmem [resolvable:$true] %s3869_s30 }
  0x2c   : > { %1987 = vst [vmem:[#allocation2 + $0x78] sm:$0xff] %v4377_v0  ;;  %1988 = vst [vmem:[#allocation2 + $0x80] sm:$0xff] %v4377_v0  ;;  %758 = vmatpush1.msra.mxu0 %v612_v7  ;;  %983 = vmatpush1.msra.mxu1 %v644_v8  ;;  %v607_v17 = vld [vmem:[%s7125_s1 + $0x38] sm:$0xff]  ;;  %v606_v19 = vld [vmem:[%s7125_s1 + $0x30] sm:$0xff]  ;;  %s7084_s22 = scalar_lea.sflag [#allocation5], %s230_s17  ;;  %s4308_s10 = scalar_lea.vmem %s7079_s30, 4096 }
  0x2d   : > { %1989 = vst [vmem:[#allocation2 + $0x88] sm:$0x3] %v4377_v0  ;;  %1990 = vst [vmem:[#allocation2 + $0x90] sm:$0xff] %v4377_v0  ;;  %759 = vmatprep.subr.mxu0 %v4377_v0  ;;  %984 = vmatprep.subr.mxu1 %v4377_v0  ;;  %v639_v18 = vld [vmem:[%s7125_s1 + $0x138] sm:$0xff]  ;;  %v638_v20 = vld [vmem:[%s7125_s1 + $0x130] sm:$0xff]  ;;  %p4309_p8 = scmp.ne.s32.totalorder %s7079_s30, %s4308_s10  ;;  %s4378_s11 = smov [#allocation6]  }
  0x2e   : > { %1991 = vst [vmem:[#allocation2 + $0x98] sm:$0xff] %v4377_v0  ;;  %1992 = vst [vmem:[#allocation2 + $0xa0] sm:$0x3] %v4377_v0  ;;  %760 = vmatpush1.msra.mxu0 %v611_v9  ;;  %985 = vmatpush1.msra.mxu1 %v643_v10  ;;  %v605_v21 = vld [vmem:[%s7125_s1 + $0x28] sm:$0xff]  ;;  %v604_v23 = vld [vmem:[%s7125_s1 + $0x20] sm:$0xff]  ;;  %s4312_s12 = sshll.u32 %s4378_s11, 4  ;;  %s4313_s12 = int_to_ptr.vmem [resolvable:$false] %s4312_s12 }
  0x2f   : > { %1993 = vst [vmem:[#allocation2 + $0xa8] sm:$0xff] %v4377_v0  ;;  %1994 = vst [vmem:[#allocation2 + $0xb0] sm:$0xff] %v4377_v0  ;;  %761 = vmatprep.subr.mxu0 %v4377_v0  ;;  %986 = vmatprep.subr.mxu1 %v4377_v0  ;;  %v637_v22 = vld [vmem:[%s7125_s1 + $0x128] sm:$0xff]  ;;  %v636_v24 = vld [vmem:[%s7125_s1 + $0x120] sm:$0xff]  ;;  %p4310_p9 = pnand %p4309_p8, %p4449_p5  ;;  %s4314_s13 = scalar_lea.vmem %s4313_s12, 8192 }
  0x30   : > { %1995 = vst [vmem:[#allocation2 + $0xb8] sm:$0x3] %v4377_v0  ;;  %1996 = vst [vmem:[#allocation2 + $0xc0] sm:$0xff] %v4377_v0  ;;  %762 = vmatpush1.msra.mxu0 %v610_v11  ;;  %987 = vmatpush1.msra.mxu1 %v642_v12  ;;  %v603_v25 = vld [vmem:[%s7125_s1 + $0x18] sm:$0xff]  ;;  %v602_v27 = vld [vmem:[%s7125_s1 + $0x10] sm:$0xff]  ;;  %p4315_p11 = scmp.lt.s32.totalorder %s7079_s30, %s4313_s12  ;;  %p4316_p12 = scmp.lt.s32.totalorder %s4314_s13, %s4308_s10 }
  0x31   : > { %1997 = vst [vmem:[#allocation2 + $0xc8] sm:$0xff] %v4377_v0  ;;  %1998 = vst [vmem:[#allocation2 + $0xd0] sm:$0x3] %v4377_v0  ;;  %763 = vmatprep.subr.mxu0 %v4377_v0  ;;  %988 = vmatprep.subr.mxu1 %v4377_v0  ;;  %v635_v26 = vld [vmem:[%s7125_s1 + $0x118] sm:$0xff]  ;;  %v634_v28 = vld [vmem:[%s7125_s1 + $0x110] sm:$0xff]  ;;  %p4311_p10 = pneg %p4310_p9 }
  0x32   : > { %1999 = vst [vmem:[#allocation2 + $0xd8] sm:$0xff] %v4377_v0  ;;  %2000 = vst [vmem:[#allocation2 + $0xe0] sm:$0xff] %v4377_v0  ;;  %764 = vmatpush1.msra.mxu0 %v609_v13  ;;  %989 = vmatpush1.msra.mxu1 %v641_v14  ;;  %v601_v29 = vld [vmem:[%s7125_s1 + $0x8] sm:$0xff]  ;;  %v600_v31 = vld [vmem:[%s7125_s1] sm:$0xff]  ;;  %p4317_p13 = por %p4316_p12, %p4315_p11 }
  0x33   : > { %2001 = vst [vmem:[#allocation2 + $0xe8] sm:$0x3] %v4377_v0  ;;  %2002 = vst [vmem:[#allocation2 + $0xf0] sm:$0xff] %v4377_v0  ;;  %765 = vmatprep.subr.mxu0 %v4377_v0  ;;  %990 = vmatprep.subr.mxu1 %v4377_v0  ;;  %v633_v30 = vld [vmem:[%s7125_s1 + $0x108] sm:$0xff]  ;;  %v632_v32 = vld [vmem:[%s7125_s1 + $0x100] sm:$0xff] }
  0x34   : > { %2003 = vst [vmem:[#allocation2 + $0xf8] sm:$0xff] %v4377_v0  ;;  %2004 = vst [vmem:[#allocation2 + $0x100] sm:$0x3] %v4377_v0  ;;  %766 = vmatpush1.msra.mxu0 %v608_v15  ;;  %991 = vmatpush1.msra.mxu1 %v640_v16  ;;  %v631_v33 = vld [vmem:[%s7125_s1 + $0xf8] sm:$0xff]  ;;  %v630_v35 = vld [vmem:[%s7125_s1 + $0xf0] sm:$0xff]  ;;  %p4318_p0 = pnand %p4317_p13, %p4311_p10 }
  0x35   : > { %2005 = vst [vmem:[#allocation2 + $0x108] sm:$0xff] %v4377_v0  ;;  %2006 = vst [vmem:[#allocation2 + $0x110] sm:$0xff] %v4377_v0  ;;  %767 = vmatprep.subr.mxu0 %v4377_v0  ;;  %992 = vmatprep.subr.mxu1 %v4377_v0  ;;  %v663_v34 = vld [vmem:[%s7125_s1 + $0x1f8] sm:$0xff]  ;;  %v662_v36 = vld [vmem:[%s7125_s1 + $0x1f0] sm:$0xff] }
  0x36   : > { %2007 = vst [vmem:[#allocation2 + $0x118] sm:$0x3] %v4377_v0  ;;  %2008 = vst [vmem:[#allocation2 + $0x120] sm:$0xff] %v4377_v0  ;;  %768 = vmatpush1.msra.mxu0 %v607_v17  ;;  %993 = vmatpush1.msra.mxu1 %v639_v18  ;;  %v629_v37 = vld [vmem:[%s7125_s1 + $0xe8] sm:$0xff]  ;;  %v628_v39 = vld [vmem:[%s7125_s1 + $0xe0] sm:$0xff] }
  0x37   : > { %2009 = vst [vmem:[#allocation2 + $0x128] sm:$0xff] %v4377_v0  ;;  %2010 = vst [vmem:[#allocation2 + $0x130] sm:$0x3] %v4377_v0  ;;  %769 = vmatprep.subr.mxu0 %v4377_v0  ;;  %994 = vmatprep.subr.mxu1 %v4377_v0  ;;  %v661_v38 = vld [vmem:[%s7125_s1 + $0x1e8] sm:$0xff]  ;;  %v660_v40 = vld [vmem:[%s7125_s1 + $0x1e0] sm:$0xff] }
  0x38   : > { %2011 = vst [vmem:[#allocation2 + $0x138] sm:$0xff] %v4377_v0  ;;  %2012 = vst [vmem:[#allocation2 + $0x140] sm:$0xff] %v4377_v0  ;;  %770 = vmatpush1.msra.mxu0 %v606_v19  ;;  %995 = vmatpush1.msra.mxu1 %v638_v20  ;;  %v627_v41 = vld [vmem:[%s7125_s1 + $0xd8] sm:$0xff]  ;;  %v626_v43 = vld [vmem:[%s7125_s1 + $0xd0] sm:$0xff] }
  0x39   : > { %2013 = vst [vmem:[#allocation2 + $0x148] sm:$0x3] %v4377_v0  ;;  %2014 = vst [vmem:[#allocation2 + $0x150] sm:$0xff] %v4377_v0  ;;  %771 = vmatprep.subr.mxu0 %v4377_v0  ;;  %996 = vmatprep.subr.mxu1 %v4377_v0  ;;  %v659_v42 = vld [vmem:[%s7125_s1 + $0x1d8] sm:$0xff]  ;;  %v658_v44 = vld [vmem:[%s7125_s1 + $0x1d0] sm:$0xff] }
  0x3a   : > { %2015 = vst [vmem:[#allocation2 + $0x158] sm:$0xff] %v4377_v0  ;;  %2016 = vst [vmem:[#allocation2 + $0x160] sm:$0x3] %v4377_v0  ;;  %772 = vmatpush1.msra.mxu0 %v605_v21  ;;  %997 = vmatpush1.msra.mxu1 %v637_v22  ;;  %v625_v45 = vld [vmem:[%s7125_s1 + $0xc8] sm:$0xff]  ;;  %v624_v47 = vld [vmem:[%s7125_s1 + $0xc0] sm:$0xff] }
  0x3b   : > { %2017 = vst [vmem:[#allocation2 + $0x168] sm:$0xff] %v4377_v0  ;;  %2018 = vst [vmem:[#allocation2 + $0x170] sm:$0xff] %v4377_v0  ;;  %773 = vmatprep.subr.mxu0 %v4377_v0  ;;  %998 = vmatprep.subr.mxu1 %v4377_v0  ;;  %v657_v46 = vld [vmem:[%s7125_s1 + $0x1c8] sm:$0xff]  ;;  %v656_v48 = vld [vmem:[%s7125_s1 + $0x1c0] sm:$0xff] }
  0x3c   : > { %2019 = vst [vmem:[#allocation2 + $0x178] sm:$0x3] %v4377_v0  ;;  %2020 = vst [vmem:[#allocation2 + $0x180] sm:$0xff] %v4377_v0  ;;  %774 = vmatpush1.msra.mxu0 %v604_v23  ;;  %999 = vmatpush1.msra.mxu1 %v636_v24  ;;  %v623_v49 = vld [vmem:[%s7125_s1 + $0xb8] sm:$0xff]  ;;  %v622_v51 = vld [vmem:[%s7125_s1 + $0xb0] sm:$0xff] }
  0x3d   : > { %2021 = vst [vmem:[#allocation2 + $0x188] sm:$0xff] %v4377_v0  ;;  %2022 = vst [vmem:[#allocation2 + $0x190] sm:$0x3] %v4377_v0  ;;  %775 = vmatprep.subr.mxu0 %v4377_v0  ;;  %1000 = vmatprep.subr.mxu1 %v4377_v0  ;;  %v655_v50 = vld [vmem:[%s7125_s1 + $0x1b8] sm:$0xff]  ;;  %v654_v52 = vld [vmem:[%s7125_s1 + $0x1b0] sm:$0xff] }
  0x3e   : > { %2025 = vst [vmem:[#allocation2 + $0x1a8] sm:$0x3] %v4377_v0  ;;  %776 = vmatpush1.msra.mxu0 %v603_v25  ;;  %1001 = vmatpush1.msra.mxu1 %v635_v26  ;;  %v621_v53 = vld [vmem:[%s7125_s1 + $0xa8] sm:$0xff]  ;;  %v238_v55 = vld [vmem:[%s4739_s9] sm:$0xff]  ;;  %v619_v59 = vld [vmem:[%s7125_s1 + $0x98] sm:$0xff] }
  0x3f   : > { %777 = vmatprep.subr.mxu0 %v4377_v0  ;;  %1002 = vmatprep.subr.mxu1 %v4377_v0  ;;  %v653_v54 = vld [vmem:[%s7125_s1 + $0x1a8] sm:$0xff]  ;;  %v620_v57 = vld [vmem:[%s7125_s1 + $0xa0] sm:$0xff]  ;;  %v651_v60 = vld [vmem:[%s7125_s1 + $0x198] sm:$0xff]  ;;  %v341_v61 = vrot.slane %v238_v55, 1  ;;  %v454_v6 = vrot.slane %v238_v55, 2 }
  0x40   : > { %778 = vmatpush1.msra.mxu0 %v602_v27  ;;  %1003 = vmatpush1.msra.mxu1 %v634_v28  ;;  %v4751_v56 = vld [vmem:[%s4739_s9 + $0x8] sm:$0xff]  ;;  %v652_v58 = vld [vmem:[%s7125_s1 + $0x1a0] sm:$0xff]  ;;  %v618_v63 = vld [vmem:[%s7125_s1 + $0x90] sm:$0xff] }
  0x41   : > { %779 = vmatprep.subr.mxu0 %v4377_v0  ;;  %1004 = vmatprep.subr.mxu1 %v4377_v0  ;;  %v342_v62 = vrot.slane %v4751_v56, 1  ;;  %v650_v1 = vld [vmem:[%s7125_s1 + $0x190] sm:$0xff]  ;;  %v617_v3 = vld [vmem:[%s7125_s1 + $0x88] sm:$0xff]  ;;  %v455_v7 = vrot.slane %v4751_v56, 2  ;;  %v4790_v8 = vld [vmem:[%s4739_s9 + $0x20] sm:$0xff] }
  0x42   : > { %780 = vmatpush1.msra.mxu0 %v601_v29  ;;  %1005 = vmatpush1.msra.mxu1 %v633_v30  ;;  %v240_v2 = vld [vmem:[%s4739_s9 + $0x10] sm:$0x3]  ;;  %v649_v5 = vld [vmem:[%s7125_s1 + $0x188] sm:$0xff]  ;;  %v616_v9 = vld [vmem:[%s7125_s1 + $0x80] sm:$0xff]  ;;  %v347_v14 = vrot.slane %v4790_v8, 1  ;;  %v460_v25 = vrot.slane %v4790_v8, 2 }
  0x43   : > { %781 = vmatprep.subr.mxu0 %v4377_v0  ;;  %1006 = vmatprep.subr.mxu1 %v4377_v0  ;;  %v343_v4 = vsel %vm340_vm0, %v341_v61, %v342_v62  ;;  %v344_v10 = vrot.slane %v240_v2, 1  ;;  %v241_v11 = vld [vmem:[%s4739_s9 + $0x18] sm:$0xff]  ;;  %v648_v12 = vld [vmem:[%s7125_s1 + $0x180] sm:$0xff]  ;;  %v456_v16 = vsel %vm453_vm1, %v454_v6, %v455_v7  ;;  %v457_v17 = vrot.slane %v240_v2, 2  ;;  %v243_v18 = vld [vmem:[%s4739_s9 + $0x28] sm:$0x3] }
  0x44   : > { %782 = vmatpush1.msra.mxu0 %v600_v31  ;;  %1007 = vmatpush1.msra.mxu1 %v632_v32  ;;  %v346_v13 = vrot.slane %v241_v11, 1  ;;  %v679_v15 = vld [vmem:[%s7125_s1 + $0x278] sm:$0xff]  ;;  %v678_v20 = vld [vmem:[%s7125_s1 + $0x270] sm:$0xff]  ;;  %v349_v22 = vrot.slane %v243_v18, 1  ;;  %v459_v24 = vrot.slane %v241_v11, 2  ;;  %v677_v28 = vld [vmem:[%s7125_s1 + $0x268] sm:$0xff] }
  0x45   : > { %783 = vmatprep.subr.mxu0 %v4377_v0  ;;  %1008 = vmatprep.subr.mxu1 %v4377_v0  ;;  %v345_v19 = vsel %vm340_vm0, %v342_v62, %v344_v10  ;;  %v458_v23 = vsel %vm453_vm1, %v455_v7, %v457_v17  ;;  %v4821_v26 = vld [vmem:[%s4739_s9 + $0x38] sm:$0xff]  ;;  %v4826_v27 = vld [vmem:[%s4739_s9 + $0x30] sm:$0xff]  ;;  %v676_v30 = vld [vmem:[%s7125_s1 + $0x260] sm:$0xff] }
  0x46   : > { %784 = vmatpush2.msra.mxu0 %v631_v33  ;;  %1009 = vmatpush2.msra.mxu1 %v663_v34  ;;  %v4815_v21 = vsel %vm340_vm0, %v346_v13, %v347_v14  ;;  %v4834_v29 = vsel %vm340_vm0, %v347_v14, %v349_v22  ;;  %v351_v31 = vrot.slane %v4826_v27, 1  ;;  %v352_v32 = vrot.slane %v4821_v26, 1  ;;  %v4917_v61 = vld [vmem:[%s4739_s9 + $0x60] sm:$0xff]  ;;  %v669_v62 = vld [vmem:[%s7125_s1 + $0x228] sm:$0xff]  ;;  %v252_v6 = vld [vmem:[%s4739_s9 + $0x70] sm:$0x3] }
  0x47   : > { %785 = vmatprep.subr.mxu0 %v4377_v0  ;;  %1010 = vmatprep.subr.mxu1 %v4377_v0  ;;  %7267 = vst [vmem:[#allocation9_spill] sm:$0xff] %v4815_v21  ;;  %7268 = vst [vmem:[#allocation10_spill] sm:$0xff] %v4834_v29  ;;  %v4843_v33 = vsel %vm453_vm1, %v459_v24, %v460_v25  ;;  %v462_v34 = vrot.slane %v243_v18, 2  ;;  %v667_v7 = vld [vmem:[%s7125_s1 + $0x218] sm:$0xff]  ;;  %v666_v10 = vld [vmem:[%s7125_s1 + $0x210] sm:$0xff] }
  0x48   : > { %786 = vmatpush2.msra.mxu0 %v630_v35  ;;  %1011 = vmatpush2.msra.mxu1 %v662_v36  ;;  %v246_v35 = vld [vmem:[%s4739_s9 + $0x40] sm:$0x3]  ;;  %v675_v36 = vld [vmem:[%s7125_s1 + $0x258] sm:$0xff]  ;;  %v255_v24 = vld [vmem:[%s4739_s9 + $0x88] sm:$0x3] }
  0x49   : > { %787 = vmatprep.subr.mxu0 %v4377_v0  ;;  %1012 = vmatprep.subr.mxu1 %v4377_v0  ;;  %v4960_v14 = vld [vmem:[%s4739_s9 + $0x80] sm:$0xff] }
  0x4a   : > { %788 = vmatpush2.msra.mxu0 %v629_v37  ;;  %1013 = vmatpush2.msra.mxu1 %v661_v38  ;;  %v4853_v37 = vsel %vm340_vm0, %v351_v31, %v352_v32  ;;  %v354_v38 = vrot.slane %v246_v35, 1 }
  0x4b   : > { %789 = vmatprep.subr.mxu0 %v4377_v0  ;;  %1014 = vmatprep.subr.mxu1 %v4377_v0  ;;  %7269 = vst [vmem:[#allocation11_spill] sm:$0xff] %v4853_v37 }
  0x4c   : > { %790 = vmatpush2.msra.mxu0 %v628_v39  ;;  %1015 = vmatpush2.msra.mxu1 %v660_v40  ;;  %v674_v39 = vld [vmem:[%s7125_s1 + $0x250] sm:$0xff]  ;;  %v4861_v40 = vsel %vm453_vm1, %v460_v25, %v462_v34  ;;  %v695_v25 = vld [vmem:[%s7125_s1 + $0x2f8] sm:$0xff]  ;;  %v480_v34 = vrot.slane %v4960_v14, 2 }
  0x4d   : > { %791 = vmatprep.subr.mxu0 %v4377_v0  ;;  %1016 = vmatprep.subr.mxu1 %v4377_v0 }
  0x4e   : > { %792 = vmatpush2.msra.mxu0 %v627_v41  ;;  %1017 = vmatpush2.msra.mxu1 %v659_v42  ;;  %v464_v41 = vrot.slane %v4826_v27, 2  ;;  %v465_v42 = vrot.slane %v4821_v26, 2 }
  0x4f   : > { %793 = vmatprep.subr.mxu0 %v4377_v0  ;;  %1018 = vmatprep.subr.mxu1 %v4377_v0 }
  0x50   : > { %794 = vmatpush2.msra.mxu0 %v626_v43  ;;  %1019 = vmatpush2.msra.mxu1 %v658_v44  ;;  %v4866_v43 = vld [vmem:[%s4739_s9 + $0x50] sm:$0xff]  ;;  %v4870_v44 = vld [vmem:[%s4739_s9 + $0x48] sm:$0xff] }
  0x51   : > { %795 = vmatprep.subr.mxu0 %v4377_v0  ;;  %1020 = vmatprep.subr.mxu1 %v4377_v0 }
  0x52   : > { %796 = vmatpush2.msra.mxu0 %v625_v45  ;;  %1021 = vmatpush2.msra.mxu1 %v657_v46  ;;  %v673_v45 = vld [vmem:[%s7125_s1 + $0x248] sm:$0xff]  ;;  %v4879_v46 = vsel %vm340_vm0, %v352_v32, %v354_v38  ;;  %v710_v38 = vld [vmem:[%s7125_s1 + $0x370] sm:$0xff] }
  0x53   : > { %797 = vmatprep.subr.mxu0 %v4377_v0  ;;  %1022 = vmatprep.subr.mxu1 %v4377_v0  ;;  %7270 = vst [vmem:[#allocation12_spill] sm:$0xff] %v4879_v46 }
  0x54   : > { %798 = vmatpush2.msra.mxu0 %v624_v47  ;;  %1023 = vmatpush2.msra.mxu1 %v656_v48  ;;  %v356_v47 = vrot.slane %v4870_v44, 1  ;;  %v357_v48 = vrot.slane %v4866_v43, 1 }
  0x55   : > { %799 = vmatprep.subr.mxu0 %v4377_v0  ;;  %1024 = vmatprep.subr.mxu1 %v4377_v0 }
  0x56   : > { %800 = vmatpush2.msra.mxu0 %v623_v49  ;;  %1025 = vmatpush2.msra.mxu1 %v655_v50  ;;  %v672_v49 = vld [vmem:[%s7125_s1 + $0x240] sm:$0xff]  ;;  %v4889_v50 = vsel %vm453_vm1, %v464_v41, %v465_v42 }
  0x57   : > { %801 = vmatprep.subr.mxu0 %v4377_v0  ;;  %1026 = vmatprep.subr.mxu1 %v4377_v0 }
  0x58   : > { %802 = vmatpush2.msra.mxu0 %v622_v51  ;;  %1027 = vmatpush2.msra.mxu1 %v654_v52  ;;  %v467_v51 = vrot.slane %v246_v35, 2  ;;  %v249_v52 = vld [vmem:[%s4739_s9 + $0x58] sm:$0x3] }
  0x59   : > { %803 = vmatprep.subr.mxu0 %v4377_v0  ;;  %1028 = vmatprep.subr.mxu1 %v4377_v0  ;;  %v5007_v35 = vld [vmem:[%s4739_s9 + $0x98] sm:$0xff] }
  0x5a   : > { %804 = vmatpush2.msra.mxu0 %v621_v53  ;;  %1029 = vmatpush2.msra.mxu1 %v653_v54  ;;  %v671_v53 = vld [vmem:[%s7125_s1 + $0x238] sm:$0xff]  ;;  %v4900_v54 = vsel %vm340_vm0, %v356_v47, %v357_v48 }
  0x5b   : > { %805 = vmatprep.subr.mxu0 %v4377_v0  ;;  %1030 = vmatprep.subr.mxu1 %v4377_v0  ;;  %7271 = vst [vmem:[#allocation13_spill] sm:$0xff] %v4900_v54 }
  0x5c   : > { %806 = vmatpush2.msra.mxu0 %v620_v57  ;;  %1031 = vmatpush2.msra.mxu1 %v652_v58  ;;  %v4908_v57 = vsel %vm453_vm1, %v465_v42, %v467_v51  ;;  %v469_v58 = vrot.slane %v4870_v44, 2  ;;  %v372_v42 = vrot.slane %v5007_v35, 1  ;;  %v709_v51 = vld [vmem:[%s7125_s1 + $0x368] sm:$0xff] }
  0x5d   : > { %807 = vmatprep.subr.mxu0 %v4377_v0  ;;  %1032 = vmatprep.subr.mxu1 %v4377_v0 }
  0x5e   : > { %808 = vmatpush2.msra.mxu0 %v619_v59  ;;  %1033 = vmatpush2.msra.mxu1 %v651_v60  ;;  %v470_v59 = vrot.slane %v4866_v43, 2  ;;  %v4913_v60 = vld [vmem:[%s4739_s9 + $0x68] sm:$0xff] }
  0x5f   : > { %809 = vmatprep.subr.mxu0 %v4377_v0  ;;  %1034 = vmatprep.subr.mxu1 %v4377_v0  ;;  %v362_v2 = vrot.slane %v4913_v60, 1  ;;  %v475_v13 = vrot.slane %v4913_v60, 2 }
  0x60   : > { %810 = vmatpush2.msra.mxu0 %v618_v63  ;;  %1035 = vmatpush2.msra.mxu1 %v650_v1  ;;  %v361_v1 = vrot.slane %v4917_v61, 1 }
  0x61   : > { %811 = vmatprep.subr.mxu0 %v4377_v0  ;;  %1036 = vmatprep.subr.mxu1 %v4377_v0 }
  0x62   : > { %812 = vmatpush2.msra.mxu0 %v617_v3  ;;  %815 = vmatprep.mubr.f32.mxu0 %v343_v4  ;;  %v668_v3 = vld [vmem:[%s7125_s1 + $0x220] sm:$0xff]  ;;  %v4936_v4 = vsel %vm453_vm1, %v469_v58, %v470_v59  ;;  %v485_v58 = vrot.slane %v5007_v35, 2 }
  0x63   : > { %813 = vmatprep.subr.mxu0 %v4377_v0  ;;  %1037 = vmatpush2.msra.mxu1 %v649_v5  ;;  %v472_v5 = vrot.slane %v249_v52, 2 }
  0x64   : > { %814 = vmatpush2.msra.mxu0 %v616_v9  ;;  %1038 = vmatprep.subr.mxu1 %v4377_v0  ;;  %v364_v9 = vrot.slane %v252_v6, 1 }
  0x65   : > { %816 = vmatmul.mubr.f32.vlgmr.msra.gmra.mxu0 %v238_v55  ;;  %1201 = vmatprep.subr.mxu0 %v4377_v0  ;;  %v359_v55 = vrot.slane %v249_v52, 1 }
  0x66   : > { %1039 = vmatpush2.msra.mxu1 %v648_v12  ;;  %1040 = vmatprep.mubr.f32.mxu1 %v241_v11  ;;  %v474_v12 = vrot.slane %v4917_v61, 2  ;;  %v4973_v17 = vsel %vm340_vm0, %v362_v2, %v364_v9 }
  0x67   : > { %1202 = vmatpush1.msra.mxu0 %v679_v15  ;;  %1041 = vmatmul.mubr.f32.vlgmr.msra.gmra.mxu1 %v456_v16  ;;  %v4926_v63 = vsel %vm340_vm0, %v357_v48, %v359_v55  ;;  %v4964_v15 = vld [vmem:[%s4739_s9 + $0x78] sm:$0xff]  ;;  %v665_v16 = vld [vmem:[%s7125_s1 + $0x208] sm:$0xff]  ;;  %7274 = vst [vmem:[#allocation16_spill] sm:$0xff] %v4973_v17  ;;  %v482_v48 = vrot.slane %v255_v24, 2 }
  0x68   : > { %820 = vmatprep.mubr.f32.mxu0 %v345_v19  ;;  %1203 = vmatprep.subr.mxu0 %v4377_v0  ;;  %7272 = vst [vmem:[#allocation14_spill] sm:$0xff] %v4926_v63  ;;  %v366_v18 = vrot.slane %v4964_v15, 1  ;;  %v367_v19 = vrot.slane %v4960_v14, 1  ;;  %v4983_v22 = vsel %vm453_vm1, %v474_v12, %v475_v13  ;;  %v479_v32 = vrot.slane %v4964_v15, 2  ;;  %v261_v12 = vld [vmem:[%s4739_s9 + $0xb8] sm:$0x3] }
  0x69   : > { %821 = vmatmul.mubr.f32.gmra.mxu0 %v4751_v56  ;;  %1045 = vmatprep.mubr.f32.mxu1 %v4790_v8  ;;  %v670_v56 = vld [vmem:[%s7125_s1 + $0x230] sm:$0xff]  ;;  %v5046_v55 = vsel %vm453_vm1, %v480_v34, %v482_v48  ;;  %v691_v48 = vld [vmem:[%s7125_s1 + $0x2d8] sm:$0xff] }
  0x6a   : > { %1204 = vmatpush1.msra.mxu0 %v678_v20  ;;  %825 = vmatprep.mubr.f32.mxu0 %v4815_v21  ;;  %v664_v20 = vld [vmem:[%s7125_s1 + $0x200] sm:$0xff]  ;;  %v5030_v47 = vsel %vm453_vm1, %v479_v32, %v480_v34 }
  0x6b   : > { %1046 = vmatmul.mubr.f32.gmra.mxu1 %v458_v23  ;;  %1205 = vmatprep.subr.mxu0 %v4377_v0  ;;  %v477_v23 = vrot.slane %v252_v6, 2 }
  0x6c   : > { %1050 = vmatprep.mubr.f32.mxu1 %v4826_v27  ;;  %1206 = vmatpush1.msra.mxu0 %v677_v28  ;;  %v369_v28 = vrot.slane %v255_v24, 1 }
  0x6d   : > { %826 = vmatmul.mubr.f32.gmra.mxu0 %v241_v11  ;;  %1207 = vmatprep.subr.mxu0 %v4377_v0  ;;  %v4955_v11 = vsel %vm453_vm1, %v470_v59, %v472_v5  ;;  %v5002_v31 = vsel %vm453_vm1, %v475_v13, %v477_v23  ;;  %v5051_v59 = vld [vmem:[%s4739_s9 + $0xb0] sm:$0xff] }
  0x6e   : > { %830 = vmatprep.mubr.f32.mxu0 %v4834_v29  ;;  %1208 = vmatpush1.msra.mxu0 %v676_v30  ;;  %v711_v30 = vld [vmem:[%s7125_s1 + $0x378] sm:$0xff]  ;;  %v377_v6 = vrot.slane %v5051_v59, 1  ;;  %v706_v13 = vld [vmem:[%s7125_s1 + $0x350] sm:$0xff]  ;;  %v490_v24 = vrot.slane %v5051_v59, 2 }
  0x6f   : > { %1051 = vmatmul.mubr.f32.gmra.mxu1 %v4843_v33  ;;  %1209 = vmatprep.subr.mxu0 %v4377_v0 }
  0x70   : > { %1055 = vmatprep.mubr.f32.mxu1 %v4821_v26  ;;  %1210 = vmatpush1.msra.mxu0 %v675_v36  ;;  %v5011_v36 = vld [vmem:[%s4739_s9 + $0x90] sm:$0xff] }
  0x71   : > { %831 = vmatmul.mubr.f32.gmra.mxu0 %v4790_v8  ;;  %1211 = vmatprep.subr.mxu0 %v4377_v0  ;;  %v4947_v8 = vsel %vm340_vm0, %v361_v1, %v362_v2  ;;  %v371_v41 = vrot.slane %v5011_v36, 1  ;;  %v5058_v1 = vld [vmem:[%s4739_s9 + $0xa8] sm:$0xff]  ;;  %v708_v2 = vld [vmem:[%s7125_s1 + $0x360] sm:$0xff] }
  0x72   : > { %835 = vmatprep.mubr.f32.mxu0 %v4853_v37  ;;  %1212 = vmatpush1.msra.mxu0 %v674_v39  ;;  %7273 = vst [vmem:[#allocation15_spill] sm:$0xff] %v4947_v8  ;;  %v5020_v39 = vsel %vm340_vm0, %v367_v19, %v369_v28  ;;  %v376_v5 = vrot.slane %v5058_v1, 1  ;;  %v489_v23 = vrot.slane %v5058_v1, 2  ;;  %v5106_v28 = vld [vmem:[%s4739_s9 + $0xc0] sm:$0xff] }
  0x73   : > { %1056 = vmatmul.mubr.f32.gmra.mxu1 %v4861_v40  ;;  %1213 = vmatprep.subr.mxu0 %v4377_v0  ;;  %7276 = vst [vmem:[#allocation18_spill] sm:$0xff] %v5020_v39  ;;  %v5041_v52 = vsel %vm340_vm0, %v371_v41, %v372_v42  ;;  %v381_v34 = vrot.slane %v5106_v28, 1 }
  0x74   : > { %1060 = vmatprep.mubr.f32.mxu1 %v4870_v44  ;;  %1214 = vmatpush1.msra.mxu0 %v673_v45  ;;  %v694_v45 = vld [vmem:[%s7125_s1 + $0x2f0] sm:$0xff]  ;;  %7277 = vst [vmem:[#allocation19_spill] sm:$0xff] %v5041_v52  ;;  %v5121_v41 = vsel %vm453_vm1, %v489_v23, %v490_v24 }
  0x75   : > { %836 = vmatmul.mubr.f32.gmra.mxu0 %v4826_v27  ;;  %1215 = vmatprep.subr.mxu0 %v4377_v0 }
  0x76   : > { %840 = vmatprep.mubr.f32.mxu0 %v4879_v46  ;;  %1216 = vmatpush1.msra.mxu0 %v672_v49  ;;  %v258_v49 = vld [vmem:[%s4739_s9 + $0xa0] sm:$0x3] }
  0x77   : > { %1061 = vmatmul.mubr.f32.gmra.mxu1 %v4889_v50  ;;  %1217 = vmatprep.subr.mxu0 %v4377_v0 }
  0x78   : > { %1065 = vmatprep.mubr.f32.mxu1 %v4866_v43  ;;  %1218 = vmatpush1.msra.mxu0 %v671_v53  ;;  %v374_v53 = vrot.slane %v258_v49, 1 }
  0x79   : > { %841 = vmatmul.mubr.f32.gmra.mxu0 %v4821_v26  ;;  %1219 = vmatprep.subr.mxu0 %v4377_v0  ;;  %v4994_v26 = vsel %vm340_vm0, %v366_v18, %v367_v19  ;;  %v379_v18 = vrot.slane %v261_v12, 1  ;;  %v692_v19 = vld [vmem:[%s7125_s1 + $0x2e0] sm:$0xff] }
  0x7a   : > { %845 = vmatprep.mubr.f32.mxu0 %v4900_v54  ;;  %1220 = vmatpush1.msra.mxu0 %v670_v56  ;;  %7275 = vst [vmem:[#allocation17_spill] sm:$0xff] %v4994_v26  ;;  %v484_v56 = vrot.slane %v5011_v36, 2 }
  0x7b   : > { %1066 = vmatmul.mubr.f32.gmra.mxu1 %v4908_v57  ;;  %1221 = vmatprep.subr.mxu0 %v4377_v0  ;;  %v5114_v32 = vsel %vm340_vm0, %v377_v6, %v379_v18  ;;  %v690_v18 = vld [vmem:[%s7125_s1 + $0x2d0] sm:$0xff] }
  0x7c   : > { %1070 = vmatprep.mubr.f32.mxu1 %v4917_v61  ;;  %1222 = vmatpush1.msra.mxu0 %v669_v62  ;;  %v693_v62 = vld [vmem:[%s7125_s1 + $0x2e8] sm:$0xff]  ;;  %v5077_v9 = vsel %vm453_vm1, %v484_v56, %v485_v58  ;;  %7280 = vst [vmem:[#allocation22_spill] sm:$0xff] %v5114_v32  ;;  %v703_v56 = vld [vmem:[%s7125_s1 + $0x338] sm:$0xff] }
  0x7d   : > { %846 = vmatmul.mubr.f32.gmra.mxu0 %v4870_v44  ;;  %1223 = vmatprep.subr.mxu0 %v4377_v0 }
  0x7e   : > { %850 = vmatprep.mubr.f32.mxu0 %v4926_v63  ;;  %1224 = vmatpush1.msra.mxu0 %v668_v3  ;;  %v5068_v3 = vsel %vm340_vm0, %v372_v42, %v374_v53  ;;  %v492_v42 = vrot.slane %v261_v12, 2 }
  0x7f   : > { %1071 = vmatmul.mubr.f32.gmra.mxu1 %v4936_v4  ;;  %1225 = vmatprep.subr.mxu0 %v4377_v0  ;;  %7278 = vst [vmem:[#allocation20_spill] sm:$0xff] %v5068_v3 }
  0x80   : > { %1075 = vmatprep.mubr.f32.mxu1 %v4913_v60  ;;  %1226 = vmatpush1.msra.mxu0 %v667_v7  ;;  %v707_v7 = vld [vmem:[%s7125_s1 + $0x358] sm:$0xff] }
  0x81   : > { %851 = vmatmul.mubr.f32.gmra.mxu0 %v4866_v43  ;;  %1227 = vmatprep.subr.mxu0 %v4377_v0 }
  0x82   : > { %855 = vmatprep.mubr.f32.mxu0 %v4947_v8  ;;  %1228 = vmatpush1.msra.mxu0 %v666_v10  ;;  %v487_v10 = vrot.slane %v258_v49, 2  ;;  %v704_v49 = vld [vmem:[%s7125_s1 + $0x340] sm:$0xff] }
  0x83   : > { %1076 = vmatmul.mubr.f32.gmra.mxu1 %v4955_v11  ;;  %1229 = vmatprep.subr.mxu0 %v4377_v0 }
  0x84   : > { %1080 = vmatprep.mubr.f32.mxu1 %v4964_v15  ;;  %1230 = vmatpush1.msra.mxu0 %v665_v16  ;;  %v5088_v16 = vsel %vm340_vm0, %v376_v5, %v377_v6  ;;  %v5152_v5 = vld [vmem:[%s4739_s9 + $0xd8] sm:$0xff]  ;;  %v5154_v6 = vld [vmem:[#allocation2] sm:$0xff] }
  0x85   : > { %856 = vmatmul.mubr.f32.gmra.mxu0 %v4917_v61  ;;  %1231 = vmatprep.subr.mxu0 %v4377_v0  ;;  %7279 = vst [vmem:[#allocation21_spill] sm:$0xff] %v5088_v16  ;;  %7283 = vst [vmem:[#allocation25_spill] sm:$0xff] %v5152_v5  ;;  %v386_v12 = vrot.slane %v5152_v5, 1 }
  0x86   : > { %860 = vmatprep.mubr.f32.mxu0 %v4973_v17  ;;  %1232 = vmatpush1.msra.mxu0 %v664_v20  ;;  %v5096_v20 = vsel %vm453_vm1, %v485_v58, %v487_v10  ;;  %v5143_v58 = vsel %vm453_vm1, %v490_v24, %v492_v42  ;;  %v267_v24 = vld [vmem:[%s4739_s9 + $0xe8] sm:$0x3] }
  0x87   : > { %1081 = vmatmul.mubr.f32.gmra.mxu1 %v4983_v22  ;;  %1233 = vmatprep.subr.mxu0 %v4377_v0 }
  0x88   : > { %1085 = vmatprep.mubr.f32.mxu1 %v4960_v14  ;;  %1234 = vmatpush2.msra.mxu0 %v695_v25  ;;  %v5101_v25 = vld [vmem:[%s4739_s9 + $0xc8] sm:$0xff] }
  0x89   : > { %861 = vmatmul.mubr.f32.gmra.mxu0 %v4913_v60  ;;  %1426 = vmatprep.subr.mxu1 %v4377_v0 }
  0x8a   : > { %865 = vmatprep.mubr.f32.mxu0 %v4994_v26  ;;  %1427 = vmatpush1.msra.mxu1 %v711_v30  ;;  %v705_v30 = vld [vmem:[%s7125_s1 + $0x348] sm:$0xff] }
  0x8b   : > { %1086 = vmatmul.mubr.f32.gmra.mxu1 %v5002_v31  ;;  %1235 = vmatprep.subr.mxu0 %v4377_v0 }
  0x8c   : > { %1090 = vmatprep.mubr.f32.mxu1 %v5011_v36  ;;  %1428 = vmatprep.subr.mxu1 %v4377_v0 }
  0x8d   : > { %866 = vmatmul.mubr.f32.gmra.mxu0 %v4964_v15  ;;  %1429 = vmatpush1.msra.mxu1 %v710_v38  ;;  %v382_v38 = vrot.slane %v5101_v25, 1 }
  0x8e   : > { %870 = vmatprep.mubr.f32.mxu0 %v5020_v39  ;;  %1236 = vmatpush2.msra.mxu0 %v694_v45  ;;  %v264_v45 = vld [vmem:[%s4739_s9 + $0xd0] sm:$0x3] }
  0x8f   : > { %1091 = vmatmul.mubr.f32.gmra.mxu1 %v5030_v47  ;;  %1430 = vmatprep.subr.mxu1 %v4377_v0  ;;  %v384_v53 = vrot.slane %v264_v45, 1  ;;  %v497_v23 = vrot.slane %v264_v45, 2  ;;  %v499_v45 = vrot.slane %v5152_v5, 2 }
  0x90   : > { %1095 = vmatprep.mubr.f32.mxu1 %v5007_v35  ;;  %1431 = vmatpush1.msra.mxu1 %v709_v51  ;;  %v5136_v51 = vsel %vm340_vm0, %v381_v34, %v382_v38 }
  0x91   : > { %871 = vmatmul.mubr.f32.gmra.mxu0 %v4960_v14  ;;  %1237 = vmatprep.subr.mxu0 %v4377_v0  ;;  %7281 = vst [vmem:[#allocation23_spill] sm:$0xff] %v5136_v51  ;;  %v5163_v10 = vsel %vm340_vm0, %v382_v38, %v384_v53  ;;  %v389_v38 = vrot.slane %v267_v24, 1  ;;  %v689_v53 = vld [vmem:[%s7125_s1 + $0x2c8] sm:$0xff] }
  0x92   : > { %875 = vmatprep.mubr.f32.mxu0 %v5041_v52  ;;  %1432 = vmatprep.subr.mxu1 %v4377_v0  ;;  %7284 = vst [vmem:[#allocation26_spill] sm:$0xff] %v5163_v10 }
  0x93   : > { %1096 = vmatmul.mubr.f32.gmra.mxu1 %v5046_v55  ;;  %1238 = vmatpush2.msra.mxu0 %v693_v62  ;;  %v494_v62 = vrot.slane %v5106_v28, 2 }
  0x94   : > { %1100 = vmatprep.mubr.f32.mxu1 %v5058_v1  ;;  %1433 = vmatpush1.msra.mxu1 %v708_v2  ;;  %v5148_v2 = vld [vmem:[%s4739_s9 + $0xe0] sm:$0xff] }
  0x95   : > { %876 = vmatmul.mubr.f32.gmra.mxu0 %v5011_v36  ;;  %1434 = vmatprep.subr.mxu1 %v4377_v0  ;;  %7282 = vst [vmem:[#allocation24_spill] sm:$0xff] %v5148_v2 }
  0x96   : > { %880 = vmatprep.mubr.f32.mxu0 %v5068_v3  ;;  %1435 = vmatpush1.msra.mxu1 %v707_v7  ;;  %v702_v7 = vld [vmem:[%s7125_s1 + $0x330] sm:$0xff] }
  0x97   : > { %1101 = vmatmul.mubr.f32.gmra.mxu1 %v5077_v9  ;;  %1239 = vmatprep.subr.mxu0 %v4377_v0 }
  0x98   : > { %1105 = vmatprep.mubr.f32.mxu1 %v5051_v59  ;;  %1436 = vmatprep.subr.mxu1 %v4377_v0 }
  0x99   : > { %881 = vmatmul.mubr.f32.gmra.mxu0 %v5007_v35  ;;  %1437 = vmatpush1.msra.mxu1 %v706_v13  ;;  %v387_v13 = vrot.slane %v5148_v2, 1 }
  0x9a   : > { %885 = vmatprep.mubr.f32.mxu0 %v5088_v16  ;;  %1240 = vmatpush2.msra.mxu0 %v692_v19 }
  0x9b   : > { %1106 = vmatmul.mubr.f32.gmra.mxu1 %v5096_v20  ;;  %1438 = vmatprep.subr.mxu1 %v4377_v0  ;;  %v5184_v34 = vsel %vm340_vm0, %v386_v12, %v387_v13 }
  0x9c   : > { %1110 = vmatprep.mubr.f32.mxu1 %v5106_v28  ;;  %1439 = vmatpush1.msra.mxu1 %v705_v30  ;;  %v701_v30 = vld [vmem:[%s7125_s1 + $0x328] sm:$0xff]  ;;  %7285 = vst [vmem:[#allocation27_spill] sm:$0xff] %v5184_v34 }
  0x9d   : > { %886 = vmatmul.mubr.f32.gmra.mxu0 %v5058_v1  ;;  %1241 = vmatprep.subr.mxu0 %v4377_v0 }
  0x9e   : > { %890 = vmatprep.mubr.f32.mxu0 %v5114_v32  ;;  %1440 = vmatprep.subr.mxu1 %v4377_v0  ;;  %v495_v0 = vrot.slane %v5101_v25, 2 }
  0x9f   : > { %1111 = vmatmul.mubr.f32.gmra.mxu1 %v5121_v41  ;;  %1242 = vmatpush2.msra.mxu0 %v691_v48  ;;  %v500_v48 = vrot.slane %v5148_v2, 2 }
  0xa0   : > { %1115 = vmatprep.mubr.f32.mxu1 %v5101_v25  ;;  %1441 = vmatpush1.msra.mxu1 %v704_v49  ;;  %v5173_v19 = vsel %vm453_vm1, %v494_v62, %v495_v0  ;;  %v5189_v42 = vsel %vm453_vm1, %v495_v0, %v497_v23  ;;  %v5194_v49 = vld [vmem:[%s4739_s9 + $0xf8] sm:$0xff]  ;;  %v700_v62 = vld [vmem:[%s7125_s1 + $0x320] sm:$0xff]  ;;  %v5211_v0 = vsel %vm340_vm0, %v387_v13, %v389_v38  ;;  %v698_v13 = vld [vmem:[%s7125_s1 + $0x310] sm:$0xff] }
  0xa1   : > { %891 = vmatmul.mubr.f32.gmra.mxu0 %v5051_v59  ;;  %1442 = vmatprep.subr.mxu1 %v5154_v6  ;;  %7286 = vst [vmem:[#allocation28_spill] sm:$0xff] %v5189_v42  ;;  %7287 = vst [vmem:[#allocation29_spill] sm:$0xff] %v5194_v49  ;;  %v392_v12 = vrot.slane %v5194_v49, 1  ;;  %v5220_v23 = vsel %vm453_vm1, %v499_v45, %v500_v48  ;;  %v688_v45 = vld [vmem:[%s7125_s1 + $0x2c0] sm:$0xff] }
  0xa2   : > { %895 = vmatprep.mubr.f32.mxu0 %v5136_v51  ;;  %1443 = vmatpush1.msra.mxu1 %v703_v56  ;;  %v5201_v56 = vld [vmem:[%s4739_s9 + $0xf0] sm:$0xff]  ;;  %7289 = vst [vmem:[#allocation31_spill] sm:$0xff] %v5211_v0  ;;  %7290 = vst [vmem:[#allocation32_spill] sm:$0xff] %v5220_v23 }
  0xa3   : > { %1116 = vmatmul.mubr.f32.gmra.mxu1 %v5143_v58  ;;  %1243 = vmatprep.subr.mxu0 %v5154_v6  ;;  %7288 = vst [vmem:[#allocation30_spill] sm:$0xff] %v5201_v56 }
  0xa4   : > { %1120 = vmatprep.mubr.f32.mxu1 %v5152_v5  ;;  %1444 = vmatprep.subr.mxu1 %v5154_v6 }
  0xa5   : > { %896 = vmatmul.mubr.f32.gmra.mxu0 %v5106_v28  ;;  %1445 = vmatpush1.msra.mxu1 %v702_v7  ;;  %v391_v7 = vrot.slane %v5201_v56, 1 }
  0xa6   : > { %900 = vmatprep.mubr.f32.mxu0 %v5163_v10  ;;  %1244 = vmatpush2.msra.mxu0 %v690_v18  ;;  %v699_v18 = vld [vmem:[%s7125_s1 + $0x318] sm:$0xff] }
  0xa7   : > { %1121 = vmatmul.mubr.f32.gmra.mxu1 %v5173_v19  ;;  %1446 = vmatprep.subr.mxu1 %v5154_v6  ;;  %v5231_v38 = vsel %vm340_vm0, %v391_v7, %v392_v12  ;;  %v5249_v7 = vld [vmem:[%s4739_s9 + $0x108] sm:$0xff] }
  0xa8   : > { %1125 = vmatprep.mubr.f32.mxu1 %v5148_v2  ;;  %1447 = vmatpush1.msra.mxu1 %v701_v30  ;;  %v502_v30 = vrot.slane %v267_v24, 2  ;;  %7291 = vst [vmem:[#allocation33_spill] sm:$0xff] %v5231_v38  ;;  %7294 = vst [vmem:[#allocation36_spill] sm:$0xff] %v5249_v7 }
  0xa9   : > { %901 = vmatmul.mubr.f32.gmra.mxu0 %v5101_v25  ;;  %1245 = vmatprep.subr.mxu0 %v5154_v6 }
  0xaa   : > { %905 = vmatprep.mubr.f32.mxu0 %v5184_v34  ;;  %1448 = vmatprep.subr.mxu1 %v5154_v6  ;;  %v270_v34 = vld [vmem:[%s4739_s9 + $0x100] sm:$0x3] }
  0xab   : > { %1126 = vmatmul.mubr.f32.gmra.mxu1 %v5189_v42  ;;  %1246 = vmatpush2.msra.mxu0 %v689_v53  ;;  %v394_v24 = vrot.slane %v270_v34, 1  ;;  %v5239_v53 = vsel %vm453_vm1, %v500_v48, %v502_v30  ;;  %v396_v30 = vrot.slane %v5249_v7, 1  ;;  %v273_v42 = vld [vmem:[%s4739_s9 + $0x118] sm:$0x3] }
  0xac   : > { %1130 = vmatprep.mubr.f32.mxu1 %v5201_v56  ;;  %1449 = vmatpush1.msra.mxu1 %v700_v62  ;;  %7292 = vst [vmem:[#allocation34_spill] sm:$0xff] %v5239_v53  ;;  %v504_v62 = vrot.slane %v5201_v56, 2 }
  0xad   : > { %906 = vmatmul.mubr.f32.gmra.mxu0 %v5152_v5  ;;  %1450 = vmatprep.subr.mxu1 %v5154_v6  ;;  %v5257_v48 = vsel %vm340_vm0, %v392_v12, %v394_v24  ;;  %v687_v12 = vld [vmem:[%s7125_s1 + $0x2b8] sm:$0xff]  ;;  %v696_v24 = vld [vmem:[%s7125_s1 + $0x300] sm:$0xff] }
  0xae   : > { %910 = vmatprep.mubr.f32.mxu0 %v5211_v0  ;;  %1451 = vmatpush1.msra.mxu1 %v699_v18  ;;  %v505_v18 = vrot.slane %v5194_v49, 2  ;;  %v697_v0 = vld [vmem:[%s7125_s1 + $0x308] sm:$0xff]  ;;  %7295 = vst [vmem:[#allocation37_spill] sm:$0xff] %v5257_v48 }
  0xaf   : > { %1131 = vmatmul.mubr.f32.gmra.mxu1 %v5220_v23  ;;  %1247 = vmatprep.subr.mxu0 %v5154_v6  ;;  %v5244_v23 = vld [vmem:[%s4739_s9 + $0x110] sm:$0xff] }
  0xb0   : > { %1135 = vmatprep.mubr.f32.mxu1 %v5194_v49  ;;  %7293 = vst [vmem:[#allocation35_spill] sm:$0xff] %v5244_v23  ;;  %1452 = vmatprep.subr.mxu1 %v5154_v6  ;;  %v397_v5 = vrot.slane %v5244_v23, 1 }
  0xb1   : > { %911 = vmatmul.mubr.f32.gmra.mxu0 %v5148_v2  ;;  %1453 = vmatpush1.msra.mxu1 %v698_v13  ;;  %v5264_v13 = vsel %vm453_vm1, %v504_v62, %v505_v18  ;;  %v507_v2 = vrot.slane %v270_v34, 2 }
  0xb2   : > { %915 = vmatprep.mubr.f32.mxu0 %v5231_v38  ;;  %1248 = vmatpush2.msra.mxu0 %v688_v45  ;;  %7296 = vst [vmem:[#allocation38_spill] sm:$0xff] %v5264_v13  ;;  %v5279_v34 = vsel %vm340_vm0, %v396_v30, %v397_v5  ;;  %v727_v45 = vld [vmem:[%s7125_s1 + $0x3f8] sm:$0xff]  ;;  %v5295_v30 = vld [vmem:[%s4739_s9 + $0x120] sm:$0xff] }
  0xb3   : > { %1136 = vmatmul.mubr.f32.gmra.mxu1 %v5239_v53  ;;  %1454 = vmatprep.subr.mxu1 %v5154_v6  ;;  %7297 = vst [vmem:[#allocation39_spill] sm:$0xff] %v5279_v34  ;;  %v5286_v62 = vsel %vm453_vm1, %v505_v18, %v507_v2  ;;  %v5291_v53 = vld [vmem:[%s4739_s9 + $0x128] sm:$0xff]  ;;  %7300 = vst [vmem:[#allocation42_spill] sm:$0xff] %v5295_v30  ;;  %v726_v2 = vld [vmem:[%s7125_s1 + $0x3f0] sm:$0xff] }
  0xb4   : > { %1140 = vmatprep.mubr.f32.mxu1 %v5249_v7  ;;  %1455 = vmatpush1.msra.mxu1 %v697_v0  ;;  %v399_v0 = vrot.slane %v273_v42, 1  ;;  %7298 = vst [vmem:[#allocation40_spill] sm:$0xff] %v5286_v62  ;;  %7299 = vst [vmem:[#allocation41_spill] sm:$0xff] %v5291_v53 }
  0xb5   : > { %916 = vmatmul.mubr.f32.gmra.mxu0 %v5201_v56  ;;  %1249 = vmatprep.subr.mxu0 %v5154_v6  ;;  %v510_v56 = vrot.slane %v5244_v23, 2 }
  0xb6   : > { %920 = vmatprep.mubr.f32.mxu0 %v5257_v48  ;;  %1456 = vmatprep.subr.mxu1 %v5154_v6  ;;  %v509_v48 = vrot.slane %v5249_v7, 2  ;;  %v5304_v18 = vsel %vm340_vm0, %v397_v5, %v399_v0  ;;  %v725_v5 = vld [vmem:[%s7125_s1 + $0x3e8] sm:$0xff] }
  0xb7   : > { %1141 = vmatmul.mubr.f32.gmra.mxu1 %v5264_v13  ;;  %1250 = vmatpush2.msra.mxu0 %v687_v12  ;;  %7301 = vst [vmem:[#allocation43_spill] sm:$0xff] %v5304_v18  ;;  %v401_v12 = vrot.slane %v5295_v30, 1  ;;  %v5335_v13 = vld [vmem:[%s4739_s9 + $0x140] sm:$0xff] }
  0xb8   : > { %1145 = vmatprep.mubr.f32.mxu1 %v5244_v23  ;;  %1457 = vmatpush1.msra.mxu1 %v696_v24  ;;  %v402_v24 = vrot.slane %v5291_v53, 1 }
  0xb9   : > { %921 = vmatmul.mubr.f32.gmra.mxu0 %v5194_v49  ;;  %1458 = vmatprep.subr.mxu1 %v5154_v6  ;;  %v512_v49 = vrot.slane %v273_v42, 2 }
  0xba   : > { %925 = vmatprep.mubr.f32.mxu0 %v5279_v34  ;;  %1459 = vmatpush2.msra.mxu1 %v727_v45  ;;  %v686_v34 = vld [vmem:[%s7125_s1 + $0x2b0] sm:$0xff]  ;;  %v5314_v45 = vsel %vm453_vm1, %v509_v48, %v510_v56  ;;  %v5325_v48 = vsel %vm340_vm0, %v401_v12, %v402_v24  ;;  %v5342_v12 = vld [vmem:[%s4739_s9 + $0x138] sm:$0xff] }
  0xbb   : > { %1146 = vmatmul.mubr.f32.gmra.mxu1 %v5286_v62  ;;  %1251 = vmatprep.subr.mxu0 %v5154_v6  ;;  %7302 = vst [vmem:[#allocation44_spill] sm:$0xff] %v5314_v45  ;;  %v276_v62 = vld [vmem:[%s4739_s9 + $0x130] sm:$0x3]  ;;  %7303 = vst [vmem:[#allocation45_spill] sm:$0xff] %v5325_v48  ;;  %v5330_v0 = vsel %vm453_vm1, %v510_v56, %v512_v49  ;;  %v724_v49 = vld [vmem:[%s7125_s1 + $0x3e0] sm:$0xff] }
  0xbc   : > { %1150 = vmatprep.mubr.f32.mxu1 %v5295_v30  ;;  %1460 = vmatprep.subr.mxu1 %v5154_v6  ;;  %v404_v42 = vrot.slane %v276_v62, 1  ;;  %7304 = vst [vmem:[#allocation46_spill] sm:$0xff] %v5330_v0  ;;  %7305 = vst [vmem:[#allocation47_spill] sm:$0xff] %v5342_v12 }
  0xbd   : > { %926 = vmatmul.mubr.f32.gmra.mxu0 %v5249_v7  ;;  %1461 = vmatpush2.msra.mxu1 %v726_v2  ;;  %v514_v2 = vrot.slane %v5295_v30, 2  ;;  %v515_v7 = vrot.slane %v5291_v53, 2 }
  0xbe   : > { %930 = vmatprep.mubr.f32.mxu0 %v5304_v18  ;;  %1252 = vmatpush2.msra.mxu0 %v686_v34  ;;  %v685_v34 = vld [vmem:[%s7125_s1 + $0x2a8] sm:$0xff]  ;;  %v5352_v56 = vsel %vm340_vm0, %v402_v24, %v404_v42  ;;  %v517_v18 = vrot.slane %v276_v62, 2  ;;  %v722_v24 = vld [vmem:[%s7125_s1 + $0x3d0] sm:$0xff] }
  0xbf   : > { %1151 = vmatmul.mubr.f32.gmra.mxu1 %v5314_v45  ;;  %1462 = vmatprep.subr.mxu1 %v5154_v6  ;;  %7306 = vst [vmem:[#allocation48_spill] sm:$0xff] %v5352_v56  ;;  %v723_v45 = vld [vmem:[%s7125_s1 + $0x3d8] sm:$0xff] }
  0xc0   : > { %1155 = vmatprep.mubr.f32.mxu1 %v5291_v53  ;;  %1463 = vmatpush2.msra.mxu1 %v725_v5  ;;  %v406_v5 = vrot.slane %v5342_v12, 1 }
  0xc1   : > { %931 = vmatmul.mubr.f32.gmra.mxu0 %v5244_v23  ;;  %1253 = vmatprep.subr.mxu0 %v5154_v6  ;;  %v407_v23 = vrot.slane %v5335_v13, 1 }
  0xc2   : > { %935 = vmatprep.mubr.f32.mxu0 %v5325_v48  ;;  %1464 = vmatprep.subr.mxu1 %v5154_v6  ;;  %v5361_v48 = vsel %vm453_vm1, %v514_v2, %v515_v7  ;;  %v684_v2 = vld [vmem:[%s7125_s1 + $0x2a0] sm:$0xff] }
  0xc3   : > { %1156 = vmatmul.mubr.f32.gmra.mxu1 %v5330_v0  ;;  %1254 = vmatpush2.msra.mxu0 %v685_v34  ;;  %7307 = vst [vmem:[#allocation49_spill] sm:$0xff] %v5361_v48  ;;  %v279_v0 = vld [vmem:[%s4739_s9 + $0x148] sm:$0x3]  ;;  %v5372_v42 = vsel %vm340_vm0, %v406_v5, %v407_v23  ;;  %v519_v34 = vrot.slane %v5342_v12, 2  ;;  %v5386_v5 = vld [vmem:[%s4739_s9 + $0x158] sm:$0xff] }
  0xc4   : > { %1160 = vmatprep.mubr.f32.mxu1 %v5342_v12  ;;  %1465 = vmatpush2.msra.mxu1 %v724_v49  ;;  %7308 = vst [vmem:[#allocation50_spill] sm:$0xff] %v5372_v42  ;;  %v409_v62 = vrot.slane %v279_v0, 1  ;;  %v520_v49 = vrot.slane %v5335_v13, 2  ;;  %7310 = vst [vmem:[#allocation52_spill] sm:$0xff] %v5386_v5 }
  0xc5   : > { %936 = vmatmul.mubr.f32.gmra.mxu0 %v5295_v30  ;;  %1466 = vmatprep.subr.mxu1 %v5154_v6  ;;  %v522_v30 = vrot.slane %v279_v0, 2 }
  0xc6   : > { %940 = vmatprep.mubr.f32.mxu0 %v5352_v56  ;;  %1467 = vmatpush2.msra.mxu1 %v723_v45  ;;  %v5380_v45 = vsel %vm453_vm1, %v515_v7, %v517_v18  ;;  %v721_v56 = vld [vmem:[%s7125_s1 + $0x3c8] sm:$0xff]  ;;  %v5398_v7 = vsel %vm340_vm0, %v407_v23, %v409_v62  ;;  %v720_v23 = vld [vmem:[%s7125_s1 + $0x3c0] sm:$0xff]  ;;  %v719_v62 = vld [vmem:[%s7125_s1 + $0x3b8] sm:$0xff] }
  0xc7   : > { %1161 = vmatmul.mubr.f32.gmra.mxu1 %v5361_v48  ;;  %1255 = vmatprep.subr.mxu0 %v5154_v6  ;;  %7309 = vst [vmem:[#allocation51_spill] sm:$0xff] %v5380_v45  ;;  %v5390_v48 = vld [vmem:[%s4739_s9 + $0x150] sm:$0xff]  ;;  %7312 = vst [vmem:[#allocation54_spill] sm:$0xff] %v5398_v7 }
  0xc8   : > { %1165 = vmatprep.mubr.f32.mxu1 %v5335_v13  ;;  %1468 = vmatprep.subr.mxu1 %v5154_v6  ;;  %7311 = vst [vmem:[#allocation53_spill] sm:$0xff] %v5390_v48  ;;  %v411_v18 = vrot.slane %v5390_v48, 1 }
  0xc9   : > { %941 = vmatmul.mubr.f32.gmra.mxu0 %v5291_v53  ;;  %1469 = vmatpush2.msra.mxu1 %v722_v24  ;;  %v412_v53 = vrot.slane %v5386_v5, 1  ;;  %v5405_v24 = vsel %vm453_vm1, %v519_v34, %v520_v49  ;;  %v5427_v34 = vsel %vm453_vm1, %v520_v49, %v522_v30  ;;  %v718_v30 = vld [vmem:[%s7125_s1 + $0x3b0] sm:$0xff] }
  0xca   : > { %945 = vmatprep.mubr.f32.mxu0 %v5372_v42  ;;  %1256 = vmatpush2.msra.mxu0 %v684_v2  ;;  %7313 = vst [vmem:[#allocation55_spill] sm:$0xff] %v5405_v24  ;;  %v683_v2 = vld [vmem:[%s7125_s1 + $0x298] sm:$0xff]  ;;  %7315 = vst [vmem:[#allocation57_spill] sm:$0xff] %v5427_v34 }
  0xcb   : > { %1166 = vmatmul.mubr.f32.gmra.mxu1 %v5380_v45  ;;  %1470 = vmatprep.subr.mxu1 %v5154_v6  ;;  %v282_v45 = vld [vmem:[%s4739_s9 + $0x160] sm:$0x3]  ;;  %v5420_v0 = vsel %vm340_vm0, %v411_v18, %v412_v53  ;;  %v5436_v18 = vld [vmem:[%s4739_s9 + $0x168] sm:$0xff] }
  0xcc   : > { %1170 = vmatprep.mubr.f32.mxu1 %v5390_v48  ;;  %1471 = vmatpush2.msra.mxu1 %v721_v56  ;;  %7314 = vst [vmem:[#allocation56_spill] sm:$0xff] %v5420_v0  ;;  %v414_v56 = vrot.slane %v282_v45, 1 }
  0xcd   : > { %946 = vmatmul.mubr.f32.gmra.mxu0 %v5342_v12  ;;  %1257 = vmatprep.subr.mxu0 %v5154_v6  ;;  %v525_v12 = vrot.slane %v5386_v5, 2 }
  0xce   : > { %950 = vmatprep.mubr.f32.mxu0 %v5398_v7  ;;  %1472 = vmatprep.subr.mxu1 %v5154_v6  ;;  %v524_v7 = vrot.slane %v5390_v48, 2  ;;  %v5445_v49 = vsel %vm340_vm0, %v412_v53, %v414_v56  ;;  %v285_v53 = vld [vmem:[%s4739_s9 + $0x178] sm:$0x3]  ;;  %v717_v56 = vld [vmem:[%s7125_s1 + $0x3a8] sm:$0xff] }
  0xcf   : > { %1171 = vmatmul.mubr.f32.gmra.mxu1 %v5405_v24  ;;  %1258 = vmatpush2.msra.mxu0 %v683_v2  ;;  %v5432_v24 = vld [vmem:[%s4739_s9 + $0x170] sm:$0xff]  ;;  %7316 = vst [vmem:[#allocation58_spill] sm:$0xff] %v5445_v49 }
  0xd0   : > { %1175 = vmatprep.mubr.f32.mxu1 %v5386_v5  ;;  %1473 = vmatpush2.msra.mxu1 %v720_v23  ;;  %v682_v2 = vld [vmem:[%s7125_s1 + $0x290] sm:$0xff]  ;;  %v416_v23 = vrot.slane %v5436_v18, 1 }
  0xd1   : > { %951 = vmatmul.mubr.f32.gmra.mxu0 %v5335_v13  ;;  %1474 = vmatprep.subr.mxu1 %v5154_v6 }
  0xd2   : > { %955 = vmatprep.mubr.f32.mxu0 %v5420_v0  ;;  %1475 = vmatpush2.msra.mxu1 %v719_v62  ;;  %v417_v0 = vrot.slane %v5432_v24, 1  ;;  %v5455_v62 = vsel %vm453_vm1, %v524_v7, %v525_v12 }
  0xd3   : > { %1176 = vmatmul.mubr.f32.gmra.mxu1 %v5427_v34  ;;  %1259 = vmatprep.subr.mxu0 %v5154_v6  ;;  %7317 = vst [vmem:[#allocation59_spill] sm:$0xff] %v5455_v62  ;;  %v527_v34 = vrot.slane %v282_v45, 2  ;;  %v419_v45 = vrot.slane %v285_v53, 1 }
  0xd4   : > { %1180 = vmatprep.mubr.f32.mxu1 %v5436_v18  ;;  %1476 = vmatprep.subr.mxu1 %v5154_v6  ;;  %v5467_v7 = vsel %vm340_vm0, %v416_v23, %v417_v0  ;;  %v5481_v23 = vld [vmem:[%s4739_s9 + $0x180] sm:$0xff] }
  0xd5   : > { %956 = vmatmul.mubr.f32.gmra.mxu0 %v5390_v48  ;;  %1477 = vmatpush2.msra.mxu1 %v718_v30  ;;  %7318 = vst [vmem:[#allocation60_spill] sm:$0xff] %v5467_v7  ;;  %v5471_v30 = vsel %vm453_vm1, %v525_v12, %v527_v34  ;;  %v681_v48 = vld [vmem:[%s7125_s1 + $0x288] sm:$0xff]  ;;  %v716_v12 = vld [vmem:[%s7125_s1 + $0x3a0] sm:$0xff]  ;;  %v5490_v34 = vsel %vm340_vm0, %v417_v0, %v419_v45 }
  0xd6   : > { %960 = vmatprep.mubr.f32.mxu0 %v5445_v49  ;;  %1260 = vmatpush2.msra.mxu0 %v682_v2  ;;  %7319 = vst [vmem:[#allocation61_spill] sm:$0xff] %v5471_v30  ;;  %v529_v2 = vrot.slane %v5436_v18, 2  ;;  %7320 = vst [vmem:[#allocation62_spill] sm:$0xff] %v5490_v34  ;;  %v532_v49 = vrot.slane %v285_v53, 2  ;;  %v680_v0 = vld [vmem:[%s7125_s1 + $0x280] sm:$0xff]  ;;  %v713_v45 = vld [vmem:[%s7125_s1 + $0x388] sm:$0xff] }
  0xd7   : > { %1181 = vmatmul.mubr.f32.gmra.mxu1 %v5455_v62  ;;  %1478 = vmatprep.subr.mxu1 %v5154_v6  ;;  %v530_v62 = vrot.slane %v5432_v24, 2 }
  0xd8   : > { %1185 = vmatprep.mubr.f32.mxu1 %v5432_v24  ;;  %1479 = vmatpush2.msra.mxu1 %v717_v56  ;;  %v715_v56 = vld [vmem:[%s7125_s1 + $0x398] sm:$0xff] }
  0xd9   : > { %961 = vmatmul.mubr.f32.gmra.mxu0 %v5386_v5  ;;  %1261 = vmatprep.subr.mxu0 %v5154_v6  ;;  %v5497_v5 = vsel %vm453_vm1, %v529_v2, %v530_v62  ;;  %v5516_v53 = vsel %vm453_vm1, %v530_v62, %v532_v49  ;;  %v743_v2 = vld [vmem:[%s7125_s1 + $0x478] sm:$0xff]  ;;  %v712_v49 = vld [vmem:[%s7125_s1 + $0x380] sm:$0xff]  ;;  %v742_v62 = vld [vmem:[%s7125_s1 + $0x470] sm:$0xff] }
  0xda   : > { %965 = vmatprep.mubr.f32.mxu0 %v5467_v7  ;;  %1480 = vmatprep.subr.mxu1 %v5154_v6 }
  0xdb   : > { %1186 = vmatmul.mubr.f32.gmra.mxu1 %v5471_v30  ;;  %1262 = vmatpush2.msra.mxu0 %v681_v48  ;;  %v5502_v30 = vld [vmem:[%s4739_s9 + $0x188] sm:$0xff]  ;;  %v714_v48 = vld [vmem:[%s7125_s1 + $0x390] sm:$0xff] }
  0xdc   : > { %1190 = vmatprep.mubr.f32.mxu1 %v5481_v23  ;;  %1481 = vmatpush2.msra.mxu1 %v716_v12  ;;  %v740_v12 = vld [vmem:[%s7125_s1 + $0x460] sm:$0xff] }
  0xdd   : > { %966 = vmatmul.mubr.f32.gmra.mxu0 %v5436_v18  ;;  %1482 = vmatprep.subr.mxu1 %v5154_v6 }
  0xde   : > { %970 = vmatprep.mubr.f32.mxu0 %v5490_v34  ;;  %1483 = vmatpush2.msra.mxu1 %v715_v56  ;;  %v4272_v56 = vld [vmem:[%s4739_s9 + $0x38] sm:$0xff] }
  0xdf   : > { %1191 = vmatmul.mubr.f32.gmra.mxu1 %v5497_v5  ;;  %1263 = vmatprep.subr.mxu0 %v5154_v6 }
  0xe0   : > { %1484 = vmatprep.subr.mxu1 %v5154_v6  ;;  %1195 = vmatprep.mubr.f32.mxu1 %v5502_v30 }
  0xe1   : > { %971 = vmatmul.mubr.f32.gmra.mxu0 %v5432_v24  ;;  %1485 = vmatpush2.msra.mxu1 %v714_v48  ;;  %v737_v48 = vld [vmem:[%s7125_s1 + $0x448] sm:$0xff] }
  0xe2   : > { %1264 = vmatpush2.msra.mxu0 %v680_v0  ;;  %1486 = vmatprep.subr.mxu1 %v5154_v6  ;;  %v736_v0 = vld [vmem:[%s7125_s1 + $0x440] sm:$0xff] }
  0xe3   : > { %1196 = vmatmul.mubr.f32.gmra.mxu1 %v5516_v53  ;;  %1265 = vmatprep.mubr.f32.mxu0 %v4843_v33  ;;  %v741_v33 = vld [vmem:[%s7125_s1 + $0x468] sm:$0xff] }
  0xe4   : > { %1487 = vmatpush2.msra.mxu1 %v713_v45  ;;  %4055 = vmatprep.subr.mxu0 %v743_v2  ;;  %v734_v45 = vld [vmem:[%s7125_s1 + $0x430] sm:$0xff] }
  0xe5   : > { %1266 = vmatmul.mubr.f32.vlgmr.msra.gmra.mxu0 %v4815_v21  ;;  %1488 = vmatprep.subr.mxu1 %v5154_v6 }
  0xe6   : > { %1489 = vmatpush2.msra.mxu1 %v712_v49  ;;  %1490 = vmatprep.mubr.f32.mxu1 %v4853_v37  ;;  %v730_v49 = vld [vmem:[%s7125_s1 + $0x410] sm:$0xff] }
  0xe7   : > { %4056 = vmatpush3.msra.mxu0 %v743_v2  ;;  %1491 = vmatmul.mubr.f32.vlgmr.msra.gmra.mxu1 %v4826_v27  ;;  %v739_v27 = vld [vmem:[%s7125_s1 + $0x458] sm:$0xff]  ;;  %v732_v2 = vld [vmem:[%s7125_s1 + $0x420] sm:$0xff] }
  0xe8   : > { %1270 = vmatprep.mubr.f32.mxu0 %v4861_v40  ;;  %1495 = vmatprep.mubr.f32.mxu1 %v4879_v46  ;;  %v738_v40 = vld [vmem:[%s7125_s1 + $0x450] sm:$0xff] }
  0xe9   : > { %1271 = vmatmul.mubr.f32.gmra.mxu0 %v4834_v29  ;;  %4057 = vmatprep.subr.mxu0 %v742_v62 }
  0xea   : > { %1275 = vmatprep.mubr.f32.mxu0 %v4889_v50  ;;  %4058 = vmatpush3.msra.mxu0 %v742_v62  ;;  %v728_v62 = vld [vmem:[%s7125_s1 + $0x400] sm:$0xff] }
  0xeb   : > { %1496 = vmatmul.mubr.f32.gmra.mxu1 %v4272_v56  ;;  %4059 = vmatprep.subr.mxu0 %v741_v33 }
  0xec   : > { %1500 = vmatprep.mubr.f32.mxu1 %v4900_v54  ;;  %4060 = vmatpush3.msra.mxu0 %v741_v33 }
  0xed   : > { %1276 = vmatmul.mubr.f32.gmra.mxu0 %v4853_v37  ;;  %4061 = vmatprep.subr.mxu0 %v740_v12 }
  0xee   : > { %1280 = vmatprep.mubr.f32.mxu0 %v4908_v57  ;;  %4062 = vmatpush3.msra.mxu0 %v740_v12  ;;  %v7327_v12 = vld [vmem:[#allocation34_spill] sm:$0xff] }
  0xef   : > { %1501 = vmatmul.mubr.f32.gmra.mxu1 %v4870_v44  ;;  %4063 = vmatprep.subr.mxu0 %v739_v27  ;;  %v735_v44 = vld [vmem:[%s7125_s1 + $0x438] sm:$0xff] }
  0xf0   : > { %1505 = vmatprep.mubr.f32.mxu1 %v4926_v63  ;;  %4064 = vmatpush3.msra.mxu0 %v739_v27 }
  0xf1   : > { %1281 = vmatmul.mubr.f32.gmra.mxu0 %v4879_v46  ;;  %4065 = vmatprep.subr.mxu0 %v738_v40 }
  0xf2   : > { %1285 = vmatprep.mubr.f32.mxu0 %v4936_v4  ;;  %4066 = vmatpush3.msra.mxu0 %v738_v40  ;;  %v7328_v40 = vld [vmem:[#allocation30_spill] sm:$0xff] }
  0xf3   : > { %1506 = vmatmul.mubr.f32.gmra.mxu1 %v4866_v43  ;;  %4067 = vmatprep.subr.mxu0 %v737_v48  ;;  %v733_v43 = vld [vmem:[%s7125_s1 + $0x428] sm:$0xff] }
  0xf4   : > { %1510 = vmatprep.mubr.f32.mxu1 %v4947_v8  ;;  %4068 = vmatpush3.msra.mxu0 %v737_v48 }
  0xf5   : > { %1286 = vmatmul.mubr.f32.gmra.mxu0 %v4900_v54  ;;  %4069 = vmatprep.subr.mxu0 %v736_v0  ;;  %v5740_v54 = vld [vmem:[#allocation2] sm:$0xff] }
  0xf6   : > { %1290 = vmatprep.mubr.f32.mxu0 %v4955_v11  ;;  %4070 = vmatpush3.msra.mxu0 %v736_v0  ;;  %v7329_v0 = vld [vmem:[#allocation37_spill] sm:$0xff] }
  0xf7   : > { %1511 = vmatmul.mubr.f32.gmra.mxu1 %v4917_v61  ;;  %4071 = vmatprep.subr.mxu0 %v735_v44  ;;  %v731_v61 = vld [vmem:[%s7125_s1 + $0x418] sm:$0xff] }
  0xf8   : > { %1515 = vmatprep.mubr.f32.mxu1 %v4973_v17  ;;  %4072 = vmatpush3.msra.mxu0 %v735_v44 }
  0xf9   : > { %1291 = vmatmul.mubr.f32.gmra.mxu0 %v4926_v63  ;;  %4073 = vmatprep.subr.mxu0 %v734_v45 }
  0xfa   : > { %1295 = vmatprep.mubr.f32.mxu0 %v4983_v22  ;;  %4074 = vmatpush3.msra.mxu0 %v734_v45 }
  0xfb   : > { %1516 = vmatmul.mubr.f32.gmra.mxu1 %v4913_v60  ;;  %4075 = vmatprep.subr.mxu0 %v733_v43  ;;  %v729_v60 = vld [vmem:[%s7125_s1 + $0x408] sm:$0xff] }
  0xfc   : > { %1520 = vmatprep.mubr.f32.mxu1 %v4994_v26  ;;  %4076 = vmatpush3.msra.mxu0 %v733_v43 }
  0xfd   : > { %1296 = vmatmul.mubr.f32.gmra.mxu0 %v4947_v8  ;;  %4077 = vmatprep.subr.mxu0 %v732_v2 }
  0xfe   : > { %1300 = vmatprep.mubr.f32.mxu0 %v5002_v31  ;;  %4078 = vmatpush3.msra.mxu0 %v732_v2  ;;  %v7330_v2 = vld [vmem:[#allocation38_spill] sm:$0xff] }
  0xff   : > { %1521 = vmatmul.mubr.f32.gmra.mxu1 %v4964_v15  ;;  %4079 = vmatprep.subr.mxu0 %v731_v61  ;;  %v7322_v15 = vld [vmem:[#allocation28_spill] sm:$0xff] }
 0x100   : > { %1525 = vmatprep.mubr.f32.mxu1 %v5020_v39  ;;  %4080 = vmatpush3.msra.mxu0 %v731_v61 }
 0x101   : > { %1301 = vmatmul.mubr.f32.gmra.mxu0 %v4973_v17  ;;  %4081 = vmatprep.subr.mxu0 %v730_v49 }
 0x102   : > { %1305 = vmatprep.mubr.f32.mxu0 %v5030_v47  ;;  %4082 = vmatpush3.msra.mxu0 %v730_v49 }
 0x103   : > { %1526 = vmatmul.mubr.f32.gmra.mxu1 %v4960_v14  ;;  %4083 = vmatprep.subr.mxu0 %v729_v60  ;;  %v7321_v14 = vld [vmem:[#allocation27_spill] sm:$0xff] }
 0x104   : > { %1530 = vmatprep.mubr.f32.mxu1 %v5041_v52  ;;  %4084 = vmatpush3.msra.mxu0 %v729_v60  ;;  %v7331_v60 = vld [vmem:[#allocation29_spill] sm:$0xff] }
 0x105   : > { %1306 = vmatmul.mubr.f32.gmra.mxu0 %v4994_v26  ;;  %4085 = vmatprep.subr.mxu0 %v728_v62 }
 0x106   : > { %1310 = vmatprep.mubr.f32.mxu0 %v5046_v55  ;;  %4086 = vmatpush3.msra.mxu0 %v728_v62 }
 0x107   : > { %1531 = vmatmul.mubr.f32.gmra.mxu1 %v5011_v36  ;;  %2570 = vmatprep.subr.mxu1 %v5154_v6  ;;  %v7324_v36 = vld [vmem:[#allocation31_spill] sm:$0xff] }
 0x108   : > { %1535 = vmatprep.mubr.f32.mxu1 %v5068_v3  ;;  %2795 = vmatprep.subr.mxu0 %v5154_v6 }
 0x109   : > { %1311 = vmatmul.mubr.f32.gmra.mxu0 %v5020_v39  ;;  %v7350_v39 = vld [vmem:[#allocation53_spill] sm:$0xff] }
 0x10a   : > { %1315 = vmatprep.mubr.f32.mxu0 %v5077_v9 }
 0x10b   : > { %1536 = vmatmul.mubr.f32.gmra.mxu1 %v5007_v35  ;;  %v7323_v35 = vld [vmem:[#allocation25_spill] sm:$0xff] }
 0x10c   : > { %1540 = vmatprep.mubr.f32.mxu1 %v5088_v16 }
 0x10d   : > { %1316 = vmatmul.mubr.f32.gmra.mxu0 %v5041_v52  ;;  %v7345_v52 = vld [vmem:[#allocation47_spill] sm:$0xff] }
 0x10e   : > { %1320 = vmatprep.mubr.f32.mxu0 %v5096_v20 }
 0x10f   : > { %1541 = vmatmul.mubr.f32.gmra.mxu1 %v5058_v1  ;;  %v7326_v1 = vld [vmem:[#allocation24_spill] sm:$0xff] }
 0x110   : > { %1545 = vmatprep.mubr.f32.mxu1 %v5114_v32 }
 0x111   : > { %1321 = vmatmul.mubr.f32.gmra.mxu0 %v5068_v3 }
 0x112   : > { %1325 = vmatprep.mubr.f32.mxu0 %v5121_v41 }
 0x113   : > { %1546 = vmatmul.mubr.f32.gmra.mxu1 %v5051_v59  ;;  %v7325_v59 = vld [vmem:[#allocation32_spill] sm:$0xff] }
 0x114   : > { %1550 = vmatprep.mubr.f32.mxu1 %v5136_v51 }
 0x115   : > { %1326 = vmatmul.mubr.f32.gmra.mxu0 %v5088_v16 }
 0x116   : > { %1330 = vmatprep.mubr.f32.mxu0 %v5143_v58 }
 0x117   : > { %1551 = vmatmul.mubr.f32.gmra.mxu1 %v5106_v28 }
 0x118   : > { %1555 = vmatprep.mubr.f32.mxu1 %v5163_v10 }
 0x119   : > { %1331 = vmatmul.mubr.f32.gmra.mxu0 %v5114_v32  ;;  %v7343_v32 = vld [vmem:[#allocation41_spill] sm:$0xff] }
 0x11a   : > { %1335 = vmatprep.mubr.f32.mxu0 %v5173_v19 }
 0x11b   : > { %1556 = vmatmul.mubr.f32.gmra.mxu1 %v5101_v25  ;;  %v5646_v25 = vld [vmem:[%s7126_s2] ss:$0 sm:$0xff] }
 0x11c   : > { %1560 = vmatprep.mubr.f32.mxu1 %v7321_v14 }
 0x11d   : > { %1336 = vmatmul.mubr.f32.gmra.mxu0 %v5136_v51 }
 0x11e   : > { %1340 = vmatprep.mubr.f32.mxu0 %v7322_v15 }
 0x11f   : > { %1561 = vmatmul.mubr.f32.gmra.mxu1 %v7323_v35  ;;  %v7332_v35 = vld [vmem:[#allocation39_spill] sm:$0xff] }
 0x120   : > { %1565 = vmatprep.mubr.f32.mxu1 %v7324_v36 }
 0x121   : > { %1341 = vmatmul.mubr.f32.gmra.mxu0 %v5163_v10  ;;  %v7340_v10 = vld [vmem:[#allocation42_spill] sm:$0xff] }
 0x122   : > { %1345 = vmatprep.mubr.f32.mxu0 %v7325_v59 }
 0x123   : > { %1566 = vmatmul.mubr.f32.gmra.mxu1 %v7326_v1 }
 0x124   : > { %1570 = vmatprep.mubr.f32.mxu1 %v5231_v38 }
 0x125   : > { %v817_v28 = vpop.f32.mrf.mxu0  ;;  %1346 = vmatmul.mubr.f32.gmra.mxu0 %v7321_v14 }
 0x126   : > { %v818_v33 = vadd.f32 %v5646_v25, %v817_v28  ;;  %1350 = vmatprep.mubr.f32.mxu0 %v7327_v12 }
 0x127   : > { %v819_v56 = vpop.f32.mrf.mxu0  ;;  %v1042_v27 = vpop.f32.mrf.mxu1  ;;  %1571 = vmatmul.mubr.f32.gmra.mxu1 %v7328_v40 }
 0x128   : > { %v5653_v48 = vadd.f32 %v1042_v27, %v818_v33  ;;  %1575 = vmatprep.mubr.f32.mxu1 %v7329_v0  ;;  %v7333_v56 = vld [vmem:[#allocation40_spill] sm:$0xff] }
 0x129   : > { %v822_v44 = vpop.f32.mrf.mxu0  ;;  %v1044_v45 = vpop.f32.mrf.mxu1  ;;  %1351 = vmatmul.mubr.f32.gmra.mxu0 %v7324_v36  ;;  %v7337_v36 = vld [vmem:[#allocation35_spill] sm:$0xff] }
 0x12a   : > { %v823_v43 = vadd.f32 %v5646_v25, %v822_v44  ;;  %1355 = vmatprep.mubr.f32.mxu0 %v7330_v2  ;;  %v7334_v44 = vld [vmem:[#allocation36_spill] sm:$0xff] }
 0x12b   : > { %v824_v61 = vpop.f32.mrf.mxu0  ;;  %v1047_v49 = vpop.f32.mrf.mxu1  ;;  %1576 = vmatmul.mubr.f32.gmra.mxu1 %v7331_v60 }
 0x12c   : > { %v5660_v62 = vadd.f32 %v1047_v49, %v823_v43  ;;  %1580 = vmatprep.mubr.f32.mxu1 %v7332_v35  ;;  %v7335_v61 = vld [vmem:[#allocation43_spill] sm:$0xff] }
 0x12d   : > { %v827_v1 = vpop.f32.mrf.mxu0  ;;  %v1049_v28 = vpop.f32.mrf.mxu1  ;;  %1356 = vmatmul.mubr.f32.gmra.mxu0 %v5231_v38  ;;  %v2434_v38 = vld [vmem:[#allocation3 + $0x78] sm:$0xff] }
 0x12e   : > { %v828_v33 = vadd.f32 %v5646_v25, %v827_v1  ;;  %1360 = vmatprep.mubr.f32.mxu0 %v7333_v56  ;;  %v7336_v28 = vld [vmem:[#allocation44_spill] sm:$0xff]  ;;  %2571 = vmatpush1.msra.mxu1 %v2434_v38 }
 0x12f   : > { %v829_v27 = vpop.f32.mrf.mxu0  ;;  %v1052_v40 = vpop.f32.mrf.mxu1  ;;  %1581 = vmatmul.mubr.f32.gmra.mxu1 %v7334_v44  ;;  %v7338_v44 = vld [vmem:[#allocation45_spill] sm:$0xff]  ;;  %2572 = vmatprep.subr.mxu1 %v5154_v6 }
 0x130   : > { %v5667_v45 = vadd.f32 %v1052_v40, %v828_v33  ;;  %1585 = vmatprep.mubr.f32.mxu1 %v7335_v61 }
 0x131   : > { %v832_v43 = vpop.f32.mrf.mxu0  ;;  %v1054_v49 = vpop.f32.mrf.mxu1  ;;  %1361 = vmatmul.mubr.f32.gmra.mxu0 %v7329_v0  ;;  %v2433_v0 = vld [vmem:[#allocation3 + $0x70] sm:$0xff] }
 0x132   : > { %v833_v60 = vadd.f32 %v5646_v25, %v832_v43  ;;  %1365 = vmatprep.mubr.f32.mxu0 %v7336_v28  ;;  %v7339_v49 = vld [vmem:[#allocation46_spill] sm:$0xff]  ;;  %2573 = vmatpush1.msra.mxu1 %v2433_v0 }
 0x133   : > { %v834_v1 = vpop.f32.mrf.mxu0  ;;  %v1057_v14 = vpop.f32.mrf.mxu1  ;;  %1586 = vmatmul.mubr.f32.gmra.mxu1 %v7337_v36  ;;  %v7341_v36 = vld [vmem:[#allocation48_spill] sm:$0xff]  ;;  %2574 = vmatprep.subr.mxu1 %v5154_v6 }
 0x134   : > { %v5674_v27 = vadd.f32 %v1057_v14, %v833_v60  ;;  %1590 = vmatprep.mubr.f32.mxu1 %v7338_v44 }
 0x135   : > { %v837_v33 = vpop.f32.mrf.mxu0  ;;  %v1059_v40 = vpop.f32.mrf.mxu1  ;;  %1366 = vmatmul.mubr.f32.gmra.mxu0 %v7332_v35  ;;  %v2432_v35 = vld [vmem:[#allocation3 + $0x68] sm:$0xff] }
 0x136   : > { %v838_v43 = vadd.f32 %v5646_v25, %v837_v33  ;;  %1370 = vmatprep.mubr.f32.mxu0 %v7339_v49  ;;  %v7342_v40 = vld [vmem:[#allocation49_spill] sm:$0xff]  ;;  %2575 = vmatpush1.msra.mxu1 %v2432_v35 }
 0x137   : > { %v839_v1 = vpop.f32.mrf.mxu0  ;;  %v1062_v51 = vpop.f32.mrf.mxu1  ;;  %1591 = vmatmul.mubr.f32.gmra.mxu1 %v7340_v10  ;;  %2576 = vmatprep.subr.mxu1 %v5154_v6 }
 0x138   : > { %v5682_v14 = vadd.f32 %v1062_v51, %v838_v43  ;;  %1595 = vmatprep.mubr.f32.mxu1 %v7341_v36 }
 0x139   : > { %v842_v38 = vpop.f32.mrf.mxu0  ;;  %v1064_v60 = vpop.f32.mrf.mxu1  ;;  %1371 = vmatmul.mubr.f32.gmra.mxu0 %v7335_v61 }
 0x13a   : > { %v843_v33 = vadd.f32 %v5646_v25, %v842_v38  ;;  %1375 = vmatprep.mubr.f32.mxu0 %v7342_v40  ;;  %v7344_v38 = vld [vmem:[#allocation51_spill] sm:$0xff]  ;;  %v2431_v60 = vld [vmem:[#allocation3 + $0x60] sm:$0xff] }
 0x13b   : > { %v844_v1 = vpop.f32.mrf.mxu0  ;;  %v1067_v16 = vpop.f32.mrf.mxu1  ;;  %1596 = vmatmul.mubr.f32.gmra.mxu1 %v7343_v32  ;;  %v7346_v32 = vld [vmem:[#allocation54_spill] sm:$0xff] }
 0x13c   : > { %v5690_v51 = vadd.f32 %v1067_v16, %v843_v33  ;;  %1600 = vmatprep.mubr.f32.mxu1 %v5372_v42  ;;  %2577 = vmatpush1.msra.mxu1 %v2431_v60 }
 0x13d   : > { %v847_v10 = vpop.f32.mrf.mxu0  ;;  %v1069_v0 = vpop.f32.mrf.mxu1  ;;  %1376 = vmatmul.mubr.f32.gmra.mxu0 %v7338_v44  ;;  %2578 = vmatprep.subr.mxu1 %v5154_v6  ;;  %v2430_v44 = vld [vmem:[#allocation3 + $0x58] sm:$0xff] }
 0x13e   : > { %v848_v43 = vadd.f32 %v5646_v25, %v847_v10  ;;  %1380 = vmatprep.mubr.f32.mxu0 %v7344_v38  ;;  %v7347_v0 = vld [vmem:[#allocation55_spill] sm:$0xff]  ;;  %2579 = vmatpush1.msra.mxu1 %v2430_v44 }
 0x13f   : > { %v849_v1 = vpop.f32.mrf.mxu0  ;;  %v1072_v61 = vpop.f32.mrf.mxu1  ;;  %1601 = vmatmul.mubr.f32.gmra.mxu1 %v7345_v52  ;;  %2580 = vmatprep.subr.mxu1 %v5154_v6 }
 0x140   : > { %v5698_v16 = vadd.f32 %v1072_v61, %v848_v43  ;;  %1605 = vmatprep.mubr.f32.mxu1 %v7346_v32  ;;  %v7348_v61 = vld [vmem:[#allocation56_spill] sm:$0xff] }
 0x141   : > { %v852_v35 = vpop.f32.mrf.mxu0  ;;  %v1074_v33 = vpop.f32.mrf.mxu1  ;;  %1381 = vmatmul.mubr.f32.gmra.mxu0 %v7341_v36  ;;  %v2429_v36 = vld [vmem:[#allocation3 + $0x50] sm:$0xff] }
 0x142   : > { %v853_v10 = vadd.f32 %v5646_v25, %v852_v35  ;;  %1385 = vmatprep.mubr.f32.mxu0 %v7347_v0  ;;  %v7349_v33 = vld [vmem:[#allocation57_spill] sm:$0xff]  ;;  %2581 = vmatpush1.msra.mxu1 %v2429_v36 }
 0x143   : > { %v854_v1 = vpop.f32.mrf.mxu0  ;;  %v1077_v3 = vpop.f32.mrf.mxu1  ;;  %1606 = vmatmul.mubr.f32.gmra.mxu1 %v5335_v13  ;;  %v7351_v13 = vld [vmem:[#allocation58_spill] sm:$0xff]  ;;  %2582 = vmatprep.subr.mxu1 %v5154_v6 }
 0x144   : > { %v5706_v52 = vadd.f32 %v1077_v3, %v853_v10  ;;  %1610 = vmatprep.mubr.f32.mxu1 %v7348_v61 }
 0x145   : > { %v857_v43 = vpop.f32.mrf.mxu0  ;;  %v1079_v60 = vpop.f32.mrf.mxu1  ;;  %1386 = vmatmul.mubr.f32.gmra.mxu0 %v5372_v42 }
 0x146   : > { %v858_v35 = vadd.f32 %v5646_v25, %v857_v43  ;;  %1390 = vmatprep.mubr.f32.mxu0 %v7349_v33  ;;  %v7352_v60 = vld [vmem:[#allocation59_spill] sm:$0xff] }
 0x147   : > { %v859_v1 = vpop.f32.mrf.mxu0  ;;  %v1082_v26 = vpop.f32.mrf.mxu1  ;;  %1611 = vmatmul.mubr.f32.gmra.mxu1 %v7350_v39  ;;  %v7353_v39 = vld [vmem:[#allocation52_spill] sm:$0xff] }
 0x148   : > { %v5714_v3 = vadd.f32 %v1082_v26, %v858_v35  ;;  %1615 = vmatprep.mubr.f32.mxu1 %v7351_v13  ;;  %v2428_v1 = vld [vmem:[#allocation3 + $0x48] sm:$0xff] }
 0x149   : > { %v862_v44 = vpop.f32.mrf.mxu0  ;;  %v1084_v10 = vpop.f32.mrf.mxu1  ;;  %1391 = vmatmul.mubr.f32.gmra.mxu0 %v7346_v32  ;;  %2583 = vmatpush1.msra.mxu1 %v2428_v1  ;;  %v7354_v32 = vld [vmem:[#allocation61_spill] sm:$0xff] }
 0x14a   : > { %v863_v43 = vadd.f32 %v5646_v25, %v862_v44  ;;  %1395 = vmatprep.mubr.f32.mxu0 %v7352_v60  ;;  %v569_v10 = vrot.slane %v5481_v23, 1  ;;  %v570_v44 = vrot.slane %v5502_v30, 1  ;;  %2584 = vmatprep.subr.mxu1 %v5154_v6 }
 0x14b   : > { %v864_v42 = vpop.f32.mrf.mxu0  ;;  %v1087_v8 = vpop.f32.mrf.mxu1  ;;  %1616 = vmatmul.mubr.f32.gmra.mxu1 %v7353_v39  ;;  %v288_v39 = vld [vmem:[%s4739_s9 + $0x190] sm:$0x3] }
 0x14c   : > { %v5722_v26 = vadd.f32 %v1087_v8, %v863_v43  ;;  %1620 = vmatprep.mubr.f32.mxu1 %v5467_v7  ;;  %v2427_v8 = vld [vmem:[#allocation3 + $0x40] sm:$0xff]  ;;  %v5738_v6 = vsel %vm340_vm0, %v569_v10, %v570_v44  ;;  %v576_v10 = vrot.slane %v5481_v23, 2 }
 0x14d   : > { %v867_v36 = vpop.f32.mrf.mxu0  ;;  %v1089_v35 = vpop.f32.mrf.mxu1  ;;  %1396 = vmatmul.mubr.f32.gmra.mxu0 %v7348_v61  ;;  %2585 = vmatpush1.msra.mxu1 %v2427_v8  ;;  %7355 = vst [vmem:[#allocation28_spill] sm:$0xff] %v5738_v6  ;;  %v2426_v8 = vld [vmem:[#allocation3 + $0x38] sm:$0xff] }
 0x14e   : > { %v868_v42 = vadd.f32 %v5646_v25, %v867_v36  ;;  %1400 = vmatprep.mubr.f32.mxu0 %v7354_v32  ;;  %v572_v36 = vrot.slane %v288_v39, 1  ;;  %2586 = vmatprep.subr.mxu1 %v5740_v54 }
 0x14f   : > { %v869_v43 = vpop.f32.mrf.mxu0  ;;  %v1092_v1 = vpop.f32.mrf.mxu1  ;;  %1621 = vmatmul.mubr.f32.gmra.mxu1 %v5436_v18  ;;  %v5746_v18 = vld [vmem:[%s4739_s9 + $0x198] sm:$0xff] }
 0x150   : > { %v5733_v35 = vadd.f32 %v1092_v1, %v868_v42  ;;  %1625 = vmatprep.mubr.f32.mxu1 %v5490_v34  ;;  %v5749_v42 = vld [vmem:[%s4739_s9 + $0x1a0] sm:$0xff]  ;;  %2587 = vmatpush1.msra.mxu1 %v2426_v8  ;;  %v5759_v46 = vsel %vm340_vm0, %v570_v44, %v572_v36  ;;  %v579_v36 = vrot.slane %v288_v39, 2  ;;  %v2424_v39 = vld [vmem:[#allocation3 + $0x28] sm:$0xff] }
 0x151   : > { %v872_v61 = vpop.f32.mrf.mxu0  ;;  %v1094_v17 = vpop.f32.mrf.mxu1  ;;  %1401 = vmatmul.mubr.f32.gmra.mxu0 %v7351_v13  ;;  %v577_v13 = vrot.slane %v5502_v30, 2  ;;  %7357 = vst [vmem:[#allocation32_spill] sm:$0xff] %v5759_v46  ;;  %2588 = vmatprep.subr.mxu1 %v5740_v54  ;;  %v2425_v8 = vld [vmem:[#allocation3 + $0x30] sm:$0xff] }
 0x152   : > { %v873_v43 = vadd.f32 %v5646_v25, %v872_v61  ;;  %1405 = vmatprep.mubr.f32.mxu0 %v5497_v5  ;;  %2589 = vmatpush1.msra.mxu1 %v2425_v8 }
 0x153   : > { %v874_v17 = vpop.f32.mrf.mxu0  ;;  %v1097_v1 = vpop.f32.mrf.mxu1  ;;  %1626 = vmatmul.mubr.f32.gmra.mxu1 %v5432_v24  ;;  %v587_v24 = vrot.slane %v5749_v42, 1  ;;  %v5771_v44 = vsel %vm453_vm1, %v576_v10, %v577_v13  ;;  %2590 = vmatprep.subr.mxu1 %v5740_v54  ;;  %v5784_v8 = vsel %vm453_vm1, %v577_v13, %v579_v36 }
 0x154   : > { %v5754_v63 = vadd.f32 %v1097_v1, %v873_v43  ;;  %1630 = vmatprep.mubr.f32.mxu1 %v5738_v6  ;;  %v586_v17 = vrot.slane %v5746_v18, 1  ;;  %v5767_v43 = vld [vmem:[%s4739_s9 + $0x1a8] sm:$0x3]  ;;  %2591 = vmatpush1.msra.mxu1 %v2424_v39 }
 0x155   : > { %v877_v61 = vpop.f32.mrf.mxu0  ;;  %v1099_v37 = vpop.f32.mrf.mxu1  ;;  %1406 = vmatmul.mubr.f32.gmra.mxu0 %v5467_v7  ;;  %2592 = vmatprep.subr.mxu1 %v5740_v54 }
 0x156   : > { %7356 = vst [vmem:[#allocation25_spill] sm:$0xff] %v5754_v63  ;;  %v878_v21 = vadd.f32 %v5646_v25, %v877_v61  ;;  %1410 = vmatprep.mubr.f32.mxu0 %v5516_v53  ;;  %v588_v63 = vsel %vm340_vm0, %v586_v17, %v587_v24 }
 0x157   : > { %v879_v1 = vpop.f32.mrf.mxu0  ;;  %v1102_v37 = vpop.f32.mrf.mxu1  ;;  %1631 = vmatmul.mubr.f32.gmra.mxu1 %v5481_v23 }
 0x158   : > { %v5773_v7 = vadd.f32 %v1102_v37, %v878_v21  ;;  %1635 = vmatprep.mubr.f32.mxu1 %v5759_v46  ;;  %v589_v1 = vrot.slane %v5767_v43, 1 }
 0x159   : > { %v882_v29 = vpop.f32.mrf.mxu0  ;;  %v1104_v61 = vpop.f32.mrf.mxu1  ;;  %1411 = vmatmul.mubr.f32.gmra.mxu0 %v5490_v34 }
 0x15a   : > { %v883_v23 = vadd.f32 %v5646_v25, %v882_v29  ;;  %1415 = vmatprep.mubr.f32.mxu0 %v5771_v44  ;;  %v590_v29 = vsel %vm340_vm0, %v587_v24, %v589_v1  ;;  %v2422_v1 = vld [vmem:[#allocation3 + $0x18] sm:$0xff] }
 0x15b   : > { %v884_v21 = vpop.f32.mrf.mxu0  ;;  %v1107_v10 = vpop.f32.mrf.mxu1  ;;  %1636 = vmatmul.mubr.f32.gmra.mxu1 %v5502_v30  ;;  %v2423_v30 = vld [vmem:[#allocation3 + $0x20] sm:$0xff] }
 0x15c   : > { %v5786_v37 = vadd.f32 %v1107_v10, %v883_v23  ;;  %1640 = vmatprep.mubr.f32.mxu1 %v588_v63  ;;  %2593 = vmatpush1.msra.mxu1 %v2423_v30 }
 0x15d   : > { %v887_v17 = vpop.f32.mrf.mxu0  ;;  %v1109_v61 = vpop.f32.mrf.mxu1  ;;  %1416 = vmatmul.mubr.f32.gmra.mxu0 %v5738_v6  ;;  %2594 = vmatprep.subr.mxu1 %v5740_v54 }
 0x15e   : > { %v888_v21 = vadd.f32 %v5646_v25, %v887_v17  ;;  %1420 = vmatprep.mubr.f32.mxu0 %v5784_v8  ;;  %2595 = vmatpush1.msra.mxu1 %v2422_v1 }
 0x15f   : > { %v889_v34 = vpop.f32.mrf.mxu0  ;;  %v1112_v13 = vpop.f32.mrf.mxu1  ;;  %1641 = vmatmul.mubr.f32.gmra.mxu1 %v5746_v18  ;;  %2596 = vmatprep.subr.mxu1 %v5740_v54 }
 0x160   : > { %v5794_v36 = vadd.f32 %v1112_v13, %v888_v21  ;;  %1645 = vmatprep.mubr.f32.mxu1 %v590_v29  ;;  %v2421_v21 = vld [vmem:[#allocation3 + $0x10] sm:$0xff] }
 0x161   : > { %v892_v63 = vpop.f32.mrf.mxu0  ;;  %v1114_v23 = vpop.f32.mrf.mxu1  ;;  %1421 = vmatmul.mubr.f32.gmra.mxu0 %v5759_v46  ;;  %2597 = vmatpush1.msra.mxu1 %v2421_v21 }
 0x162   : > { %v893_v24 = vadd.f32 %v5646_v25, %v892_v63  ;;  %4087 = vmatprep.mubr.f32.mxu0 %v4889_v50  ;;  %2598 = vmatprep.subr.mxu1 %v5740_v54 }
 0x163   : > { %v894_v39 = vpop.f32.mrf.mxu0  ;;  %v1117_v34 = vpop.f32.mrf.mxu1  ;;  %1646 = vmatmul.mubr.f32.gmra.mxu1 %v5749_v42 }
 0x164   : > { %v5801_v10 = vadd.f32 %v1117_v34, %v893_v24  ;;  %v2420_v24 = vld [vmem:[#allocation3 + $0x8] sm:$0xff] }
 0x165   : > { %v897_v17 = vpop.f32.mrf.mxu0  ;;  %v1119_v61 = vpop.f32.mrf.mxu1  ;;  %4088 = vmatmul.mubr.f32.vlgmr.msra.gmra.mxu0 %v4908_v57  ;;  %2599 = vmatpush1.msra.mxu1 %v2420_v24 }
 0x166   : > { %v898_v29 = vadd.f32 %v5646_v25, %v897_v17  ;;  %4090 = vmatprep.mubr.f32.mxu0 %v4936_v4  ;;  %2600 = vmatprep.subr.mxu1 %v5740_v54 }
 0x167   : > { %v899_v50 = vpop.f32.mrf.mxu0  ;;  %v1122_v30 = vpop.f32.mrf.mxu1 }
 0x168   : > { %v5807_v13 = vadd.f32 %v1122_v30, %v898_v29 }
 0x169   : > { %v902_v63 = vpop.f32.mrf.mxu0  ;;  %v1124_v23 = vpop.f32.mrf.mxu1  ;;  %4091 = vmatmul.mubr.f32.gmra.mxu0 %v4955_v11  ;;  %v2419_v11 = vld [vmem:[#allocation3] sm:$0xff] }
 0x16a   : > { %v903_v57 = vadd.f32 %v5646_v25, %v902_v63  ;;  %4093 = vmatprep.mubr.f32.mxu0 %v4983_v22  ;;  %2601 = vmatpush1.msra.mxu1 %v2419_v11  ;;  %v2465_v11 = vld [vmem:[#allocation3 + $0x170] sm:$0xff] }
 0x16b   : > { %v904_v1 = vpop.f32.mrf.mxu0  ;;  %v1127_v39 = vpop.f32.mrf.mxu1  ;;  %2602 = vmatprep.subr.mxu1 %v5740_v54 }
 0x16c   : > { %v5813_v4 = vadd.f32 %v1127_v39, %v903_v57 }
 0x16d   : > { %v907_v34 = vpop.f32.mrf.mxu0  ;;  %v1129_v17 = vpop.f32.mrf.mxu1  ;;  %4094 = vmatmul.mubr.f32.gmra.mxu0 %v5002_v31  ;;  %v2450_v31 = vld [vmem:[#allocation3 + $0xf8] sm:$0xff] }
 0x16e   : > { %v908_v61 = vadd.f32 %v5646_v25, %v907_v34  ;;  %4096 = vmatprep.mubr.f32.mxu0 %v5030_v47  ;;  %2603 = vmatpush2.msra.mxu1 %v2450_v31  ;;  %v2466_v34 = vld [vmem:[#allocation3 + $0x178] sm:$0xff] }
 0x16f   : > { %v909_v29 = vpop.f32.mrf.mxu0  ;;  %v1132_v21 = vpop.f32.mrf.mxu1  ;;  %2604 = vmatprep.subr.mxu1 %v5740_v54  ;;  %2796 = vmatpush1.msra.mxu0 %v2466_v34 }
 0x170   : > { %v5819_v22 = vadd.f32 %v1132_v21, %v908_v61  ;;  %2797 = vmatprep.subr.mxu0 %v5740_v54 }
 0x171   : > { %v912_v50 = vpop.f32.mrf.mxu0  ;;  %v1134_v30 = vpop.f32.mrf.mxu1  ;;  %4097 = vmatmul.mubr.f32.gmra.mxu0 %v5046_v55  ;;  %v2449_v55 = vld [vmem:[#allocation3 + $0xf0] sm:$0xff] }
 0x172   : > { %v913_v63 = vadd.f32 %v5646_v25, %v912_v50  ;;  %4099 = vmatprep.mubr.f32.mxu0 %v5077_v9  ;;  %2605 = vmatpush2.msra.mxu1 %v2449_v55  ;;  %v2464_v50 = vld [vmem:[#allocation3 + $0x168] sm:$0xff] }
 0x173   : > { %v914_v23 = vpop.f32.mrf.mxu0  ;;  %v1137_v57 = vpop.f32.mrf.mxu1  ;;  %2606 = vmatprep.subr.mxu1 %v5740_v54  ;;  %2798 = vmatpush1.msra.mxu0 %v2465_v11  ;;  %v2446_v11 = vld [vmem:[#allocation3 + $0xd8] sm:$0xff] }
 0x174   : > { %v5825_v47 = vadd.f32 %v1137_v57, %v913_v63  ;;  %2799 = vmatprep.subr.mxu0 %v5740_v54  ;;  %v2463_v23 = vld [vmem:[#allocation3 + $0x160] sm:$0xff] }
 0x175   : > { %v917_v24 = vpop.f32.mrf.mxu0  ;;  %v1139_v1 = vpop.f32.mrf.mxu1  ;;  %4100 = vmatmul.mubr.f32.gmra.mxu0 %v5096_v20 }
 0x176   : > { %v918_v39 = vadd.f32 %v5646_v25, %v917_v24  ;;  %4102 = vmatprep.mubr.f32.mxu0 %v5121_v41  ;;  %v2448_v41 = vld [vmem:[#allocation3 + $0xe8] sm:$0xff]  ;;  %2800 = vmatpush1.msra.mxu0 %v2464_v50  ;;  %v2447_v24 = vld [vmem:[#allocation3 + $0xe0] sm:$0xff]  ;;  %v2462_v1 = vld [vmem:[#allocation3 + $0x158] sm:$0xff] }
 0x177   : > { %v919_v17 = vpop.f32.mrf.mxu0  ;;  %v1142_v9 = vpop.f32.mrf.mxu1  ;;  %2607 = vmatpush2.msra.mxu1 %v2448_v41  ;;  %2801 = vmatprep.subr.mxu0 %v5740_v54 }
 0x178   : > { %v5831_v61 = vadd.f32 %v1142_v9, %v918_v39  ;;  %2608 = vmatprep.subr.mxu1 %v5740_v54  ;;  %2802 = vmatpush1.msra.mxu0 %v2463_v23  ;;  %v2458_v23 = vld [vmem:[#allocation3 + $0x138] sm:$0xff] }
 0x179   : > { %v922_v29 = vpop.f32.mrf.mxu0  ;;  %v1144_v21 = vpop.f32.mrf.mxu1  ;;  %4103 = vmatmul.mubr.f32.gmra.mxu0 %v5143_v58  ;;  %2609 = vmatpush2.msra.mxu1 %v2447_v24 }
 0x17a   : > { %v923_v20 = vadd.f32 %v5646_v25, %v922_v29  ;;  %4105 = vmatprep.mubr.f32.mxu0 %v5173_v19  ;;  %2803 = vmatprep.subr.mxu0 %v5740_v54  ;;  %v2460_v29 = vld [vmem:[#allocation3 + $0x148] sm:$0xff] }
 0x17b   : > { %v924_v30 = vpop.f32.mrf.mxu0  ;;  %v1147_v63 = vpop.f32.mrf.mxu1  ;;  %2804 = vmatpush1.msra.mxu0 %v2462_v1  ;;  %2610 = vmatprep.subr.mxu1 %v5740_v54 }
 0x17c   : > { %v5839_v31 = vadd.f32 %v1147_v63, %v923_v20  ;;  %2805 = vmatprep.subr.mxu0 %v5740_v54  ;;  %2611 = vmatpush2.msra.mxu1 %v2446_v11  ;;  %v2445_v63 = vld [vmem:[#allocation3 + $0xd0] sm:$0xff] }
 0x17d   : > { %v927_v57 = vpop.f32.mrf.mxu0  ;;  %v1149_v58 = vpop.f32.mrf.mxu1  ;;  %4106 = vmatmul.mubr.f32.gmra.mxu0 %v7322_v15  ;;  %v2461_v15 = vld [vmem:[#allocation3 + $0x150] sm:$0xff]  ;;  %2612 = vmatprep.subr.mxu1 %v5740_v54 }
 0x17e   : > { %v928_v19 = vadd.f32 %v5646_v25, %v927_v57  ;;  %4108 = vmatprep.mubr.f32.mxu0 %v7325_v59  ;;  %2806 = vmatpush1.msra.mxu0 %v2461_v15 }
 0x17f   : > { %v929_v39 = vpop.f32.mrf.mxu0  ;;  %v1152_v55 = vpop.f32.mrf.mxu1  ;;  %2807 = vmatprep.subr.mxu0 %v5740_v54  ;;  %2613 = vmatpush2.msra.mxu1 %v2445_v63  ;;  %v2442_v63 = vld [vmem:[#allocation3 + $0xb8] sm:$0xff] }
 0x180   : > { %v5847_v34 = vadd.f32 %v1152_v55, %v928_v19  ;;  %2808 = vmatpush1.msra.mxu0 %v2460_v29  ;;  %2614 = vmatprep.subr.mxu1 %v5740_v54  ;;  %v2444_v39 = vld [vmem:[#allocation3 + $0xc8] sm:$0xff]  ;;  %v2443_v29 = vld [vmem:[#allocation3 + $0xc0] sm:$0xff] }
 0x181   : > { %v932_v17 = vpop.f32.mrf.mxu0  ;;  %v1154_v9 = vpop.f32.mrf.mxu1  ;;  %4109 = vmatmul.mubr.f32.gmra.mxu0 %v7327_v12  ;;  %v2459_v12 = vld [vmem:[#allocation3 + $0x140] sm:$0xff]  ;;  %2809 = vmatprep.subr.mxu0 %v5740_v54  ;;  %v2456_v55 = vld [vmem:[#allocation3 + $0x128] sm:$0xff] }
 0x182   : > { %v933_v59 = vadd.f32 %v5646_v25, %v932_v17  ;;  %4111 = vmatprep.mubr.f32.mxu0 %v7330_v2  ;;  %2810 = vmatpush1.msra.mxu0 %v2459_v12 }
 0x183   : > { %v934_v21 = vpop.f32.mrf.mxu0  ;;  %v1157_v20 = vpop.f32.mrf.mxu1  ;;  %2811 = vmatprep.subr.mxu0 %v5740_v54  ;;  %2615 = vmatpush2.msra.mxu1 %v2444_v39  ;;  %v2482_v39 = vld [vmem:[#allocation3 + $0x1f8] sm:$0xff] }
 0x184   : > { %v5855_v41 = vadd.f32 %v1157_v20, %v933_v59  ;;  %2812 = vmatpush1.msra.mxu0 %v2458_v23  ;;  %2616 = vmatprep.subr.mxu1 %v5740_v54  ;;  %v2454_v21 = vld [vmem:[#allocation3 + $0x118] sm:$0xff]  ;;  %v2452_v23 = vld [vmem:[#allocation3 + $0x108] sm:$0xff] }
 0x185   : > { %v937_v50 = vpop.f32.mrf.mxu0  ;;  %v1159_v30 = vpop.f32.mrf.mxu1  ;;  %4112 = vmatmul.mubr.f32.gmra.mxu0 %v7333_v56  ;;  %v2457_v56 = vld [vmem:[#allocation3 + $0x130] sm:$0xff]  ;;  %2813 = vmatprep.subr.mxu0 %v5740_v54 }
 0x186   : > { %v938_v2 = vadd.f32 %v5646_v25, %v937_v50  ;;  %4114 = vmatprep.mubr.f32.mxu0 %v7336_v28  ;;  %2814 = vmatpush1.msra.mxu0 %v2457_v56 }
 0x187   : > { %v939_v57 = vpop.f32.mrf.mxu0  ;;  %v1162_v58 = vpop.f32.mrf.mxu1  ;;  %2815 = vmatprep.subr.mxu0 %v5740_v54  ;;  %2617 = vmatpush2.msra.mxu1 %v2443_v29  ;;  %v2480_v29 = vld [vmem:[#allocation3 + $0x1e8] sm:$0xff] }
 0x188   : > { %v5863_v19 = vadd.f32 %v1162_v58, %v938_v2  ;;  %2816 = vmatpush1.msra.mxu0 %v2456_v55  ;;  %2618 = vmatprep.subr.mxu1 %v5740_v54 }
 0x189   : > { %v942_v24 = vpop.f32.mrf.mxu0  ;;  %v1164_v1 = vpop.f32.mrf.mxu1  ;;  %4115 = vmatmul.mubr.f32.gmra.mxu0 %v7339_v49  ;;  %v2455_v49 = vld [vmem:[#allocation3 + $0x120] sm:$0xff]  ;;  %2817 = vmatprep.subr.mxu0 %v5740_v54 }
 0x18a   : > { %v943_v28 = vadd.f32 %v5646_v25, %v942_v24  ;;  %4117 = vmatprep.mubr.f32.mxu0 %v7342_v40  ;;  %2818 = vmatpush1.msra.mxu0 %v2455_v49  ;;  %v594_v49 = vrot.slane %v5749_v42, 2  ;;  %v2440_v42 = vld [vmem:[#allocation3 + $0xa8] sm:$0xff] }
 0x18b   : > { %v944_v15 = vpop.f32.mrf.mxu0  ;;  %v1167_v17 = vpop.f32.mrf.mxu1  ;;  %2819 = vmatprep.subr.mxu0 %v5740_v54  ;;  %2619 = vmatpush2.msra.mxu1 %v2442_v63  ;;  %v2478_v63 = vld [vmem:[#allocation3 + $0x1d8] sm:$0xff] }
 0x18c   : > { %v5871_v9 = vadd.f32 %v1167_v17, %v943_v28  ;;  %2820 = vmatpush1.msra.mxu0 %v2454_v21  ;;  %2620 = vmatprep.subr.mxu1 %v5740_v54  ;;  %v2441_v28 = vld [vmem:[#allocation3 + $0xb0] sm:$0xff]  ;;  %v593_v17 = vrot.slane %v5746_v18, 2  ;;  %v596_v18 = vrot.slane %v5767_v43, 2 }
 0x18d   : > { %v947_v59 = vpop.f32.mrf.mxu0  ;;  %v1169_v11 = vpop.f32.mrf.mxu1  ;;  %4118 = vmatmul.mubr.f32.gmra.mxu0 %v7344_v38  ;;  %v2453_v38 = vld [vmem:[#allocation3 + $0x110] sm:$0xff]  ;;  %2821 = vmatprep.subr.mxu0 %v5740_v54 }
 0x18e   : > { %v948_v40 = vadd.f32 %v5646_v25, %v947_v59  ;;  %4120 = vmatprep.mubr.f32.mxu0 %v7347_v0  ;;  %2822 = vmatpush1.msra.mxu0 %v2453_v38 }
 0x18f   : > { %v949_v20 = vpop.f32.mrf.mxu0  ;;  %v1172_v12 = vpop.f32.mrf.mxu1  ;;  %2823 = vmatprep.subr.mxu0 %v5740_v54  ;;  %2621 = vmatpush2.msra.mxu1 %v2441_v28  ;;  %v2476_v28 = vld [vmem:[#allocation3 + $0x1c8] sm:$0xff] }
 0x190   : > { %v5879_v50 = vadd.f32 %v1172_v12, %v948_v40  ;;  %2824 = vmatpush1.msra.mxu0 %v2452_v23  ;;  %2622 = vmatprep.subr.mxu1 %v5740_v54  ;;  %v595_v12 = vsel %vm453_vm1, %v593_v17, %v594_v49  ;;  %v2475_v17 = vld [vmem:[#allocation3 + $0x1c0] sm:$0xff] }
 0x191   : > { %v952_v30 = vpop.f32.mrf.mxu0  ;;  %v1174_v2 = vpop.f32.mrf.mxu1  ;;  %4121 = vmatmul.mubr.f32.gmra.mxu0 %v7349_v33  ;;  %v2451_v33 = vld [vmem:[#allocation3 + $0x100] sm:$0xff]  ;;  %2825 = vmatprep.subr.mxu0 %v5740_v54 }
 0x192   : > { %v953_v0 = vadd.f32 %v5646_v25, %v952_v30  ;;  %4123 = vmatprep.mubr.f32.mxu0 %v7352_v60  ;;  %2826 = vmatpush1.msra.mxu0 %v2451_v33  ;;  %v597_v2 = vsel %vm453_vm1, %v594_v49, %v596_v18 }
 0x193   : > { %v954_v57 = vpop.f32.mrf.mxu0  ;;  %v1177_v58 = vpop.f32.mrf.mxu1  ;;  %2827 = vmatprep.subr.mxu0 %v5740_v54  ;;  %2623 = vmatpush2.msra.mxu1 %v2440_v42  ;;  %v2473_v42 = vld [vmem:[#allocation3 + $0x1b0] sm:$0xff] }
 0x194   : > { %v5887_v56 = vadd.f32 %v1177_v58, %v953_v0  ;;  %2828 = vmatpush2.msra.mxu0 %v2482_v39  ;;  %2624 = vmatprep.subr.mxu1 %v5740_v54  ;;  %v2439_v0 = vld [vmem:[#allocation3 + $0xa0] sm:$0xff] }
 0x195   : > { %v957_v24 = vpop.f32.mrf.mxu0  ;;  %v1179_v1 = vpop.f32.mrf.mxu1  ;;  %4124 = vmatmul.mubr.f32.gmra.mxu0 %v7354_v32  ;;  %v2481_v32 = vld [vmem:[#allocation3 + $0x1f0] sm:$0xff]  ;;  %2829 = vmatprep.subr.mxu0 %v5740_v54 }
 0x196   : > { %v958_v60 = vadd.f32 %v5646_v25, %v957_v24  ;;  %4126 = vmatprep.mubr.f32.mxu0 %v5497_v5  ;;  %2830 = vmatpush2.msra.mxu0 %v2481_v32 }
 0x197   : > { %v959_v55 = vpop.f32.mrf.mxu0  ;;  %v1182_v15 = vpop.f32.mrf.mxu1  ;;  %2831 = vmatprep.subr.mxu0 %v5740_v54  ;;  %2625 = vmatpush2.msra.mxu1 %v2439_v0  ;;  %v2471_v0 = vld [vmem:[#allocation3 + $0x1a0] sm:$0xff] }
 0x198   : > { %v5897_v59 = vadd.f32 %v1182_v15, %v958_v60  ;;  %2832 = vmatpush2.msra.mxu0 %v2480_v29  ;;  %2626 = vmatprep.subr.mxu1 %v5740_v54  ;;  %v2438_v60 = vld [vmem:[#allocation3 + $0x98] sm:$0xff] }
 0x199   : > { %v962_v11 = vpop.f32.mrf.mxu0  ;;  %v1184_v5 = vpop.f32.mrf.mxu1  ;;  %4127 = vmatmul.mubr.f32.gmra.mxu0 %v5516_v53  ;;  %v2479_v53 = vld [vmem:[#allocation3 + $0x1e0] sm:$0xff]  ;;  %2833 = vmatprep.subr.mxu0 %v5740_v54 }
 0x19a   : > { %v963_v40 = vadd.f32 %v5646_v25, %v962_v11  ;;  %4129 = vmatprep.mubr.f32.mxu0 %v5771_v44  ;;  %2834 = vmatpush2.msra.mxu0 %v2479_v53  ;;  %v2474_v11 = vld [vmem:[#allocation3 + $0x1b8] sm:$0xff] }
 0x19b   : > { %v964_v21 = vpop.f32.mrf.mxu0  ;;  %v1187_v20 = vpop.f32.mrf.mxu1  ;;  %2835 = vmatprep.subr.mxu0 %v5740_v54  ;;  %2627 = vmatpush2.msra.mxu1 %v2438_v60 }
 0x19c   : > { %v5907_v38 = vadd.f32 %v1187_v20, %v963_v40  ;;  %2836 = vmatpush2.msra.mxu0 %v2478_v63  ;;  %2628 = vmatprep.subr.mxu1 %v5740_v54  ;;  %v2437_v20 = vld [vmem:[#allocation3 + $0x90] sm:$0xff] }
 0x19d   : > { %v967_v30 = vpop.f32.mrf.mxu0  ;;  %v1189_v44 = vpop.f32.mrf.mxu1  ;;  %4130 = vmatmul.mubr.f32.gmra.mxu0 %v5784_v8  ;;  %v2477_v8 = vld [vmem:[#allocation3 + $0x1d0] sm:$0xff]  ;;  %2837 = vmatprep.subr.mxu0 %v5740_v54 }
 0x19e   : > { %v968_v43 = vadd.f32 %v5646_v25, %v967_v30  ;;  %4132 = vmatprep.mubr.f32.mxu0 %v595_v12  ;;  %2838 = vmatpush2.msra.mxu0 %v2477_v8  ;;  %v2436_v44 = vld [vmem:[#allocation3 + $0x88] sm:$0xff]  ;;  %v2470_v8 = vld [vmem:[#allocation3 + $0x198] sm:$0xff] }
 0x19f   : > { %v969_v23 = vpop.f32.mrf.mxu0  ;;  %v1192_v57 = vpop.f32.mrf.mxu1  ;;  %2839 = vmatprep.subr.mxu0 %v5740_v54  ;;  %2629 = vmatpush2.msra.mxu1 %v2437_v20 }
 0x1a0   : > { %v5915_v58 = vadd.f32 %v1192_v57, %v968_v43  ;;  %2840 = vmatpush2.msra.mxu0 %v2476_v28  ;;  %2630 = vmatprep.subr.mxu1 %v5740_v54  ;;  %v2161_v43 = vrot.slane %v5740_v54, 1 }
 0x1a1   : > { %v972_v33 = vpop.f32.mrf.mxu0  ;;  %v1194_v24 = vpop.f32.mrf.mxu1  ;;  %4133 = vmatmul.mubr.f32.gmra.mxu0 %v597_v2  ;;  %2841 = vmatprep.subr.mxu0 %v5740_v54 }
 0x1a2   : > { %v973_v1 = vadd.f32 %v5646_v25, %v972_v33  ;;  %2842 = vmatpush2.msra.mxu0 %v2475_v17  ;;  %2631 = vmatpush2.msra.mxu1 %v2436_v44  ;;  %v5939_v33 = vld [vmem:[#allocation2 + $0x10] sm:$0x3] }
 0x1a3   : > { %v974_v39 = vpop.f32.mrf.mxu0  ;;  %v1197_v55 = vpop.f32.mrf.mxu1  ;;  %2843 = vmatprep.subr.mxu0 %v5740_v54  ;;  %2632 = vmatprep.subr.mxu1 %v5740_v54  ;;  %v2164_v60 = vrot.slane %v5939_v33, 1 }
 0x1a4   : > { %v5921_v15 = vadd.f32 %v1197_v55, %v973_v1  ;;  %2844 = vmatpush2.msra.mxu0 %v2474_v11  ;;  %2634 = vmatprep.mubr.f32.mxu1 %v2161_v43  ;;  %v2469_v39 = vld [vmem:[#allocation3 + $0x190] sm:$0xff] }
 0x1a5   : > { %v1199_v49 = vpop.f32.mrf.mxu1  ;;  %v1267_v32 = vpop.f32.mrf.mxu0  ;;  %2845 = vmatprep.subr.mxu0 %v5740_v54  ;;  %v2165_v17 = vsel %vm340_vm0, %v2161_v43, %v2164_v60 }
 0x1a6   : > { %v1268_v25 = vadd.f32 %v1267_v32, %v5653_v48  ;;  %2846 = vmatpush2.msra.mxu0 %v2473_v42  ;;  %v2472_v48 = vld [vmem:[#allocation3 + $0x1a8] sm:$0xff] }
 0x1a7   : > { %v1269_v5 = vpop.f32.mrf.mxu0  ;;  %v1492_v40 = vpop.f32.mrf.mxu1  ;;  %2847 = vmatprep.subr.mxu0 %v5740_v54  ;;  %v2468_v32 = vld [vmem:[#allocation3 + $0x188] sm:$0xff] }
 0x1a8   : > { %v5927_v18 = vadd.f32 %v1492_v40, %v1268_v25  ;;  %2848 = vmatpush2.msra.mxu0 %v2472_v48  ;;  %v2467_v40 = vld [vmem:[#allocation3 + $0x180] sm:$0xff] }
 0x1a9   : > { %v1272_v29 = vpop.f32.mrf.mxu0  ;;  %v1494_v21 = vpop.f32.mrf.mxu1  ;;  %2849 = vmatprep.subr.mxu0 %v5740_v54 }
 0x1aa   : > { %v1273_v12 = vadd.f32 %v1272_v29, %v5660_v62  ;;  %v2435_v62 = vld [vmem:[#allocation3 + $0x80] sm:$0xff]  ;;  %2850 = vmatpush2.msra.mxu0 %v2471_v0 }
 0x1ab   : > { %v1274_v53 = vpop.f32.mrf.mxu0  ;;  %v1497_v30 = vpop.f32.mrf.mxu1  ;;  %2633 = vmatpush2.msra.mxu1 %v2435_v62  ;;  %2851 = vmatprep.subr.mxu0 %v5740_v54 }
 0x1ac   : > { %v5934_v2 = vadd.f32 %v1497_v30, %v1273_v12  ;;  %2852 = vmatpush2.msra.mxu0 %v2470_v8  ;;  %2635 = vmatmul.mubr.f32.vlgmr.msra.gmra.mxu1 %v5740_v54  ;;  %v2498_v12 = vld [vmem:[#allocation3 + $0x278] sm:$0xff] }
 0x1ad   : > { %v1277_v63 = vpop.f32.mrf.mxu0  ;;  %v1499_v23 = vpop.f32.mrf.mxu1  ;;  %2853 = vmatprep.subr.mxu0 %v5740_v54  ;;  %3020 = vmatprep.subr.mxu1 %v5740_v54 }
 0x1ae   : > { %v1278_v57 = vadd.f32 %v1277_v63, %v5667_v45  ;;  %2854 = vmatpush2.msra.mxu0 %v2469_v39  ;;  %2639 = vmatprep.mubr.f32.mxu1 %v2165_v17  ;;  %v2497_v63 = vld [vmem:[#allocation3 + $0x270] sm:$0xff] }
 0x1af   : > { %v1279_v24 = vpop.f32.mrf.mxu0  ;;  %v1502_v1 = vpop.f32.mrf.mxu1  ;;  %2855 = vmatprep.subr.mxu0 %v5740_v54  ;;  %3021 = vmatpush1.msra.mxu1 %v2498_v12 }
 0x1b0   : > { %v5943_v28 = vadd.f32 %v1502_v1, %v1278_v57  ;;  %2856 = vmatpush2.msra.mxu0 %v2468_v32  ;;  %2640 = vmatmul.mubr.f32.gmra.mxu1 %v5740_v54  ;;  %v2496_v1 = vld [vmem:[#allocation3 + $0x268] sm:$0xff] }
 0x1b1   : > { %v1282_v55 = vpop.f32.mrf.mxu0  ;;  %v1504_v45 = vpop.f32.mrf.mxu1  ;;  %2857 = vmatprep.subr.mxu0 %v5740_v54  ;;  %3022 = vmatprep.subr.mxu1 %v5740_v54 }
 0x1b2   : > { %v1283_v49 = vadd.f32 %v1282_v55, %v5674_v27  ;;  %2858 = vmatpush2.msra.mxu0 %v2467_v40  ;;  %3023 = vmatpush1.msra.mxu1 %v2497_v63 }
 0x1b3   : > { %v1284_v25 = vpop.f32.mrf.mxu0  ;;  %v1507_v11 = vpop.f32.mrf.mxu1  ;;  %3245 = vmatprep.subr.mxu0 %v5740_v54  ;;  %3024 = vmatprep.subr.mxu1 %v5740_v54 }
 0x1b4   : > { %v5951_v5 = vadd.f32 %v1507_v11, %v1283_v49  ;;  %3025 = vmatpush1.msra.mxu1 %v2496_v1  ;;  %v2495_v49 = vld [vmem:[#allocation3 + $0x260] sm:$0xff] }
 0x1b5   : > { %v1287_v42 = vpop.f32.mrf.mxu0  ;;  %v1509_v29 = vpop.f32.mrf.mxu1  ;;  %3026 = vmatprep.subr.mxu1 %v5740_v54 }
 0x1b6   : > { %v1288_v21 = vadd.f32 %v1287_v42, %v5682_v14  ;;  %3027 = vmatpush1.msra.mxu1 %v2495_v49  ;;  %v2494_v29 = vld [vmem:[#allocation3 + $0x258] sm:$0xff] }
 0x1b7   : > { %v1289_v27 = vpop.f32.mrf.mxu0  ;;  %v1512_v20 = vpop.f32.mrf.mxu1  ;;  %3028 = vmatprep.subr.mxu1 %v5740_v54 }
 0x1b8   : > { %v5957_v48 = vadd.f32 %v1512_v20, %v1288_v21  ;;  %3029 = vmatpush1.msra.mxu1 %v2494_v29 }
 0x1b9   : > { %v1292_v53 = vpop.f32.mrf.mxu0  ;;  %v1514_v30 = vpop.f32.mrf.mxu1  ;;  %3030 = vmatprep.subr.mxu1 %v5740_v54 }
 0x1ba   : > { %v1293_v44 = vadd.f32 %v1292_v53, %v5690_v51  ;;  %v2493_v30 = vld [vmem:[#allocation3 + $0x250] sm:$0xff] }
 0x1bb   : > { %v1294_v43 = vpop.f32.mrf.mxu0  ;;  %v1517_v0 = vpop.f32.mrf.mxu1  ;;  %3031 = vmatpush1.msra.mxu1 %v2493_v30 }
 0x1bc   : > { %v5961_v23 = vadd.f32 %v1517_v0, %v1293_v44  ;;  %3032 = vmatprep.subr.mxu1 %v5740_v54 }
 0x1bd   : > { %v1297_v14 = vpop.f32.mrf.mxu0  ;;  %v1519_v62 = vpop.f32.mrf.mxu1 }
 0x1be   : > { %v1298_v57 = vadd.f32 %v1297_v14, %v5698_v16  ;;  %v2492_v62 = vld [vmem:[#allocation3 + $0x248] sm:$0xff] }
 0x1bf   : > { %v1299_v8 = vpop.f32.mrf.mxu0  ;;  %v1522_v24 = vpop.f32.mrf.mxu1  ;;  %3033 = vmatpush1.msra.mxu1 %v2492_v62 }
 0x1c0   : > { %v5965_v60 = vadd.f32 %v1522_v24, %v1298_v57  ;;  %3034 = vmatprep.subr.mxu1 %v5740_v54  ;;  %v7358_v24 = vld [vmem:[#allocation25_spill] sm:$0xff] }
 0x1c1   : > { %v1302_v39 = vpop.f32.mrf.mxu0  ;;  %v1524_v51 = vpop.f32.mrf.mxu1 }
 0x1c2   : > { %v1303_v55 = vadd.f32 %v1302_v39, %v5706_v52 }
 0x1c3   : > { %v1304_v45 = vpop.f32.mrf.mxu0  ;;  %v1527_v17 = vpop.f32.mrf.mxu1 }
 0x1c4   : > { %v5969_v32 = vadd.f32 %v1527_v17, %v1303_v55  ;;  %v2491_v55 = vld [vmem:[#allocation3 + $0x240] sm:$0xff] }
 0x1c5   : > { %v1307_v25 = vpop.f32.mrf.mxu0  ;;  %v1529_v16 = vpop.f32.mrf.mxu1  ;;  %3035 = vmatpush1.msra.mxu1 %v2491_v55 }
 0x1c6   : > { %v1308_v11 = vadd.f32 %v1307_v25, %v5714_v3  ;;  %3036 = vmatprep.subr.mxu1 %v5740_v54 }
 0x1c7   : > { %v1309_v40 = vpop.f32.mrf.mxu0  ;;  %v1532_v42 = vpop.f32.mrf.mxu1 }
 0x1c8   : > { %v5973_v21 = vadd.f32 %v1532_v42, %v1308_v11  ;;  %v2490_v11 = vld [vmem:[#allocation3 + $0x238] sm:$0xff] }
 0x1c9   : > { %v1312_v27 = vpop.f32.mrf.mxu0  ;;  %v1534_v52 = vpop.f32.mrf.mxu1  ;;  %3037 = vmatpush1.msra.mxu1 %v2490_v11  ;;  %v6007_v11 = vld [vmem:[#allocation2] sm:$0xff] }
 0x1ca   : > { %v1313_v20 = vadd.f32 %v1312_v27, %v5722_v26  ;;  %3038 = vmatprep.subr.mxu1 %v5740_v54 }
 0x1cb   : > { %v1314_v12 = vpop.f32.mrf.mxu0  ;;  %v1537_v53 = vpop.f32.mrf.mxu1 }
 0x1cc   : > { %v5977_v44 = vadd.f32 %v1537_v53, %v1313_v20  ;;  %v2489_v12 = vld [vmem:[#allocation3 + $0x230] sm:$0xff] }
 0x1cd   : > { %v1317_v43 = vpop.f32.mrf.mxu0  ;;  %v1539_v3 = vpop.f32.mrf.mxu1  ;;  %3039 = vmatpush1.msra.mxu1 %v2489_v12 }
 0x1ce   : > { %v1318_v0 = vadd.f32 %v1317_v43, %v5733_v35  ;;  %3040 = vmatprep.subr.mxu1 %v5740_v54 }
 0x1cf   : > { %v1319_v63 = vpop.f32.mrf.mxu0  ;;  %v1542_v14 = vpop.f32.mrf.mxu1 }
 0x1d0   : > { %v5981_v57 = vadd.f32 %v1542_v14, %v1318_v0  ;;  %v2488_v63 = vld [vmem:[#allocation3 + $0x228] sm:$0xff] }
 0x1d1   : > { %v1322_v8 = vpop.f32.mrf.mxu0  ;;  %v1544_v26 = vpop.f32.mrf.mxu1  ;;  %3041 = vmatpush1.msra.mxu1 %v2488_v63 }
 0x1d2   : > { %v1323_v1 = vadd.f32 %v1322_v8, %v7358_v24  ;;  %3042 = vmatprep.subr.mxu1 %v5740_v54 }
 0x1d3   : > { %v1324_v39 = vpop.f32.mrf.mxu0  ;;  %v1547_v51 = vpop.f32.mrf.mxu1 }
 0x1d4   : > { %v5985_v45 = vadd.f32 %v1547_v51, %v1323_v1  ;;  %v2487_v1 = vld [vmem:[#allocation3 + $0x220] sm:$0xff] }
 0x1d5   : > { %v1327_v17 = vpop.f32.mrf.mxu0  ;;  %v1549_v35 = vpop.f32.mrf.mxu1  ;;  %3043 = vmatpush1.msra.mxu1 %v2487_v1 }
 0x1d6   : > { %v1328_v49 = vadd.f32 %v1327_v17, %v5773_v7  ;;  %3044 = vmatprep.subr.mxu1 %v5740_v54 }
 0x1d7   : > { %v1329_v25 = vpop.f32.mrf.mxu0  ;;  %v1552_v16 = vpop.f32.mrf.mxu1 }
 0x1d8   : > { %v5989_v40 = vadd.f32 %v1552_v16, %v1328_v49  ;;  %v2486_v49 = vld [vmem:[#allocation3 + $0x218] sm:$0xff] }
 0x1d9   : > { %v1332_v42 = vpop.f32.mrf.mxu0  ;;  %v1554_v29 = vpop.f32.mrf.mxu1  ;;  %3045 = vmatpush1.msra.mxu1 %v2486_v49 }
 0x1da   : > { %v1333_v27 = vadd.f32 %v1332_v42, %v5786_v37  ;;  %3046 = vmatprep.subr.mxu1 %v6007_v11  ;;  %v2485_v42 = vld [vmem:[#allocation3 + $0x210] sm:$0xff] }
 0x1db   : > { %v1334_v52 = vpop.f32.mrf.mxu0  ;;  %v1557_v20 = vpop.f32.mrf.mxu1  ;;  %3047 = vmatpush1.msra.mxu1 %v2485_v42 }
 0x1dc   : > { %v5993_v53 = vadd.f32 %v1557_v20, %v1333_v27  ;;  %v2484_v27 = vld [vmem:[#allocation3 + $0x208] sm:$0xff]  ;;  %3048 = vmatprep.subr.mxu1 %v6007_v11 }
 0x1dd   : > { %v1337_v30 = vpop.f32.mrf.mxu0  ;;  %v1559_v7 = vpop.f32.mrf.mxu1  ;;  %3049 = vmatpush1.msra.mxu1 %v2484_v27 }
 0x1de   : > { %v1338_v43 = vadd.f32 %v1337_v30, %v5794_v36  ;;  %3050 = vmatprep.subr.mxu1 %v6007_v11  ;;  %v2483_v7 = vld [vmem:[#allocation3 + $0x200] sm:$0xff] }
 0x1df   : > { %v1339_v3 = vpop.f32.mrf.mxu0  ;;  %v1562_v0 = vpop.f32.mrf.mxu1  ;;  %3051 = vmatpush1.msra.mxu1 %v2483_v7 }
 0x1e0   : > { %v5997_v14 = vadd.f32 %v1562_v0, %v1338_v43  ;;  %3052 = vmatprep.subr.mxu1 %v6007_v11 }
 0x1e1   : > { %v1342_v62 = vpop.f32.mrf.mxu0  ;;  %v1564_v37 = vpop.f32.mrf.mxu1 }
 0x1e2   : > { %v1343_v8 = vadd.f32 %v1342_v62, %v5801_v10  ;;  %v2514_v37 = vld [vmem:[#allocation3 + $0x2f8] sm:$0xff] }
 0x1e3   : > { %v1344_v26 = vpop.f32.mrf.mxu0  ;;  %v1567_v24 = vpop.f32.mrf.mxu1  ;;  %3053 = vmatpush2.msra.mxu1 %v2514_v37 }
 0x1e4   : > { %v6001_v39 = vadd.f32 %v1567_v24, %v1343_v8  ;;  %3054 = vmatprep.subr.mxu1 %v6007_v11 }
 0x1e5   : > { %v1347_v51 = vpop.f32.mrf.mxu0  ;;  %v1569_v36 = vpop.f32.mrf.mxu1 }
 0x1e6   : > { %v1348_v55 = vadd.f32 %v1347_v51, %v5807_v13  ;;  %v2513_v36 = vld [vmem:[#allocation3 + $0x2f0] sm:$0xff] }
 0x1e7   : > { %v1349_v17 = vpop.f32.mrf.mxu0  ;;  %v1572_v35 = vpop.f32.mrf.mxu1  ;;  %3055 = vmatpush2.msra.mxu1 %v2513_v36 }
 0x1e8   : > { %v6005_v25 = vadd.f32 %v1572_v35, %v1348_v55  ;;  %3056 = vmatprep.subr.mxu1 %v6007_v11 }
 0x1e9   : > { %v1352_v16 = vpop.f32.mrf.mxu0  ;;  %v1574_v10 = vpop.f32.mrf.mxu1 }
 0x1ea   : > { %v1353_v29 = vadd.f32 %v1352_v16, %v5813_v4  ;;  %v2512_v10 = vld [vmem:[#allocation3 + $0x2e8] sm:$0xff] }
 0x1eb   : > { %v1354_v54 = vpop.f32.mrf.mxu0  ;;  %v1577_v52 = vpop.f32.mrf.mxu1  ;;  %3057 = vmatpush2.msra.mxu1 %v2512_v10 }
 0x1ec   : > { %v6012_v13 = vadd.f32 %v1577_v52, %v1353_v29  ;;  %3058 = vmatprep.subr.mxu1 %v6007_v11 }
 0x1ed   : > { %v1357_v20 = vpop.f32.mrf.mxu0  ;;  %v1579_v12 = vpop.f32.mrf.mxu1 }
 0x1ee   : > { %v1358_v30 = vadd.f32 %v1357_v20, %v5819_v22  ;;  %v2511_v20 = vld [vmem:[#allocation3 + $0x2e0] sm:$0xff] }
 0x1ef   : > { %v1359_v43 = vpop.f32.mrf.mxu0  ;;  %v1582_v3 = vpop.f32.mrf.mxu1  ;;  %3059 = vmatpush2.msra.mxu1 %v2511_v20 }
 0x1f0   : > { %v6016_v4 = vadd.f32 %v1582_v3, %v1358_v30  ;;  %3060 = vmatprep.subr.mxu1 %v6007_v11 }
 0x1f1   : > { %v1362_v0 = vpop.f32.mrf.mxu0  ;;  %v1584_v63 = vpop.f32.mrf.mxu1 }
 0x1f2   : > { %v1363_v62 = vadd.f32 %v1362_v0, %v5825_v47  ;;  %v2510_v0 = vld [vmem:[#allocation3 + $0x2d8] sm:$0xff] }
 0x1f3   : > { %v1364_v8 = vpop.f32.mrf.mxu0  ;;  %v1587_v26 = vpop.f32.mrf.mxu1  ;;  %3061 = vmatpush2.msra.mxu1 %v2510_v0 }
 0x1f4   : > { %v6020_v24 = vadd.f32 %v1587_v26, %v1363_v62  ;;  %3062 = vmatprep.subr.mxu1 %v6007_v11 }
 0x1f5   : > { %v1367_v22 = vpop.f32.mrf.mxu0  ;;  %v1589_v1 = vpop.f32.mrf.mxu1 }
 0x1f6   : > { %v1368_v51 = vadd.f32 %v1367_v22, %v5831_v61  ;;  %v2509_v22 = vld [vmem:[#allocation3 + $0x2d0] sm:$0xff] }
 0x1f7   : > { %v1369_v55 = vpop.f32.mrf.mxu0  ;;  %v1592_v17 = vpop.f32.mrf.mxu1  ;;  %3063 = vmatpush2.msra.mxu1 %v2509_v22 }
 0x1f8   : > { %v6024_v35 = vadd.f32 %v1592_v17, %v1368_v51  ;;  %3064 = vmatprep.subr.mxu1 %v6007_v11 }
 0x1f9   : > { %v1372_v47 = vpop.f32.mrf.mxu0  ;;  %v1594_v49 = vpop.f32.mrf.mxu1 }
 0x1fa   : > { %v1373_v16 = vadd.f32 %v1372_v47, %v5839_v31  ;;  %v2508_v47 = vld [vmem:[#allocation3 + $0x2c8] sm:$0xff] }
 0x1fb   : > { %v1374_v42 = vpop.f32.mrf.mxu0  ;;  %v1597_v29 = vpop.f32.mrf.mxu1  ;;  %3065 = vmatpush2.msra.mxu1 %v2508_v47 }
 0x1fc   : > { %v6028_v27 = vadd.f32 %v1597_v29, %v1373_v16  ;;  %3066 = vmatprep.subr.mxu1 %v6007_v11 }
 0x1fd   : > { %v1377_v61 = vpop.f32.mrf.mxu0  ;;  %v1599_v54 = vpop.f32.mrf.mxu1 }
 0x1fe   : > { %v1378_v52 = vadd.f32 %v1377_v61, %v5847_v34  ;;  %v2507_v61 = vld [vmem:[#allocation3 + $0x2c0] sm:$0xff] }
 0x1ff   : > { %v1379_v12 = vpop.f32.mrf.mxu0  ;;  %v1602_v30 = vpop.f32.mrf.mxu1  ;;  %3067 = vmatpush2.msra.mxu1 %v2507_v61 }
 0x200   : > { %v6032_v7 = vadd.f32 %v1602_v30, %v1378_v52  ;;  %3068 = vmatprep.subr.mxu1 %v6007_v11 }
 0x201   : > { %v1382_v31 = vpop.f32.mrf.mxu0  ;;  %v1604_v43 = vpop.f32.mrf.mxu1 }
 0x202   : > { %v1383_v3 = vadd.f32 %v1382_v31, %v5855_v41  ;;  %v2506_v31 = vld [vmem:[#allocation3 + $0x2b8] sm:$0xff] }
 0x203   : > { %v1384_v63 = vpop.f32.mrf.mxu0  ;;  %v1607_v62 = vpop.f32.mrf.mxu1  ;;  %3069 = vmatpush2.msra.mxu1 %v2506_v31 }
 0x204   : > { %v6036_v37 = vadd.f32 %v1607_v62, %v1383_v3  ;;  %3070 = vmatprep.subr.mxu1 %v6007_v11 }
 0x205   : > { %v1387_v34 = vpop.f32.mrf.mxu0  ;;  %v1609_v8 = vpop.f32.mrf.mxu1 }
 0x206   : > { %v1388_v26 = vadd.f32 %v1387_v34, %v5863_v19  ;;  %v2505_v34 = vld [vmem:[#allocation3 + $0x2b0] sm:$0xff] }
 0x207   : > { %v1389_v1 = vpop.f32.mrf.mxu0  ;;  %v1612_v51 = vpop.f32.mrf.mxu1  ;;  %3071 = vmatpush2.msra.mxu1 %v2505_v34 }
 0x208   : > { %v6040_v36 = vadd.f32 %v1612_v51, %v1388_v26  ;;  %3072 = vmatprep.subr.mxu1 %v6007_v11 }
 0x209   : > { %v1392_v41 = vpop.f32.mrf.mxu0  ;;  %v1614_v55 = vpop.f32.mrf.mxu1 }
 0x20a   : > { %v1393_v17 = vadd.f32 %v1392_v41, %v5871_v9  ;;  %v2504_v41 = vld [vmem:[#allocation3 + $0x2a8] sm:$0xff] }
 0x20b   : > { %v1394_v49 = vpop.f32.mrf.mxu0  ;;  %v1617_v16 = vpop.f32.mrf.mxu1  ;;  %3073 = vmatpush2.msra.mxu1 %v2504_v41 }
 0x20c   : > { %v6044_v10 = vadd.f32 %v1617_v16, %v1393_v17  ;;  %3074 = vmatprep.subr.mxu1 %v6007_v11 }
 0x20d   : > { %v1397_v19 = vpop.f32.mrf.mxu0  ;;  %v1619_v42 = vpop.f32.mrf.mxu1 }
 0x20e   : > { %v1398_v29 = vadd.f32 %v1397_v19, %v5879_v50  ;;  %v2503_v19 = vld [vmem:[#allocation3 + $0x2a0] sm:$0xff] }
 0x20f   : > { %v1399_v54 = vpop.f32.mrf.mxu0  ;;  %v1622_v52 = vpop.f32.mrf.mxu1  ;;  %3075 = vmatpush2.msra.mxu1 %v2503_v19 }
 0x210   : > { %v6048_v20 = vadd.f32 %v1622_v52, %v1398_v29  ;;  %3076 = vmatprep.subr.mxu1 %v6007_v11  ;;  %v2502_v52 = vld [vmem:[#allocation3 + $0x298] sm:$0xff] }
 0x211   : > { %v1402_v9 = vpop.f32.mrf.mxu0  ;;  %v1624_v12 = vpop.f32.mrf.mxu1  ;;  %3077 = vmatpush2.msra.mxu1 %v2502_v52 }
 0x212   : > { %v1403_v30 = vadd.f32 %v1402_v9, %v5887_v56  ;;  %3078 = vmatprep.subr.mxu1 %v6007_v11 }
 0x213   : > { %v1404_v43 = vpop.f32.mrf.mxu0  ;;  %v1627_v3 = vpop.f32.mrf.mxu1 }
 0x214   : > { %v6052_v0 = vadd.f32 %v1627_v3, %v1403_v30  ;;  %v2501_v43 = vld [vmem:[#allocation3 + $0x290] sm:$0xff] }
 0x215   : > { %v1407_v50 = vpop.f32.mrf.mxu0  ;;  %v1629_v63 = vpop.f32.mrf.mxu1  ;;  %3079 = vmatpush2.msra.mxu1 %v2501_v43 }
 0x216   : > { %v1408_v62 = vadd.f32 %v1407_v50, %v5897_v59  ;;  %3080 = vmatprep.subr.mxu1 %v6007_v11 }
 0x217   : > { %v1409_v8 = vpop.f32.mrf.mxu0  ;;  %v1632_v26 = vpop.f32.mrf.mxu1 }
 0x218   : > { %v6056_v22 = vadd.f32 %v1632_v26, %v1408_v62 }
 0x219   : > { %v1412_v56 = vpop.f32.mrf.mxu0  ;;  %v1634_v1 = vpop.f32.mrf.mxu1 }
 0x21a   : > { %v1413_v51 = vadd.f32 %v1412_v56, %v5907_v38  ;;  %v2500_v56 = vld [vmem:[#allocation3 + $0x288] sm:$0xff] }
 0x21b   : > { %v1414_v55 = vpop.f32.mrf.mxu0  ;;  %v1637_v17 = vpop.f32.mrf.mxu1  ;;  %3081 = vmatpush2.msra.mxu1 %v2500_v56 }
 0x21c   : > { %v6060_v47 = vadd.f32 %v1637_v17, %v1413_v51  ;;  %3082 = vmatprep.subr.mxu1 %v6007_v11 }
 0x21d   : > { %v1417_v59 = vpop.f32.mrf.mxu0  ;;  %v1639_v49 = vpop.f32.mrf.mxu1 }
 0x21e   : > { %v1418_v16 = vadd.f32 %v1417_v59, %v5915_v58  ;;  %v2499_v49 = vld [vmem:[#allocation3 + $0x280] sm:$0xff] }
 0x21f   : > { %v1419_v42 = vpop.f32.mrf.mxu0  ;;  %v1642_v29 = vpop.f32.mrf.mxu1  ;;  %3083 = vmatpush2.msra.mxu1 %v2499_v49 }
 0x220   : > { %v6064_v61 = vadd.f32 %v1642_v29, %v1418_v16  ;;  %v2273_v16 = vrot.slane %v6007_v11, 2 }
 0x221   : > { %v6067_v38 = vpop.f32.mrf.mxu0  ;;  %v1644_v54 = vpop.f32.mrf.mxu1 }
 0x222   : > { %v2562_v54 = vld [vmem:[#allocation3 + $0x478] sm:$0xff] }
 0x223   : > { %v1424_v9 = vpop.f32.mrf.mxu0  ;;  %v6069_v12 = vpop.f32.mrf.mxu1  ;;  %4135 = vmatprep.subr.mxu1 %v2562_v54 }
 0x225   : > { %v4089_v30 = vpop.f32.mrf.mxu0  ;;  %v1649_v58 = vpop.f32.mrf.mxu1 }
 0x226   : > { %v1723_v31 = vadd.f32 %v4089_v30, %v5934_v2 }
 0x227   : > { %v1717_v3 = vpop.f32.mrf.mxu0 }
 0x228   : > { %vm1877_vm2 = vcmp.gt.f32.partialorder %v1723_v31, 0.0  ;;  %v1909_v50 = vmul.f32 0.2, %v1723_v31  ;;  %v1718_v63 = vadd.f32 %v1717_v3, %v5927_v18 }
 0x229   : > { %v4092_v62 = vpop.f32.mrf.mxu0 }
 0x22a   : > { %v1941_v34 = vsel %vm1877_vm2, %v1723_v31, %v1909_v50  ;;  %vm1876_vm3 = vcmp.gt.f32.partialorder %v1718_v63, 0.0  ;;  %v1908_v8 = vmul.f32 0.2, %v1718_v63  ;;  %v1733_v26 = vadd.f32 %v4092_v62, %v5951_v5  ;;  %v2530_v62 = vld [vmem:[#allocation3 + $0x378] sm:$0xff] }
 0x22b   : > { %2028 = vst [vmem:[#allocation2 + $0x21] sm:$0xff] %v1941_v34  ;;  %v1727_v1 = vpop.f32.mrf.mxu0  ;;  %v2276_v31 = vrot.slane %v5939_v33, 2 }
 0x22c   : > { %v1940_v2 = vsel %vm1876_vm3, %v1718_v63, %v1908_v8  ;;  %vm1879_vm4 = vcmp.gt.f32.partialorder %v1733_v26, 0.0  ;;  %v1911_v51 = vmul.f32 0.2, %v1733_v26  ;;  %v1728_v41 = vadd.f32 %v1727_v1, %v5943_v28  ;;  %v2529_v1 = vld [vmem:[#allocation3 + $0x370] sm:$0xff] }
 0x22d   : > { %2027 = vst [vmem:[#allocation2 + $0x19] sm:$0xff] %v1940_v2  ;;  %v4095_v18 = vpop.f32.mrf.mxu0 }
 0x22e   : > { %v1943_v55 = vsel %vm1879_vm4, %v1733_v26, %v1911_v51  ;;  %vm1878_vm5 = vcmp.gt.f32.partialorder %v1728_v41, 0.0  ;;  %v1910_v17 = vmul.f32 0.2, %v1728_v41  ;;  %v1743_v59 = vadd.f32 %v4095_v18, %v5961_v23 }
 0x22f   : > { %2030 = vst [vmem:[#allocation2 + $0x39] sm:$0xff] %v1943_v55  ;;  %v1737_v5 = vpop.f32.mrf.mxu0  ;;  %v2277_v18 = vsel %vm453_vm1, %v2273_v16, %v2276_v31 }
 0x230   : > { %v1942_v19 = vsel %vm1878_vm5, %v1728_v41, %v1910_v17  ;;  %vm1881_vm6 = vcmp.gt.f32.partialorder %v1743_v59, 0.0  ;;  %v1913_v42 = vmul.f32 0.2, %v1743_v59  ;;  %v1738_v28 = vadd.f32 %v1737_v5, %v5957_v48 }
 0x231   : > { %2029 = vst [vmem:[#allocation2 + $0x31] sm:$0xff] %v1942_v19  ;;  %v4098_v29 = vpop.f32.mrf.mxu0 }
 0x232   : > { %v1945_v52 = vsel %vm1881_vm6, %v1743_v59, %v1913_v42  ;;  %vm1880_vm7 = vcmp.gt.f32.partialorder %v1738_v28, 0.0  ;;  %v1912_v9 = vmul.f32 0.2, %v1738_v28  ;;  %v1753_v30 = vadd.f32 %v4098_v29, %v5969_v32  ;;  %v6082_v58 = vld [vmem:[#allocation2 + $0x28] sm:$0x3] }
 0x233   : > { %2032 = vst [vmem:[#allocation2 + $0x51] sm:$0xff] %v1945_v52  ;;  %v1747_v23 = vpop.f32.mrf.mxu0  ;;  %v2169_v41 = vrot.slane %v6082_v58, 1 }
 0x234   : > { %v1944_v43 = vsel %vm1880_vm7, %v1738_v28, %v1912_v9  ;;  %vm1883_vm8 = vcmp.gt.f32.partialorder %v1753_v30, 0.0  ;;  %v1915_v3 = vmul.f32 0.2, %v1753_v30  ;;  %v1748_v48 = vadd.f32 %v1747_v23, %v5965_v60  ;;  %v2062_v50 = vld [vmem:[#allocation2 + $0x18] sm:$0xff]  ;;  %v6086_v63 = vld [vmem:[#allocation2 + $0x20] sm:$0xff] }
 0x235   : > { %2031 = vst [vmem:[#allocation2 + $0x49] sm:$0xff] %v1944_v43  ;;  %v4101_v34 = vpop.f32.mrf.mxu0  ;;  %2859 = vmatprep.mubr.f32.mxu0 %v2062_v50  ;;  %v2166_v32 = vrot.slane %v2062_v50, 1  ;;  %v2167_v8 = vrot.slane %v6086_v63, 1  ;;  %v2278_v2 = vrot.slane %v2062_v50, 2  ;;  %v2279_v5 = vrot.slane %v6086_v63, 2  ;;  %v2528_v28 = vld [vmem:[#allocation3 + $0x368] sm:$0xff] }
 0x236   : > { %v1947_v26 = vsel %vm1883_vm8, %v1753_v30, %v1915_v3  ;;  %vm1882_vm9 = vcmp.gt.f32.partialorder %v1748_v48, 0.0  ;;  %v1914_v56 = vmul.f32 0.2, %v1748_v48  ;;  %v1763_v33 = vadd.f32 %v4101_v34, %v5977_v44  ;;  %2860 = vmatmul.mubr.f32.vlgmr.msra.gmra.mxu0 %v2273_v16  ;;  %v6115_v43 = vld [vmem:[#allocation2 + $0x40] sm:$0x3]  ;;  %v2527_v3 = vld [vmem:[#allocation3 + $0x360] sm:$0xff] }
 0x237   : > { %2034 = vst [vmem:[#allocation2 + $0x69] sm:$0xff] %v1947_v26  ;;  %v1757_v60 = vpop.f32.mrf.mxu0  ;;  %2864 = vmatprep.mubr.f32.mxu0 %v6086_v63  ;;  %v6092_v51 = vsel %vm340_vm0, %v2166_v32, %v2167_v8  ;;  %3246 = vmatpush1.msra.mxu0 %v2530_v62  ;;  %v6105_v16 = vsel %vm340_vm0, %v2167_v8, %v2169_v41  ;;  %v2281_v62 = vrot.slane %v6082_v58, 2  ;;  %v2526_v26 = vld [vmem:[#allocation3 + $0x358] sm:$0xff]  ;;  %v2174_v58 = vrot.slane %v6115_v43, 1 }
 0x238   : > { %v1946_v55 = vsel %vm1882_vm9, %v1748_v48, %v1914_v56  ;;  %vm1885_vm10 = vcmp.gt.f32.partialorder %v1763_v33, 0.0  ;;  %v1917_v17 = vmul.f32 0.2, %v1763_v33  ;;  %v1758_v44 = vadd.f32 %v1757_v60, %v5973_v21  ;;  %2644 = vmatprep.mubr.f32.mxu1 %v6092_v51  ;;  %v6098_v59 = vld [vmem:[#allocation2 + $0x30] sm:$0xff]  ;;  %v6100_v49 = vld [vmem:[#allocation2 + $0x38] sm:$0xff]  ;;  %3247 = vmatprep.subr.mxu0 %v6007_v11 }
 0x239   : > { %2033 = vst [vmem:[#allocation2 + $0x61] sm:$0xff] %v1946_v55  ;;  %v4104_v19 = vpop.f32.mrf.mxu0  ;;  %2645 = vmatmul.mubr.f32.gmra.mxu1 %v2062_v50  ;;  %v2171_v42 = vrot.slane %v6098_v59, 1  ;;  %v2172_v21 = vrot.slane %v6100_v49, 1  ;;  %3248 = vmatpush1.msra.mxu0 %v2529_v1  ;;  %v6122_v50 = vsel %vm453_vm1, %v2278_v2, %v2279_v5 }
 0x23a   : > { %v1949_v29 = vsel %vm1885_vm10, %v1763_v33, %v1917_v17  ;;  %vm1884_vm11 = vcmp.gt.f32.partialorder %v1758_v44, 0.0  ;;  %v1916_v54 = vmul.f32 0.2, %v1758_v44  ;;  %v1773_v52 = vadd.f32 %v4104_v19, %v5985_v45  ;;  %2649 = vmatprep.mubr.f32.mxu1 %v6105_v16  ;;  %2865 = vmatmul.mubr.f32.gmra.mxu0 %v2277_v18 }
 0x23b   : > { %2036 = vst [vmem:[#allocation2 + $0x81] sm:$0xff] %v1949_v29  ;;  %v1767_v9 = vpop.f32.mrf.mxu0  ;;  %2869 = vmatprep.mubr.f32.mxu0 %v6098_v59  ;;  %3249 = vmatprep.subr.mxu0 %v6007_v11  ;;  %v6119_v48 = vsel %vm340_vm0, %v2171_v42, %v2172_v21  ;;  %v6136_v33 = vsel %vm453_vm1, %v2279_v5, %v2281_v62  ;;  %v2525_v5 = vld [vmem:[#allocation3 + $0x350] sm:$0xff] }
 0x23c   : > { %v1948_v30 = vsel %vm1884_vm11, %v1758_v44, %v1916_v54  ;;  %vm1887_vm12 = vcmp.gt.f32.partialorder %v1773_v52, 0.0  ;;  %v1919_v23 = vmul.f32 0.2, %v1773_v52  ;;  %v1768_v31 = vadd.f32 %v1767_v9, %v5981_v57  ;;  %3250 = vmatpush1.msra.mxu0 %v2528_v28  ;;  %v6131_v8 = vld [vmem:[#allocation2 + $0x50] sm:$0xff] }
 0x23d   : > { %2035 = vst [vmem:[#allocation2 + $0x79] sm:$0xff] %v1948_v30  ;;  %v4107_v45 = vpop.f32.mrf.mxu0  ;;  %2650 = vmatmul.mubr.f32.gmra.mxu1 %v6086_v63  ;;  %3251 = vmatprep.subr.mxu0 %v6007_v11  ;;  %v6129_v63 = vld [vmem:[#allocation2 + $0x48] sm:$0xff]  ;;  %v6143_v18 = vsel %vm340_vm0, %v2172_v21, %v2174_v58  ;;  %v2177_v17 = vrot.slane %v6131_v8, 1  ;;  %v2284_v44 = vrot.slane %v6100_v49, 2 }
 0x23e   : > { %v1951_v34 = vsel %vm1887_vm12, %v1773_v52, %v1919_v23  ;;  %vm1886_vm13 = vcmp.gt.f32.partialorder %v1768_v31, 0.0  ;;  %v1918_v57 = vmul.f32 0.2, %v1768_v31  ;;  %v1783_v32 = vadd.f32 %v4107_v45, %v5993_v53  ;;  %2654 = vmatprep.mubr.f32.mxu1 %v6119_v48  ;;  %2870 = vmatmul.mubr.f32.gmra.mxu0 %v6122_v50  ;;  %v2524_v52 = vld [vmem:[#allocation3 + $0x348] sm:$0xff] }
 0x23f   : > { %2038 = vst [vmem:[#allocation2 + $0x99] sm:$0xff] %v1951_v34  ;;  %v1777_v56 = vpop.f32.mrf.mxu0  ;;  %2874 = vmatprep.mubr.f32.mxu0 %v6100_v49  ;;  %v2283_v53 = vrot.slane %v6098_v59, 2  ;;  %3252 = vmatpush1.msra.mxu0 %v2527_v3  ;;  %v2176_v55 = vrot.slane %v6129_v63, 1  ;;  %v2523_v34 = vld [vmem:[#allocation3 + $0x340] sm:$0xff] }
 0x240   : > { %v1950_v1 = vsel %vm1886_vm13, %v1768_v31, %v1918_v57  ;;  %vm1889_vm14 = vcmp.gt.f32.partialorder %v1783_v32, 0.0  ;;  %v1921_v2 = vmul.f32 0.2, %v1783_v32  ;;  %v1778_v60 = vadd.f32 %v1777_v56, %v5989_v40  ;;  %3253 = vmatprep.subr.mxu0 %v6007_v11  ;;  %v6171_v62 = vld [vmem:[#allocation2 + $0x68] sm:$0xff] }
 0x241   : > { %2037 = vst [vmem:[#allocation2 + $0x91] sm:$0xff] %v1950_v1  ;;  %v4110_v41 = vpop.f32.mrf.mxu0  ;;  %2655 = vmatmul.mubr.f32.gmra.mxu1 %v6098_v59  ;;  %3254 = vmatpush1.msra.mxu0 %v2526_v26  ;;  %v6151_v59 = vld [vmem:[#allocation2 + $0x58] sm:$0x3]  ;;  %v6158_v9 = vsel %vm340_vm0, %v2176_v55, %v2177_v17  ;;  %v6161_v30 = vsel %vm453_vm1, %v2283_v53, %v2284_v44  ;;  %v2286_v31 = vrot.slane %v6115_v43, 2  ;;  %v2182_v1 = vrot.slane %v6171_v62, 1 }
 0x242   : > { %v1953_v19 = vsel %vm1889_vm14, %v1783_v32, %v1921_v2  ;;  %vm1888_vm15 = vcmp.gt.f32.partialorder %v1778_v60, 0.0  ;;  %v1920_v40 = vmul.f32 0.2, %v1778_v60  ;;  %v1793_v42 = vadd.f32 %v4110_v41, %v6001_v39  ;;  %2659 = vmatprep.mubr.f32.mxu1 %v6143_v18  ;;  %2875 = vmatmul.mubr.f32.gmra.mxu0 %v6136_v33  ;;  %v2522_v41 = vld [vmem:[#allocation3 + $0x338] sm:$0xff] }
 0x243   : > { %2040 = vst [vmem:[#allocation2 + $0xb1] sm:$0xff] %v1953_v19  ;;  %v1787_v21 = vpop.f32.mrf.mxu0  ;;  %2879 = vmatprep.mubr.f32.mxu0 %v6129_v63  ;;  %3255 = vmatprep.subr.mxu0 %v6007_v11  ;;  %v2179_v23 = vrot.slane %v6151_v59, 1  ;;  %v6178_v32 = vsel %vm453_vm1, %v2284_v44, %v2286_v31  ;;  %v2288_v2 = vrot.slane %v6129_v63, 2  ;;  %v6190_v44 = vld [vmem:[#allocation2 + $0x70] sm:$0x3]  ;;  %v2520_v31 = vld [vmem:[#allocation3 + $0x328] sm:$0xff] }
 0x244   : > { %v1952_v28 = vsel %vm1888_vm15, %v1778_v60, %v1920_v40  ;;  %vm1891_vm2 = vcmp.gt.f32.partialorder %v1793_v42, 0.0  ;;  %v1923_v29 = vmul.f32 0.2, %v1793_v42  ;;  %v1788_v54 = vadd.f32 %v1787_v21, %v5997_v14  ;;  %3256 = vmatpush1.msra.mxu0 %v2525_v5 }
 0x245   : > { %2039 = vst [vmem:[#allocation2 + $0xa9] sm:$0xff] %v1952_v28  ;;  %v4113_v39 = vpop.f32.mrf.mxu0  ;;  %2660 = vmatmul.mubr.f32.gmra.mxu1 %v6100_v49  ;;  %3257 = vmatprep.subr.mxu0 %v6007_v11  ;;  %v6169_v49 = vld [vmem:[#allocation2 + $0x60] sm:$0xff]  ;;  %v6175_v43 = vsel %vm340_vm0, %v2177_v17, %v2179_v23  ;;  %v2289_v60 = vrot.slane %v6131_v8, 2 }
 0x246   : > { %v1955_v3 = vsel %vm1891_vm2, %v1793_v42, %v1923_v29  ;;  %vm1890_vm3 = vcmp.gt.f32.partialorder %v1788_v54, 0.0  ;;  %v1922_v14 = vmul.f32 0.2, %v1788_v54  ;;  %v1803_v45 = vadd.f32 %v4113_v39, %v6012_v13  ;;  %2664 = vmatprep.mubr.f32.mxu1 %v6158_v9  ;;  %2880 = vmatmul.mubr.f32.gmra.mxu0 %v6161_v30  ;;  %v2521_v42 = vld [vmem:[#allocation3 + $0x330] sm:$0xff] }
 0x247   : > { %2042 = vst [vmem:[#allocation2 + $0xc9] sm:$0xff] %v1955_v3  ;;  %v1797_v57 = vpop.f32.mrf.mxu0  ;;  %2884 = vmatprep.mubr.f32.mxu0 %v6131_v8  ;;  %3258 = vmatpush1.msra.mxu0 %v2524_v52  ;;  %v2181_v53 = vrot.slane %v6169_v49, 1  ;;  %v6200_v28 = vsel %vm453_vm1, %v2288_v2, %v2289_v60  ;;  %v2184_v29 = vrot.slane %v6190_v44, 1  ;;  %v6210_v23 = vld [vmem:[#allocation2 + $0x80] sm:$0xff] }
 0x248   : > { %v1954_v13 = vsel %vm1890_vm3, %v1788_v54, %v1922_v14  ;;  %vm1893_vm4 = vcmp.gt.f32.partialorder %v1803_v45, 0.0  ;;  %v1925_v26 = vmul.f32 0.2, %v1803_v45  ;;  %v1798_v56 = vadd.f32 %v1797_v57, %v6005_v25  ;;  %3259 = vmatprep.subr.mxu0 %v6007_v11 }
 0x249   : > { %2041 = vst [vmem:[#allocation2 + $0xc1] sm:$0xff] %v1954_v13  ;;  %v4116_v58 = vpop.f32.mrf.mxu0  ;;  %2665 = vmatmul.mubr.f32.gmra.mxu1 %v6129_v63  ;;  %3260 = vmatpush1.msra.mxu0 %v2523_v34  ;;  %v6197_v21 = vsel %vm340_vm0, %v2181_v53, %v2182_v1  ;;  %v2291_v54 = vrot.slane %v6151_v59, 2  ;;  %v6214_v59 = vsel %vm340_vm0, %v2182_v1, %v2184_v29  ;;  %v2519_v53 = vld [vmem:[#allocation3 + $0x320] sm:$0xff] }
 0x24a   : > { %v1957_v55 = vsel %vm1893_vm4, %v1803_v45, %v1925_v26  ;;  %vm1892_vm5 = vcmp.gt.f32.partialorder %v1798_v56, 0.0  ;;  %v1924_v17 = vmul.f32 0.2, %v1798_v56  ;;  %v1813_v25 = vadd.f32 %v4116_v58, %v6020_v24  ;;  %2669 = vmatprep.mubr.f32.mxu1 %v6175_v43  ;;  %2885 = vmatmul.mubr.f32.gmra.mxu0 %v6178_v32 }
 0x24b   : > { %2044 = vst [vmem:[#allocation2 + $0xe1] sm:$0xff] %v1957_v55  ;;  %v1807_v5 = vpop.f32.mrf.mxu0  ;;  %2889 = vmatprep.mubr.f32.mxu0 %v6169_v49  ;;  %3261 = vmatprep.subr.mxu0 %v6007_v11  ;;  %v6217_v14 = vsel %vm453_vm1, %v2289_v60, %v2291_v54  ;;  %v2187_v26 = vrot.slane %v6210_v23, 1  ;;  %v2294_v58 = vrot.slane %v6171_v62, 2  ;;  %v6229_v60 = vld [vmem:[#allocation2 + $0x88] sm:$0x3]  ;;  %v6247_v54 = vld [vmem:[#allocation2 + $0x90] sm:$0xff] }
 0x24c   : > { %v1956_v63 = vsel %vm1892_vm5, %v1798_v56, %v1924_v17  ;;  %vm1895_vm6 = vcmp.gt.f32.partialorder %v1813_v25, 0.0  ;;  %v1927_v19 = vmul.f32 0.2, %v1813_v25  ;;  %v1808_v40 = vadd.f32 %v1807_v5, %v6016_v4  ;;  %3262 = vmatpush1.msra.mxu0 %v2522_v41  ;;  %v2518_v5 = vld [vmem:[#allocation3 + $0x318] sm:$0xff] }
 0x24d   : > { %2043 = vst [vmem:[#allocation2 + $0xd9] sm:$0xff] %v1956_v63  ;;  %v4119_v24 = vpop.f32.mrf.mxu0  ;;  %2670 = vmatmul.mubr.f32.gmra.mxu1 %v6131_v8  ;;  %3263 = vmatprep.subr.mxu0 %v6007_v11  ;;  %v6208_v8 = vld [vmem:[#allocation2 + $0x78] sm:$0xff]  ;;  %v2293_v56 = vrot.slane %v6169_v49, 2 }
 0x24e   : > { %v1959_v52 = vsel %vm1895_vm6, %v1813_v25, %v1927_v19  ;;  %vm1894_vm7 = vcmp.gt.f32.partialorder %v1808_v40, 0.0  ;;  %v1926_v4 = vmul.f32 0.2, %v1808_v40  ;;  %v1823_v39 = vadd.f32 %v4119_v24, %v6028_v27  ;;  %2674 = vmatprep.mubr.f32.mxu1 %v6197_v21  ;;  %2890 = vmatmul.mubr.f32.gmra.mxu0 %v6200_v28 }
 0x24f   : > { %2046 = vst [vmem:[#allocation2 + $0xf9] sm:$0xff] %v1959_v52  ;;  %v1817_v3 = vpop.f32.mrf.mxu0  ;;  %2894 = vmatprep.mubr.f32.mxu0 %v6171_v62  ;;  %3264 = vmatpush1.msra.mxu0 %v2521_v42  ;;  %v2186_v13 = vrot.slane %v6208_v8, 1  ;;  %v6239_v19 = vsel %vm453_vm1, %v2293_v56, %v2294_v58  ;;  %v2296_v42 = vrot.slane %v6190_v44, 2  ;;  %v6249_v52 = vld [vmem:[#allocation2 + $0x98] sm:$0xff] }
 0x250   : > { %v1958_v27 = vsel %vm1894_vm7, %v1808_v40, %v1926_v4  ;;  %vm1897_vm8 = vcmp.gt.f32.partialorder %v1823_v39, 0.0  ;;  %v1929_v45 = vmul.f32 0.2, %v1823_v39  ;;  %v1818_v34 = vadd.f32 %v1817_v3, %v6024_v35  ;;  %3265 = vmatprep.subr.mxu0 %v6007_v11  ;;  %v2517_v4 = vld [vmem:[#allocation3 + $0x310] sm:$0xff]  ;;  %v2516_v56 = vld [vmem:[#allocation3 + $0x308] sm:$0xff] }
 0x251   : > { %2045 = vst [vmem:[#allocation2 + $0xf1] sm:$0xff] %v1958_v27  ;;  %v4122_v57 = vpop.f32.mrf.mxu0  ;;  %2675 = vmatmul.mubr.f32.gmra.mxu1 %v6169_v49  ;;  %3266 = vmatpush1.msra.mxu0 %v2520_v31  ;;  %v6236_v63 = vsel %vm340_vm0, %v2186_v13, %v2187_v26  ;;  %v2189_v40 = vrot.slane %v6229_v60, 1  ;;  %v6256_v31 = vsel %vm453_vm1, %v2294_v58, %v2296_v42  ;;  %v2298_v13 = vrot.slane %v6208_v8, 2 }
 0x252   : > { %v1961_v1 = vsel %vm1897_vm8, %v1823_v39, %v1929_v45  ;;  %vm1896_vm9 = vcmp.gt.f32.partialorder %v1818_v34, 0.0  ;;  %v1928_v2 = vmul.f32 0.2, %v1818_v34  ;;  %v1833_v35 = vadd.f32 %v4122_v57, %v6036_v37  ;;  %2679 = vmatprep.mubr.f32.mxu1 %v6214_v59  ;;  %2895 = vmatmul.mubr.f32.gmra.mxu0 %v6217_v14 }
 0x253   : > { %2048 = vst [vmem:[#allocation2 + $0x111] sm:$0xff] %v1961_v1  ;;  %v1827_v41 = vpop.f32.mrf.mxu0  ;;  %2899 = vmatprep.mubr.f32.mxu0 %v6208_v8  ;;  %3267 = vmatprep.subr.mxu0 %v6007_v11  ;;  %v6253_v44 = vsel %vm340_vm0, %v2187_v26, %v2189_v40  ;;  %v2192_v57 = vrot.slane %v6249_v52, 1  ;;  %v2299_v26 = vrot.slane %v6210_v23, 2  ;;  %v6268_v1 = vld [vmem:[#allocation2 + $0xa0] sm:$0x3] }
 0x254   : > { %v1960_v55 = vsel %vm1896_vm9, %v1818_v34, %v1928_v2  ;;  %vm1899_vm10 = vcmp.gt.f32.partialorder %v1833_v35, 0.0  ;;  %v1931_v17 = vmul.f32 0.2, %v1833_v35  ;;  %v1828_v25 = vadd.f32 %v1827_v41, %v6032_v7  ;;  %3268 = vmatpush1.msra.mxu0 %v2519_v53 }
 0x255   : > { %2047 = vst [vmem:[#allocation2 + $0x109] sm:$0xff] %v1960_v55  ;;  %v4125_v37 = vpop.f32.mrf.mxu0  ;;  %2680 = vmatmul.mubr.f32.gmra.mxu1 %v6171_v62  ;;  %3269 = vmatprep.subr.mxu0 %v6007_v11  ;;  %v2191_v34 = vrot.slane %v6247_v54, 1  ;;  %v1423_v2 = vadd.f32 %v6067_v38, %v5921_v15  ;;  %v6280_v15 = vsel %vm453_vm1, %v2298_v13, %v2299_v26  ;;  %v2194_v38 = vrot.slane %v6268_v1, 1 }
 0x256   : > { %v1963_v24 = vsel %vm1899_vm10, %v1833_v35, %v1931_v17  ;;  %vm1898_vm11 = vcmp.gt.f32.partialorder %v1828_v25, 0.0  ;;  %v1930_v7 = vmul.f32 0.2, %v1828_v25  ;;  %v1843_v29 = vadd.f32 %v4125_v37, %v6044_v10  ;;  %2684 = vmatprep.mubr.f32.mxu1 %v6236_v63  ;;  %2900 = vmatmul.mubr.f32.gmra.mxu0 %v6239_v19  ;;  %v2515_v17 = vld [vmem:[#allocation3 + $0x300] sm:$0xff] }
 0x257   : > { %2050 = vst [vmem:[#allocation2 + $0x129] sm:$0xff] %v1963_v24  ;;  %v1837_v39 = vpop.f32.mrf.mxu0  ;;  %2904 = vmatprep.mubr.f32.mxu0 %v6210_v23  ;;  %3270 = vmatpush1.msra.mxu0 %v2518_v5  ;;  %v6277_v5 = vsel %vm340_vm0, %v2191_v34, %v2192_v57  ;;  %v2301_v37 = vrot.slane %v6229_v60, 2  ;;  %v6288_v24 = vld [vmem:[#allocation2 + $0xa8] sm:$0xff]  ;;  %v2304_v13 = vrot.slane %v6249_v52, 2 }
 0x258   : > { %v1962_v10 = vsel %vm1898_vm11, %v1828_v25, %v1930_v7  ;;  %vm1901_vm12 = vcmp.gt.f32.partialorder %v1843_v29, 0.0  ;;  %v1933_v3 = vmul.f32 0.2, %v1843_v29  ;;  %v1838_v27 = vadd.f32 %v1837_v39, %v6040_v36  ;;  %3271 = vmatprep.subr.mxu0 %v6007_v11  ;;  %v6290_v7 = vld [vmem:[#allocation2 + $0xb0] sm:$0xff] }
 0x259   : > { %2049 = vst [vmem:[#allocation2 + $0x121] sm:$0xff] %v1962_v10  ;;  %v4128_v45 = vpop.f32.mrf.mxu0  ;;  %2685 = vmatmul.mubr.f32.gmra.mxu1 %v6208_v8  ;;  %3272 = vmatpush1.msra.mxu0 %v2517_v4  ;;  %v1648_v4 = vadd.f32 %v6069_v12, %v1423_v2  ;;  %v6295_v39 = vsel %vm340_vm0, %v2192_v57, %v2194_v38  ;;  %v2197_v34 = vrot.slane %v6290_v7, 1  ;;  %v2303_v57 = vrot.slane %v6247_v54, 2  ;;  %v2543_v38 = vld [vmem:[#allocation3 + $0x3e0] sm:$0xff] }
 0x25a   : > { %v1965_v58 = vsel %vm1901_vm12, %v1843_v29, %v1933_v3  ;;  %vm1900_vm13 = vcmp.gt.f32.partialorder %v1838_v27, 0.0  ;;  %v1932_v53 = vmul.f32 0.2, %v1838_v27  ;;  %v1853_v36 = vadd.f32 %v4128_v45, %v6052_v0  ;;  %2689 = vmatprep.mubr.f32.mxu1 %v6253_v44  ;;  %2905 = vmatmul.mubr.f32.gmra.mxu0 %v6256_v31  ;;  %v2546_v29 = vld [vmem:[#allocation3 + $0x3f8] sm:$0xff] }
 0x25b   : > { %2052 = vst [vmem:[#allocation2 + $0x141] sm:$0xff] %v1965_v58  ;;  %v1847_v35 = vpop.f32.mrf.mxu0  ;;  %2909 = vmatprep.mubr.f32.mxu0 %v6247_v54  ;;  %3273 = vmatprep.subr.mxu0 %v6007_v11  ;;  %v2196_v45 = vrot.slane %v6288_v24, 1 }
 0x25c   : > { %v1964_v41 = vsel %vm1900_vm13, %v1838_v27, %v1932_v53  ;;  %vm1903_vm14 = vcmp.gt.f32.partialorder %v1853_v36, 0.0  ;;  %v1935_v55 = vmul.f32 0.2, %v1853_v36  ;;  %v1848_v0 = vadd.f32 %v1847_v35, %v6048_v20  ;;  %3274 = vmatpush1.msra.mxu0 %v2516_v56  ;;  %v6426_v46 = vld [vmem:[#allocation2 + $0x108] sm:$0xff] }
 0x25d   : > { %2051 = vst [vmem:[#allocation2 + $0x139] sm:$0xff] %v1964_v41  ;;  %v4131_v25 = vpop.f32.mrf.mxu0  ;;  %2690 = vmatmul.mubr.f32.gmra.mxu1 %v6210_v23  ;;  %3275 = vmatprep.subr.mxu0 %v6007_v11  ;;  %7367 = vst [vmem:[#allocation35_spill] sm:$0xff] %v6426_v46 }
 0x25e   : > { %v1967_v40 = vsel %vm1903_vm14, %v1853_v36, %v1935_v55  ;;  %vm1902_vm15 = vcmp.gt.f32.partialorder %v1848_v0, 0.0  ;;  %v1934_v20 = vmul.f32 0.2, %v1848_v0  ;;  %v1863_v42 = vadd.f32 %v4131_v25, %v6060_v47  ;;  %2694 = vmatprep.mubr.f32.mxu1 %v6277_v5  ;;  %2910 = vmatmul.mubr.f32.gmra.mxu0 %v6280_v15  ;;  %v6312_v36 = vld [vmem:[#allocation2] sm:$0xff]  ;;  %v2544_v55 = vld [vmem:[#allocation3 + $0x3e8] sm:$0xff] }
 0x25f   : > { %2054 = vst [vmem:[#allocation2 + $0x159] sm:$0xff] %v1967_v40  ;;  %v1857_v60 = vpop.f32.mrf.mxu0  ;;  %2914 = vmatprep.mubr.f32.mxu0 %v6249_v52  ;;  %v6298_v47 = vsel %vm453_vm1, %v2299_v26, %v2301_v37  ;;  %3276 = vmatpush1.msra.mxu0 %v2515_v17  ;;  %v2545_v26 = vld [vmem:[#allocation3 + $0x3f0] sm:$0xff]  ;;  %7359 = vst [vmem:[#allocation24_spill] sm:$0xff] %v6312_v36  ;;  %v6321_v17 = vsel %vm453_vm1, %v2303_v57, %v2304_v13 }
 0x260   : > { %v1966_v10 = vsel %vm1902_vm15, %v1848_v0, %v1934_v20  ;;  %vm1905_vm2 = vcmp.gt.f32.partialorder %v1863_v42, 0.0  ;;  %v1937_v3 = vmul.f32 0.2, %v1863_v42  ;;  %v1858_v27 = vadd.f32 %v1857_v60, %v6056_v22  ;;  %3277 = vmatprep.subr.mxu0 %v6007_v11  ;;  %v6309_v11 = vld [vmem:[#allocation2 + $0xb8] sm:$0x3]  ;;  %v6328_v20 = vld [vmem:[#allocation2 + $0xc0] sm:$0xff] }
 0x261   : > { %2053 = vst [vmem:[#allocation2 + $0x151] sm:$0xff] %v1966_v10  ;;  %v4134_v12 = vpop.f32.mrf.mxu0  ;;  %2695 = vmatmul.mubr.f32.gmra.mxu1 %v6247_v54  ;;  %3278 = vmatpush2.msra.mxu0 %v2546_v29  ;;  %v6318_v0 = vsel %vm340_vm0, %v2196_v45, %v2197_v34  ;;  %v2199_v25 = vrot.slane %v6309_v11, 1  ;;  %v2085_v45 = vld [vmem:[#allocation2 + $0xd0] sm:$0x3] }
 0x262   : > { %v1969_v56 = vsel %vm1905_vm2, %v1863_v42, %v1937_v3  ;;  %vm1904_vm3 = vcmp.gt.f32.partialorder %v1858_v27, 0.0  ;;  %v1936_v58 = vmul.f32 0.2, %v1858_v27  ;;  %v1873_v22 = vadd.f32 %v4134_v12, %v1648_v4  ;;  %2699 = vmatprep.mubr.f32.mxu1 %v6295_v39  ;;  %2915 = vmatmul.mubr.f32.gmra.mxu0 %v6298_v47  ;;  %v6330_v42 = vld [vmem:[#allocation2 + $0xc8] sm:$0xff] }
 0x263   : > { %2056 = vst [vmem:[#allocation2 + $0x171] sm:$0xff] %v1969_v56  ;;  %v1867_v53 = vpop.f32.mrf.mxu0  ;;  %2919 = vmatprep.mubr.f32.mxu0 %v6288_v24  ;;  %3279 = vmatprep.subr.mxu0 %v6312_v36  ;;  %v6334_v4 = vsel %vm340_vm0, %v2197_v34, %v2199_v25  ;;  %v2202_v10 = vrot.slane %v6330_v42, 1  ;;  %v2308_v3 = vrot.slane %v6288_v24, 2  ;;  %v2542_v12 = vld [vmem:[#allocation3 + $0x3d8] sm:$0xff]  ;;  %v2541_v34 = vld [vmem:[#allocation3 + $0x3d0] sm:$0xff]  ;;  %v2311_v56 = vrot.slane %v6309_v11, 2 }
 0x264   : > { %v1968_v2 = vsel %vm1904_vm3, %v1858_v27, %v1936_v58  ;;  %vm1907_vm4 = vcmp.gt.f32.partialorder %v1873_v22, 0.0  ;;  %v1939_v35 = vmul.f32 0.2, %v1873_v22  ;;  %v1868_v41 = vadd.f32 %v1867_v53, %v6064_v61  ;;  %3280 = vmatpush2.msra.mxu0 %v2545_v26  ;;  %v6360_v58 = vld [vmem:[#allocation2 + $0xd8] sm:$0xff] }
 0x265   : > { %2055 = vst [vmem:[#allocation2 + $0x169] sm:$0xff] %v1968_v2  ;;  %2700 = vmatmul.mubr.f32.gmra.mxu1 %v6249_v52  ;;  %3281 = vmatprep.subr.mxu0 %v6312_v36  ;;  %v2306_v61 = vrot.slane %v6268_v1, 2  ;;  %v2201_v1 = vrot.slane %v6328_v20, 1  ;;  %v2309_v27 = vrot.slane %v6290_v7, 2  ;;  %v2204_v26 = vrot.slane %v2085_v45, 1  ;;  %v2540_v53 = vld [vmem:[#allocation3 + $0x3c8] sm:$0xff] }
 0x266   : > { %v1971_v37 = vsel %vm1907_vm4, %v1873_v22, %v1939_v35  ;;  %vm1906_vm5 = vcmp.gt.f32.partialorder %v1868_v41, 0.0  ;;  %v1938_v40 = vmul.f32 0.2, %v1868_v41  ;;  %2704 = vmatprep.mubr.f32.mxu1 %v6318_v0  ;;  %2920 = vmatmul.mubr.f32.gmra.mxu0 %v6321_v17  ;;  %v6362_v22 = vld [vmem:[#allocation2 + $0xe0] sm:$0xff]  ;;  %v2206_v11 = vrot.slane %v6360_v58, 1 }
 0x267   : > { %2058 = vst [vmem:[#allocation2 + $0x189] sm:$0xff] %v1971_v37  ;;  %2924 = vmatprep.mubr.f32.mxu0 %v6290_v7  ;;  %3282 = vmatpush2.msra.mxu0 %v2544_v55  ;;  %v6337_v60 = vsel %vm453_vm1, %v2304_v13, %v2306_v61  ;;  %v6351_v57 = vsel %vm340_vm0, %v2201_v1, %v2202_v10  ;;  %7360 = vst [vmem:[#allocation34_spill] sm:$0xff] %v6362_v22  ;;  %v2207_v55 = vrot.slane %v6362_v22, 1  ;;  %v2539_v37 = vld [vmem:[#allocation3 + $0x3c0] sm:$0xff]  ;;  %v2088_v61 = vld [vmem:[#allocation2 + $0xe8] sm:$0x3] }
 0x268   : > { %v1970_v29 = vsel %vm1906_vm5, %v1868_v41, %v1938_v40  ;;  %3283 = vmatprep.subr.mxu0 %v6312_v36  ;;  %v6354_v13 = vsel %vm453_vm1, %v2308_v3, %v2309_v27  ;;  %v6366_v2 = vsel %vm340_vm0, %v2202_v10, %v2204_v26  ;;  %v6369_v35 = vsel %vm453_vm1, %v2309_v27, %v2311_v56  ;;  %v6397_v26 = vld [vmem:[#allocation2 + $0xf8] sm:$0xff]  ;;  %v2537_v56 = vld [vmem:[#allocation3 + $0x3b0] sm:$0xff] }
 0x269   : > { %2057 = vst [vmem:[#allocation2 + $0x181] sm:$0xff] %v1970_v29  ;;  %2705 = vmatmul.mubr.f32.gmra.mxu1 %v6288_v24  ;;  %3284 = vmatpush2.msra.mxu0 %v2543_v38  ;;  %v2313_v25 = vrot.slane %v6328_v20, 2  ;;  %v2314_v38 = vrot.slane %v6330_v42, 2  ;;  %v2538_v29 = vld [vmem:[#allocation3 + $0x3b8] sm:$0xff]  ;;  %v6387_v10 = vsel %vm340_vm0, %v2206_v11, %v2207_v55  ;;  %v2209_v27 = vrot.slane %v2088_v61, 1  ;;  %7364 = vst [vmem:[#allocation40_spill] sm:$0xff] %v6397_v26 }
 0x26a   : > { %2709 = vmatprep.mubr.f32.mxu1 %v6334_v4  ;;  %2925 = vmatmul.mubr.f32.gmra.mxu0 %v6337_v60  ;;  %v2321_v6 = vrot.slane %v2088_v61, 2  ;;  %v2216_v61 = vrot.slane %v6426_v46, 1 }
 0x26b   : > { %2929 = vmatprep.mubr.f32.mxu0 %v6328_v20  ;;  %3285 = vmatprep.subr.mxu0 %v6312_v36  ;;  %v6390_v3 = vsel %vm453_vm1, %v2313_v25, %v2314_v38  ;;  %v6401_v11 = vsel %vm340_vm0, %v2207_v55, %v2209_v27  ;;  %v2091_v55 = vld [vmem:[#allocation2 + $0x100] sm:$0x3] }
 0x26c   : > { %3286 = vmatpush2.msra.mxu0 %v2542_v12  ;;  %v6372_v41 = vpop.f32.mrf.mxu1  ;;  %v2316_v12 = vrot.slane %v2085_v45, 2  ;;  %7365 = vst [vmem:[#allocation36_spill] sm:$0xff] %v6401_v11 }
 0x26d   : > { %2710 = vmatmul.mubr.f32.gmra.mxu1 %v6290_v7  ;;  %3287 = vmatprep.subr.mxu0 %v6312_v36  ;;  %7361 = vst [vmem:[#allocation30_spill] sm:$0xff] %v6372_v41 }
 0x26e   : > { %2714 = vmatprep.mubr.f32.mxu1 %v6351_v57  ;;  %2930 = vmatmul.mubr.f32.gmra.mxu0 %v6354_v13  ;;  %v2638_v40 = vpop.f32.mrf.mxu1  ;;  %v6404_v25 = vsel %vm453_vm1, %v2314_v38, %v2316_v12  ;;  %v2535_v38 = vld [vmem:[#allocation3 + $0x3a0] sm:$0xff] }
 0x26f   : > { %2934 = vmatprep.mubr.f32.mxu0 %v6330_v42  ;;  %3288 = vmatpush2.msra.mxu0 %v2541_v34  ;;  %v6395_v34 = vld [vmem:[#allocation2 + $0xf0] sm:$0xff]  ;;  %v2318_v40 = vrot.slane %v6360_v58, 2 }
 0x270   : > { %3289 = vmatprep.subr.mxu0 %v6312_v36  ;;  %v6383_v1 = vpop.f32.mrf.mxu1  ;;  %7363 = vst [vmem:[#allocation29_spill] sm:$0xff] %v6395_v34  ;;  %v2211_v45 = vrot.slane %v6395_v34, 1 }
 0x271   : > { %2715 = vmatmul.mubr.f32.gmra.mxu1 %v6328_v20  ;;  %3290 = vmatpush2.msra.mxu0 %v2540_v53  ;;  %7362 = vst [vmem:[#allocation38_spill] sm:$0xff] %v6383_v1  ;;  %v2534_v1 = vld [vmem:[#allocation3 + $0x398] sm:$0xff] }
 0x272   : > { %2719 = vmatprep.mubr.f32.mxu1 %v6366_v2  ;;  %2935 = vmatmul.mubr.f32.gmra.mxu0 %v6369_v35  ;;  %v2643_v53 = vpop.f32.mrf.mxu1 }
 0x273   : > { %2939 = vmatprep.mubr.f32.mxu0 %v6360_v58  ;;  %3291 = vmatprep.subr.mxu0 %v6312_v36  ;;  %v2319_v53 = vrot.slane %v6362_v22, 2 }
 0x274   : > { %3292 = vmatpush2.msra.mxu0 %v2539_v37  ;;  %v2212_v37 = vrot.slane %v6397_v26, 1 }
 0x275   : > { %2720 = vmatmul.mubr.f32.gmra.mxu1 %v6330_v42  ;;  %3293 = vmatprep.subr.mxu0 %v6312_v36  ;;  %v6421_v12 = vsel %vm453_vm1, %v2318_v40, %v2319_v53  ;;  %v6435_v40 = vsel %vm453_vm1, %v2319_v53, %v2321_v6  ;;  %v2094_v6 = vld [vmem:[#allocation2 + $0x118] sm:$0x3] }
 0x276   : > { %2724 = vmatprep.mubr.f32.mxu1 %v6387_v10  ;;  %2940 = vmatmul.mubr.f32.gmra.mxu0 %v6390_v3  ;;  %v6418_v27 = vsel %vm340_vm0, %v2211_v45, %v2212_v37  ;;  %7370 = vst [vmem:[#allocation49_spill] sm:$0xff] %v6435_v40 }
 0x277   : > { %2944 = vmatprep.mubr.f32.mxu0 %v6362_v22  ;;  %3294 = vmatpush2.msra.mxu0 %v2538_v29  ;;  %v2536_v29 = vld [vmem:[#allocation3 + $0x3a8] sm:$0xff]  ;;  %7366 = vst [vmem:[#allocation44_spill] sm:$0xff] %v6418_v27 }
 0x278   : > { %3295 = vmatprep.subr.mxu0 %v6312_v36 }
 0x279   : > { %2725 = vmatmul.mubr.f32.gmra.mxu1 %v6360_v58  ;;  %3296 = vmatpush2.msra.mxu0 %v2537_v56  ;;  %v2214_v56 = vrot.slane %v2091_v55, 1 }
 0x27a   : > { %2729 = vmatprep.mubr.f32.mxu1 %v6401_v11  ;;  %2945 = vmatmul.mubr.f32.gmra.mxu0 %v6404_v25 }
 0x27b   : > { %2949 = vmatprep.mubr.f32.mxu0 %v6395_v34  ;;  %3297 = vmatprep.subr.mxu0 %v6312_v36  ;;  %v6432_v45 = vsel %vm340_vm0, %v2212_v37, %v2214_v56  ;;  %v2532_v37 = vld [vmem:[#allocation3 + $0x388] sm:$0xff] }
 0x27c   : > { %3298 = vmatpush2.msra.mxu0 %v2536_v29  ;;  %v6428_v29 = vld [vmem:[#allocation2 + $0x110] sm:$0xff]  ;;  %7369 = vst [vmem:[#allocation42_spill] sm:$0xff] %v6432_v45 }
 0x27d   : > { %2730 = vmatmul.mubr.f32.gmra.mxu1 %v6362_v22  ;;  %3299 = vmatprep.subr.mxu0 %v6312_v36  ;;  %7368 = vst [vmem:[#allocation46_spill] sm:$0xff] %v6428_v29  ;;  %v2217_v41 = vrot.slane %v6428_v29, 1  ;;  %v2324_v22 = vrot.slane %v6397_v26, 2  ;;  %v2329_v11 = vrot.slane %v6428_v29, 2 }
 0x27e   : > { %2734 = vmatprep.mubr.f32.mxu1 %v6418_v27  ;;  %2950 = vmatmul.mubr.f32.gmra.mxu0 %v6421_v12  ;;  %v2323_v27 = vrot.slane %v6395_v34, 2 }
 0x27f   : > { %2954 = vmatprep.mubr.f32.mxu0 %v6397_v26  ;;  %3300 = vmatpush2.msra.mxu0 %v2535_v38  ;;  %v2533_v38 = vld [vmem:[#allocation3 + $0x390] sm:$0xff]  ;;  %v6449_v53 = vsel %vm340_vm0, %v2216_v61, %v2217_v41 }
 0x280   : > { %3301 = vmatprep.subr.mxu0 %v6312_v36  ;;  %7371 = vst [vmem:[#allocation41_spill] sm:$0xff] %v6449_v53  ;;  %v6452_v56 = vsel %vm453_vm1, %v2323_v27, %v2324_v22 }
 0x281   : > { %2735 = vmatmul.mubr.f32.gmra.mxu1 %v6395_v34  ;;  %3302 = vmatpush2.msra.mxu0 %v2534_v1  ;;  %7372 = vst [vmem:[#allocation51_spill] sm:$0xff] %v6452_v56  ;;  %v6454_v1 = vld [vmem:[#allocation2 + $0x120] sm:$0xff]  ;;  %v6459_v34 = vld [vmem:[#allocation2 + $0x128] sm:$0xff] }
 0x282   : > { %2739 = vmatprep.mubr.f32.mxu1 %v6432_v45  ;;  %2955 = vmatmul.mubr.f32.gmra.mxu0 %v6435_v40  ;;  %7373 = vst [vmem:[#allocation47_spill] sm:$0xff] %v6454_v1  ;;  %v2219_v45 = vrot.slane %v2094_v6, 1  ;;  %7374 = vst [vmem:[#allocation55_spill] sm:$0xff] %v6459_v34  ;;  %v2221_v27 = vrot.slane %v6454_v1, 1  ;;  %v2328_v40 = vrot.slane %v6426_v46, 2 }
 0x283   : > { %2959 = vmatprep.mubr.f32.mxu0 %v6426_v46  ;;  %3303 = vmatprep.subr.mxu0 %v6312_v36 }
 0x284   : > { %3304 = vmatpush2.msra.mxu0 %v2533_v38  ;;  %v2531_v38 = vld [vmem:[#allocation3 + $0x380] sm:$0xff]  ;;  %v6463_v61 = vsel %vm340_vm0, %v2217_v41, %v2219_v45  ;;  %v6486_v45 = vld [vmem:[#allocation2 + $0x140] sm:$0xff] }
 0x285   : > { %2740 = vmatmul.mubr.f32.gmra.mxu1 %v6397_v26  ;;  %3305 = vmatprep.subr.mxu0 %v6312_v36  ;;  %v2326_v26 = vrot.slane %v2091_v55, 2  ;;  %7375 = vst [vmem:[#allocation57_spill] sm:$0xff] %v6463_v61  ;;  %v2097_v41 = vld [vmem:[#allocation2 + $0x130] sm:$0x3]  ;;  %7378 = vst [vmem:[#allocation52_spill] sm:$0xff] %v6486_v45 }
 0x286   : > { %2744 = vmatprep.mubr.f32.mxu1 %v6449_v53  ;;  %2960 = vmatmul.mubr.f32.gmra.mxu0 %v6452_v56  ;;  %v2222_v56 = vrot.slane %v6459_v34, 1 }
 0x287   : > { %2964 = vmatprep.mubr.f32.mxu0 %v6428_v29  ;;  %3306 = vmatpush2.msra.mxu0 %v2532_v37  ;;  %v6469_v53 = vsel %vm453_vm1, %v2324_v22, %v2326_v26  ;;  %v6482_v22 = vsel %vm453_vm1, %v2328_v40, %v2329_v11  ;;  %v6484_v26 = vld [vmem:[#allocation2 + $0x138] sm:$0xff]  ;;  %v2224_v37 = vrot.slane %v2097_v41, 1 }
 0x288   : > { %3307 = vmatprep.subr.mxu0 %v6312_v36  ;;  %v6479_v55 = vsel %vm340_vm0, %v2221_v27, %v2222_v56  ;;  %7377 = vst [vmem:[#allocation59_spill] sm:$0xff] %v6484_v26  ;;  %v2226_v36 = vrot.slane %v6484_v26, 1  ;;  %v2227_v27 = vrot.slane %v6486_v45, 1 }
 0x289   : > { %2745 = vmatmul.mubr.f32.gmra.mxu1 %v6426_v46  ;;  %3308 = vmatpush2.msra.mxu0 %v2531_v38  ;;  %7376 = vst [vmem:[#allocation53_spill] sm:$0xff] %v6479_v55  ;;  %v2331_v38 = vrot.slane %v2094_v6, 2  ;;  %v6495_v40 = vsel %vm340_vm0, %v2222_v56, %v2224_v37  ;;  %v2100_v6 = vld [vmem:[#allocation2 + $0x148] sm:$0x3]  ;;  %v6514_v37 = vld [vmem:[#allocation2 + $0x158] sm:$0xff] }
 0x28a   : > { %2749 = vmatprep.mubr.f32.mxu1 %v6463_v61  ;;  %2965 = vmatmul.mubr.f32.gmra.mxu0 %v6469_v53  ;;  %7379 = vst [vmem:[#allocation61_spill] sm:$0xff] %v6495_v40  ;;  %v2334_v61 = vrot.slane %v6459_v34, 2  ;;  %v6507_v46 = vsel %vm340_vm0, %v2226_v36, %v2227_v27  ;;  %7383 = vst [vmem:[#allocation65_spill] sm:$0xff] %v6514_v37  ;;  %v2232_v36 = vrot.slane %v6514_v37, 1 }
 0x28b   : > { %2969 = vmatprep.mubr.f32.mxu0 %v6454_v1  ;;  %7381 = vst [vmem:[#allocation63_spill] sm:$0xff] %v6507_v46 }
 0x28d   : > { %2750 = vmatmul.mubr.f32.gmra.mxu1 %v6428_v29  ;;  %v6498_v29 = vsel %vm453_vm1, %v2329_v11, %v2331_v38  ;;  %v6512_v11 = vld [vmem:[#allocation2 + $0x150] sm:$0xff]  ;;  %v2229_v38 = vrot.slane %v2100_v6, 1 }
 0x28e   : > { %2754 = vmatprep.mubr.f32.mxu1 %v6479_v55  ;;  %2970 = vmatmul.mubr.f32.gmra.mxu0 %v6482_v22  ;;  %7380 = vst [vmem:[#allocation25_spill] sm:$0xff] %v6498_v29  ;;  %v2333_v55 = vrot.slane %v6454_v1, 2 }
 0x28f   : > { %2974 = vmatprep.mubr.f32.mxu0 %v6459_v34 }
 0x290   : > { %v6510_v56 = vsel %vm453_vm1, %v2333_v55, %v2334_v61  ;;  %v6523_v55 = vsel %vm340_vm0, %v2227_v27, %v2229_v38 }
 0x291   : > { %2755 = vmatmul.mubr.f32.gmra.mxu1 %v6454_v1  ;;  %7382 = vst [vmem:[#allocation64_spill] sm:$0xff] %v6510_v56  ;;  %7384 = vst [vmem:[#allocation66_spill] sm:$0xff] %v6523_v55 }
 0x292   : > { %2759 = vmatprep.mubr.f32.mxu1 %v6495_v40  ;;  %2975 = vmatmul.mubr.f32.gmra.mxu0 %v6498_v29  ;;  %v2336_v40 = vrot.slane %v2097_v41, 2  ;;  %v2103_v41 = vld [vmem:[#allocation2 + $0x160] sm:$0x3] }
 0x293   : > { %2979 = vmatprep.mubr.f32.mxu0 %v6484_v26  ;;  %v2234_v38 = vrot.slane %v2103_v41, 1 }
 0x294   : > { %v6526_v1 = vsel %vm453_vm1, %v2334_v61, %v2336_v40  ;;  %v6540_v61 = vld [vmem:[#allocation2 + $0x168] sm:$0xff]  ;;  %v6542_v40 = vld [vmem:[#allocation2 + $0x170] sm:$0xff] }
 0x295   : > { %2760 = vmatmul.mubr.f32.gmra.mxu1 %v6459_v34  ;;  %v2231_v34 = vrot.slane %v6512_v11, 1  ;;  %7385 = vst [vmem:[#allocation67_spill] sm:$0xff] %v6526_v1 }
 0x296   : > { %2764 = vmatprep.mubr.f32.mxu1 %v6507_v46  ;;  %2980 = vmatmul.mubr.f32.gmra.mxu0 %v6510_v56  ;;  %v2338_v46 = vrot.slane %v6484_v26, 2  ;;  %v2339_v56 = vrot.slane %v6486_v45, 2 }
 0x297   : > { %2984 = vmatprep.mubr.f32.mxu0 %v6486_v45  ;;  %v6535_v29 = vsel %vm340_vm0, %v2231_v34, %v2232_v36  ;;  %v2237_v34 = vrot.slane %v6542_v40, 1 }
 0x298   : > { %7386 = vst [vmem:[#allocation68_spill] sm:$0xff] %v6535_v29  ;;  %v6538_v27 = vsel %vm453_vm1, %v2338_v46, %v2339_v56  ;;  %v6551_v46 = vsel %vm340_vm0, %v2232_v36, %v2234_v38 }
 0x299   : > { %2765 = vmatmul.mubr.f32.gmra.mxu1 %v6484_v26  ;;  %7387 = vst [vmem:[#allocation69_spill] sm:$0xff] %v6538_v27 }
 0x29a   : > { %2769 = vmatprep.mubr.f32.mxu1 %v6523_v55  ;;  %2985 = vmatmul.mubr.f32.gmra.mxu0 %v6526_v1  ;;  %v2341_v55 = vrot.slane %v2100_v6, 2  ;;  %v2106_v6 = vld [vmem:[#allocation2 + $0x178] sm:$0x3] }
 0x29b   : > { %2989 = vmatprep.mubr.f32.mxu0 %v6512_v11 }
 0x29c   : > { %v6554_v26 = vsel %vm453_vm1, %v2339_v56, %v2341_v55  ;;  %v2239_v56 = vrot.slane %v2106_v6, 1  ;;  %v2346_v55 = vrot.slane %v2103_v41, 2 }
 0x29d   : > { %2770 = vmatmul.mubr.f32.gmra.mxu1 %v6486_v45  ;;  %v2236_v45 = vrot.slane %v6540_v61, 1 }
 0x29e   : > { %2774 = vmatprep.mubr.f32.mxu1 %v6535_v29  ;;  %2990 = vmatmul.mubr.f32.gmra.mxu0 %v6538_v27  ;;  %v2343_v29 = vrot.slane %v6512_v11, 2  ;;  %v2344_v27 = vrot.slane %v6514_v37, 2  ;;  %v6573_v38 = vsel %vm340_vm0, %v2237_v34, %v2239_v56 }
 0x29f   : > { %2994 = vmatprep.mubr.f32.mxu0 %v6514_v37  ;;  %v6563_v1 = vsel %vm340_vm0, %v2236_v45, %v2237_v34  ;;  %v2348_v45 = vrot.slane %v6540_v61, 2  ;;  %v2351_v34 = vrot.slane %v2106_v6, 2  ;;  %v4277_v6 = vld [vmem:[#allocation2 + $0x30] sm:$0xff] }
 0x2a0   : > { %7388 = vst [vmem:[#allocation70_spill] sm:$0xff] %v6563_v1  ;;  %v6566_v36 = vsel %vm453_vm1, %v2343_v29, %v2344_v27  ;;  %v2349_v29 = vrot.slane %v6542_v40, 2 }
 0x2a1   : > { %2775 = vmatmul.mubr.f32.gmra.mxu1 %v6512_v11 }
 0x2a2   : > { %2779 = vmatprep.mubr.f32.mxu1 %v6551_v46  ;;  %2995 = vmatmul.mubr.f32.gmra.mxu0 %v6554_v26  ;;  %v6587_v41 = vsel %vm453_vm1, %v2348_v45, %v2349_v29  ;;  %v6596_v56 = vsel %vm453_vm1, %v2349_v29, %v2351_v34  ;;  %v4276_v45 = vld [vmem:[#allocation3 + $0x478] sm:$0xff]  ;;  %v4280_v34 = vld [vmem:[#allocation2 + $0x50] sm:$0xff] }
 0x2a3   : > { %2999 = vmatprep.mubr.f32.mxu0 %v6540_v61  ;;  %v4279_v29 = vld [vmem:[#allocation2 + $0x48] sm:$0xff] }
 0x2a5   : > { %2780 = vmatmul.mubr.f32.gmra.mxu1 %v6514_v37  ;;  %v6576_v37 = vsel %vm453_vm1, %v2344_v27, %v2346_v55  ;;  %v6591_v27 = vld [vmem:[#allocation2 + $0x188] sm:$0xff]  ;;  %v2561_v55 = vld [vmem:[#allocation3 + $0x470] sm:$0xff] }
 0x2a6   : > { %2784 = vmatprep.mubr.f32.mxu1 %v6563_v1  ;;  %3000 = vmatmul.mubr.f32.gmra.mxu0 %v6566_v36  ;;  %v6582_v1 = vld [vmem:[#allocation2 + $0x180] sm:$0xff] }
 0x2a7   : > { %3004 = vmatprep.mubr.f32.mxu0 %v6542_v40 }
 0x2a9   : > { %2785 = vmatmul.mubr.f32.gmra.mxu1 %v6540_v61 }
 0x2aa   : > { %2789 = vmatprep.mubr.f32.mxu1 %v6573_v38  ;;  %3005 = vmatmul.mubr.f32.gmra.mxu0 %v6576_v37 }
 0x2ab   : > { %3009 = vmatprep.mubr.f32.mxu0 %v6582_v1 }
 0x2ad   : > { %2790 = vmatmul.mubr.f32.gmra.mxu1 %v6542_v40 }
 0x2ae   : > { %3010 = vmatmul.mubr.f32.gmra.mxu0 %v6587_v41  ;;  %3084 = vmatprep.mubr.f32.mxu1 %v6122_v50  ;;  %v2560_v50 = vld [vmem:[#allocation3 + $0x468] sm:$0xff] }
 0x2af   : > { %3014 = vmatprep.mubr.f32.mxu0 %v6591_v27 }
 0x2b1   : > { %3085 = vmatmul.mubr.f32.vlgmr.msra.gmra.mxu1 %v6092_v51  ;;  %v2559_v51 = vld [vmem:[#allocation3 + $0x460] sm:$0xff] }
 0x2b2   : > { %3015 = vmatmul.mubr.f32.gmra.mxu0 %v6596_v56  ;;  %3089 = vmatprep.mubr.f32.mxu1 %v6136_v33  ;;  %v4278_v33 = vld [vmem:[#allocation2 + $0x38] sm:$0xff] }
 0x2b3   : > { %4136 = vmatpush3.msra.mxu1 %v4276_v45  ;;  %3309 = vmatprep.mubr.f32.mxu0 %v6119_v48 }
 0x2b4   : > { %4137 = vmatprep.subr.mxu1 %v2561_v55 }
 0x2b5   : > { %3090 = vmatmul.mubr.f32.gmra.mxu1 %v6105_v16  ;;  %v2558_v16 = vld [vmem:[#allocation3 + $0x458] sm:$0xff] }
 0x2b6   : > { %3094 = vmatprep.mubr.f32.mxu1 %v6161_v30  ;;  %3310 = vmatmul.mubr.f32.vlgmr.msra.gmra.mxu0 %v4277_v6 }
 0x2b7   : > { %3314 = vmatprep.mubr.f32.mxu0 %v6143_v18  ;;  %4138 = vmatpush3.msra.mxu1 %v2561_v55 }
 0x2b8   : > { %4139 = vmatprep.subr.mxu1 %v2560_v50 }
 0x2b9   : > { %3095 = vmatmul.mubr.f32.gmra.mxu1 %v6119_v48  ;;  %v2557_v48 = vld [vmem:[#allocation3 + $0x450] sm:$0xff] }
 0x2ba   : > { %3099 = vmatprep.mubr.f32.mxu1 %v6178_v32  ;;  %3315 = vmatmul.mubr.f32.gmra.mxu0 %v4278_v33  ;;  %v7399_v33 = vld [vmem:[#allocation41_spill] sm:$0xff] }
 0x2bb   : > { %3319 = vmatprep.mubr.f32.mxu0 %v6158_v9  ;;  %4140 = vmatpush3.msra.mxu1 %v2560_v50  ;;  %v7398_v50 = vld [vmem:[#allocation40_spill] sm:$0xff] }
 0x2bc   : > { %4141 = vmatprep.subr.mxu1 %v2559_v51 }
 0x2bd   : > { %3100 = vmatmul.mubr.f32.gmra.mxu1 %v6143_v18  ;;  %v2556_v18 = vld [vmem:[#allocation3 + $0x448] sm:$0xff] }
 0x2be   : > { %3104 = vmatprep.mubr.f32.mxu1 %v6200_v28  ;;  %3320 = vmatmul.mubr.f32.gmra.mxu0 %v4279_v29 }
 0x2bf   : > { %3324 = vmatprep.mubr.f32.mxu0 %v6175_v43  ;;  %4142 = vmatpush3.msra.mxu1 %v2559_v51 }
 0x2c0   : > { %4143 = vmatprep.subr.mxu1 %v2558_v16 }
 0x2c1   : > { %3105 = vmatmul.mubr.f32.gmra.mxu1 %v6158_v9  ;;  %v2555_v9 = vld [vmem:[#allocation3 + $0x440] sm:$0xff] }
 0x2c2   : > { %3109 = vmatprep.mubr.f32.mxu1 %v6217_v14  ;;  %3325 = vmatmul.mubr.f32.gmra.mxu0 %v4280_v34 }
 0x2c3   : > { %3329 = vmatprep.mubr.f32.mxu0 %v6197_v21  ;;  %4144 = vmatpush3.msra.mxu1 %v2558_v16 }
 0x2c4   : > { %4145 = vmatprep.subr.mxu1 %v2557_v48 }
 0x2c5   : > { %3110 = vmatmul.mubr.f32.gmra.mxu1 %v6175_v43  ;;  %v2554_v43 = vld [vmem:[#allocation3 + $0x438] sm:$0xff] }
 0x2c6   : > { %3114 = vmatprep.mubr.f32.mxu1 %v6239_v19  ;;  %3330 = vmatmul.mubr.f32.gmra.mxu0 %v6169_v49  ;;  %v2553_v49 = vld [vmem:[#allocation3 + $0x430] sm:$0xff] }
 0x2c7   : > { %3334 = vmatprep.mubr.f32.mxu0 %v6214_v59  ;;  %4146 = vmatpush3.msra.mxu1 %v2557_v48 }
 0x2c8   : > { %4147 = vmatprep.subr.mxu1 %v2556_v18 }
 0x2c9   : > { %3115 = vmatmul.mubr.f32.gmra.mxu1 %v6197_v21  ;;  %v2551_v21 = vld [vmem:[#allocation3 + $0x420] sm:$0xff] }
 0x2ca   : > { %3119 = vmatprep.mubr.f32.mxu1 %v6256_v31  ;;  %3335 = vmatmul.mubr.f32.gmra.mxu0 %v6171_v62  ;;  %v2552_v62 = vld [vmem:[#allocation3 + $0x428] sm:$0xff] }
 0x2cb   : > { %3339 = vmatprep.mubr.f32.mxu0 %v6236_v63  ;;  %4148 = vmatpush3.msra.mxu1 %v2556_v18  ;;  %v7400_v18 = vld [vmem:[#allocation35_spill] sm:$0xff] }
 0x2cc   : > { %4149 = vmatprep.subr.mxu1 %v2555_v9 }
 0x2cd   : > { %3120 = vmatmul.mubr.f32.gmra.mxu1 %v6214_v59  ;;  %v2548_v59 = vld [vmem:[#allocation3 + $0x408] sm:$0xff] }
 0x2ce   : > { %3124 = vmatprep.mubr.f32.mxu1 %v6280_v15  ;;  %3340 = vmatmul.mubr.f32.gmra.mxu0 %v6208_v8  ;;  %v2550_v8 = vld [vmem:[#allocation3 + $0x418] sm:$0xff] }
 0x2cf   : > { %3344 = vmatprep.mubr.f32.mxu0 %v6253_v44  ;;  %4150 = vmatpush3.msra.mxu1 %v2555_v9 }
 0x2d0   : > { %4151 = vmatprep.subr.mxu1 %v2554_v43 }
 0x2d1   : > { %3125 = vmatmul.mubr.f32.gmra.mxu1 %v6236_v63  ;;  %v2547_v63 = vld [vmem:[#allocation3 + $0x400] sm:$0xff] }
 0x2d2   : > { %3129 = vmatprep.mubr.f32.mxu1 %v6298_v47  ;;  %3345 = vmatmul.mubr.f32.gmra.mxu0 %v6210_v23  ;;  %v2549_v23 = vld [vmem:[#allocation3 + $0x410] sm:$0xff] }
 0x2d3   : > { %3349 = vmatprep.mubr.f32.mxu0 %v6277_v5  ;;  %4152 = vmatpush3.msra.mxu1 %v2554_v43 }
 0x2d4   : > { %4153 = vmatprep.subr.mxu1 %v2553_v49 }
 0x2d5   : > { %3130 = vmatmul.mubr.f32.gmra.mxu1 %v6253_v44  ;;  %v7390_v44 = vld [vmem:[#allocation49_spill] sm:$0xff] }
 0x2d6   : > { %3134 = vmatprep.mubr.f32.mxu1 %v6321_v17  ;;  %3350 = vmatmul.mubr.f32.gmra.mxu0 %v6247_v54  ;;  %v7389_v54 = vld [vmem:[#allocation36_spill] sm:$0xff] }
 0x2d7   : > { %3354 = vmatprep.mubr.f32.mxu0 %v6295_v39  ;;  %4154 = vmatpush3.msra.mxu1 %v2553_v49  ;;  %v7401_v49 = vld [vmem:[#allocation57_spill] sm:$0xff] }
 0x2d8   : > { %4155 = vmatprep.subr.mxu1 %v2552_v62 }
 0x2d9   : > { %3135 = vmatmul.mubr.f32.gmra.mxu1 %v6277_v5  ;;  %v7391_v5 = vld [vmem:[#allocation34_spill] sm:$0xff] }
 0x2da   : > { %3139 = vmatprep.mubr.f32.mxu1 %v6337_v60  ;;  %3355 = vmatmul.mubr.f32.gmra.mxu0 %v6249_v52  ;;  %v6661_v52 = vld [vmem:[%s7128_s4] ss:$0 sm:$0xff] }
 0x2db   : > { %3359 = vmatprep.mubr.f32.mxu0 %v6318_v0  ;;  %4156 = vmatpush3.msra.mxu1 %v2552_v62 }
 0x2dc   : > { %4157 = vmatprep.subr.mxu1 %v2551_v21 }
 0x2dd   : > { %3140 = vmatmul.mubr.f32.gmra.mxu1 %v6295_v39 }
 0x2de   : > { %3144 = vmatprep.mubr.f32.mxu1 %v6354_v13  ;;  %3360 = vmatmul.mubr.f32.gmra.mxu0 %v6288_v24  ;;  %v7392_v24 = vld [vmem:[#allocation44_spill] sm:$0xff] }
 0x2df   : > { %3364 = vmatprep.mubr.f32.mxu0 %v6334_v4  ;;  %4158 = vmatpush3.msra.mxu1 %v2551_v21 }
 0x2e0   : > { %4159 = vmatprep.subr.mxu1 %v2550_v8 }
 0x2e1   : > { %3145 = vmatmul.mubr.f32.gmra.mxu1 %v6318_v0 }
 0x2e2   : > { %3149 = vmatprep.mubr.f32.mxu1 %v6369_v35  ;;  %3365 = vmatmul.mubr.f32.gmra.mxu0 %v6290_v7  ;;  %v7393_v7 = vld [vmem:[#allocation30_spill] sm:$0xff] }
 0x2e3   : > { %3369 = vmatprep.mubr.f32.mxu0 %v6351_v57  ;;  %4160 = vmatpush3.msra.mxu1 %v2550_v8  ;;  %v2637_v39 = vadd.f32 %v6661_v52, %v7393_v7 }
 0x2e4   : > { %4161 = vmatprep.subr.mxu1 %v2549_v23 }
 0x2e5   : > { %3150 = vmatmul.mubr.f32.gmra.mxu1 %v6334_v4 }
 0x2e6   : > { %3154 = vmatprep.mubr.f32.mxu1 %v6390_v3  ;;  %3370 = vmatmul.mubr.f32.gmra.mxu0 %v6328_v20  ;;  %v7394_v20 = vld [vmem:[#allocation51_spill] sm:$0xff] }
 0x2e7   : > { %3374 = vmatprep.mubr.f32.mxu0 %v6366_v2  ;;  %4162 = vmatpush3.msra.mxu1 %v2549_v23 }
 0x2e8   : > { %4163 = vmatprep.subr.mxu1 %v2548_v59 }
 0x2e9   : > { %3155 = vmatmul.mubr.f32.gmra.mxu1 %v6351_v57  ;;  %v7396_v57 = vld [vmem:[#allocation42_spill] sm:$0xff] }
 0x2ea   : > { %3159 = vmatprep.mubr.f32.mxu1 %v6404_v25  ;;  %3375 = vmatmul.mubr.f32.gmra.mxu0 %v6330_v42  ;;  %v7395_v42 = vld [vmem:[#allocation29_spill] sm:$0xff] }
 0x2eb   : > { %3379 = vmatprep.mubr.f32.mxu0 %v6387_v10  ;;  %4164 = vmatpush3.msra.mxu1 %v2548_v59  ;;  %v7402_v59 = vld [vmem:[#allocation25_spill] sm:$0xff] }
 0x2ec   : > { %4165 = vmatprep.subr.mxu1 %v2547_v63 }
 0x2ed   : > { %3160 = vmatmul.mubr.f32.gmra.mxu1 %v6366_v2  ;;  %v7397_v2 = vld [vmem:[#allocation38_spill] sm:$0xff] }
 0x2ee   : > { %3164 = vmatprep.mubr.f32.mxu1 %v6421_v12  ;;  %3380 = vmatmul.mubr.f32.gmra.mxu0 %v6360_v58 }
 0x2ef   : > { %3384 = vmatprep.mubr.f32.mxu0 %v7389_v54  ;;  %4166 = vmatpush3.msra.mxu1 %v2547_v63  ;;  %v7403_v63 = vld [vmem:[#allocation46_spill] sm:$0xff] }
 0x2f1   : > { %3165 = vmatmul.mubr.f32.gmra.mxu1 %v6387_v10  ;;  %v2642_v10 = vadd.f32 %v6661_v52, %v7397_v2 }
 0x2f2   : > { %3169 = vmatprep.mubr.f32.mxu1 %v7390_v44  ;;  %3385 = vmatmul.mubr.f32.gmra.mxu0 %v7391_v5 }
 0x2f3   : > { %3389 = vmatprep.mubr.f32.mxu0 %v7392_v24 }
 0x2f5   : > { %3170 = vmatmul.mubr.f32.gmra.mxu1 %v7389_v54 }
 0x2f6   : > { %v2861_v0 = vpop.f32.mrf.mxu0  ;;  %3174 = vmatprep.mubr.f32.mxu1 %v7394_v20  ;;  %3390 = vmatmul.mubr.f32.gmra.mxu0 %v7395_v42 }
 0x2f7   : > { %v6671_v4 = vadd.f32 %v2861_v0, %v2637_v39  ;;  %3394 = vmatprep.mubr.f32.mxu0 %v7396_v57 }
 0x2f8   : > { %v2863_v58 = vpop.f32.mrf.mxu0 }
 0x2f9   : > { %v2646_v55 = vpop.f32.mrf.mxu1  ;;  %3175 = vmatmul.mubr.f32.gmra.mxu1 %v7392_v24  ;;  %v7404_v24 = vld [vmem:[#allocation53_spill] sm:$0xff]  ;;  %v7406_v58 = vld [vmem:[#allocation47_spill] sm:$0xff] }
 0x2fa   : > { %v2866_v45 = vpop.f32.mrf.mxu0  ;;  %3179 = vmatprep.mubr.f32.mxu1 %v6469_v53  ;;  %3395 = vmatmul.mubr.f32.gmra.mxu0 %v7398_v50  ;;  %v2647_v29 = vadd.f32 %v6661_v52, %v2646_v55  ;;  %v7407_v55 = vld [vmem:[#allocation61_spill] sm:$0xff] }
 0x2fb   : > { %v6679_v6 = vadd.f32 %v2866_v45, %v2642_v10  ;;  %v2648_v51 = vpop.f32.mrf.mxu1  ;;  %3399 = vmatprep.mubr.f32.mxu0 %v7399_v33 }
 0x2fc   : > { %v2868_v16 = vpop.f32.mrf.mxu0 }
 0x2fd   : > { %v2651_v48 = vpop.f32.mrf.mxu1  ;;  %3180 = vmatmul.mubr.f32.gmra.mxu1 %v7396_v57  ;;  %v7405_v57 = vld [vmem:[#allocation64_spill] sm:$0xff]  ;;  %v7408_v16 = vld [vmem:[#allocation67_spill] sm:$0xff] }
 0x2fe   : > { %v2871_v34 = vpop.f32.mrf.mxu0  ;;  %3184 = vmatprep.mubr.f32.mxu1 %v6482_v22  ;;  %3400 = vmatmul.mubr.f32.gmra.mxu0 %v7400_v18  ;;  %v2652_v21 = vadd.f32 %v6661_v52, %v2651_v48  ;;  %v7410_v18 = vld [vmem:[#allocation63_spill] sm:$0xff] }
 0x2ff   : > { %v6686_v9 = vadd.f32 %v2871_v34, %v2647_v29  ;;  %v2653_v43 = vpop.f32.mrf.mxu1  ;;  %3404 = vmatprep.mubr.f32.mxu0 %v7401_v49  ;;  %v7409_v29 = vld [vmem:[#allocation55_spill] sm:$0xff] }
 0x300   : > { %v2873_v62 = vpop.f32.mrf.mxu0 }
 0x301   : > { %v2656_v8 = vpop.f32.mrf.mxu1  ;;  %3185 = vmatmul.mubr.f32.gmra.mxu1 %v7399_v33 }
 0x302   : > { %v2876_v23 = vpop.f32.mrf.mxu0  ;;  %3189 = vmatprep.mubr.f32.mxu1 %v7402_v59  ;;  %3405 = vmatmul.mubr.f32.gmra.mxu0 %v7403_v63  ;;  %v2657_v39 = vadd.f32 %v6661_v52, %v2656_v8  ;;  %v7411_v8 = vld [vmem:[#allocation69_spill] sm:$0xff] }
 0x303   : > { %v6693_v54 = vadd.f32 %v2876_v23, %v2652_v21  ;;  %v2658_v5 = vpop.f32.mrf.mxu1  ;;  %3409 = vmatprep.mubr.f32.mxu0 %v7404_v24  ;;  %v7412_v23 = vld [vmem:[#allocation59_spill] sm:$0xff] }
 0x304   : > { %v2878_v7 = vpop.f32.mrf.mxu0 }
 0x305   : > { %v2661_v0 = vpop.f32.mrf.mxu1  ;;  %3190 = vmatmul.mubr.f32.gmra.mxu1 %v7401_v49 }
 0x306   : > { %v2881_v42 = vpop.f32.mrf.mxu0  ;;  %3194 = vmatprep.mubr.f32.mxu1 %v7405_v57  ;;  %3410 = vmatmul.mubr.f32.gmra.mxu0 %v7406_v58  ;;  %v2662_v50 = vadd.f32 %v6661_v52, %v2661_v0  ;;  %v7414_v58 = vld [vmem:[#allocation52_spill] sm:$0xff] }
 0x307   : > { %v6700_v2 = vadd.f32 %v2881_v42, %v2657_v39  ;;  %v2663_v10 = vpop.f32.mrf.mxu1  ;;  %3414 = vmatprep.mubr.f32.mxu0 %v7407_v55 }
 0x308   : > { %v2883_v45 = vpop.f32.mrf.mxu0 }
 0x309   : > { %v2666_v51 = vpop.f32.mrf.mxu1  ;;  %3195 = vmatmul.mubr.f32.gmra.mxu1 %v7404_v24  ;;  %v7413_v24 = vld [vmem:[#allocation66_spill] sm:$0xff]  ;;  %v7415_v45 = vld [vmem:[#allocation68_spill] sm:$0xff] }
 0x30a   : > { %v2886_v33 = vpop.f32.mrf.mxu0  ;;  %3199 = vmatprep.mubr.f32.mxu1 %v7408_v16  ;;  %3415 = vmatmul.mubr.f32.gmra.mxu0 %v7409_v29  ;;  %v2667_v49 = vadd.f32 %v6661_v52, %v2666_v51 }
 0x30b   : > { %v6707_v48 = vadd.f32 %v2886_v33, %v2662_v50  ;;  %v2668_v34 = vpop.f32.mrf.mxu1  ;;  %3419 = vmatprep.mubr.f32.mxu0 %v7410_v18 }
 0x30c   : > { %v2888_v43 = vpop.f32.mrf.mxu0 }
 0x30d   : > { %v2671_v62 = vpop.f32.mrf.mxu1  ;;  %3200 = vmatmul.mubr.f32.gmra.mxu1 %v7407_v55 }
 0x30e   : > { %v2891_v21 = vpop.f32.mrf.mxu0  ;;  %3204 = vmatprep.mubr.f32.mxu1 %v7411_v8  ;;  %3420 = vmatmul.mubr.f32.gmra.mxu0 %v7412_v23  ;;  %v2672_v39 = vadd.f32 %v6661_v52, %v2671_v62  ;;  %v7416_v23 = vld [vmem:[#allocation65_spill] sm:$0xff] }
 0x30f   : > { %v6714_v63 = vadd.f32 %v2891_v21, %v2667_v49  ;;  %v2673_v5 = vpop.f32.mrf.mxu1  ;;  %3424 = vmatprep.mubr.f32.mxu0 %v7413_v24 }
 0x310   : > { %v2893_v7 = vpop.f32.mrf.mxu0 }
 0x311   : > { %v2676_v0 = vpop.f32.mrf.mxu1  ;;  %3205 = vmatmul.mubr.f32.gmra.mxu1 %v7410_v18 }
 0x312   : > { %v2896_v42 = vpop.f32.mrf.mxu0  ;;  %3209 = vmatprep.mubr.f32.mxu1 %v6554_v26  ;;  %3425 = vmatmul.mubr.f32.gmra.mxu0 %v7414_v58  ;;  %v2677_v51 = vadd.f32 %v6661_v52, %v2676_v0  ;;  %v2388_v58 = vrot.slane %v6582_v1, 1 }
 0x313   : > { %v6721_v10 = vadd.f32 %v2896_v42, %v2672_v39  ;;  %v2678_v55 = vpop.f32.mrf.mxu1  ;;  %3429 = vmatprep.mubr.f32.mxu0 %v7415_v45 }
 0x314   : > { %v2898_v50 = vpop.f32.mrf.mxu0  ;;  %v2389_v55 = vrot.slane %v6591_v27, 1 }
 0x315   : > { %v2681_v33 = vpop.f32.mrf.mxu1  ;;  %3210 = vmatmul.mubr.f32.gmra.mxu1 %v7413_v24 }
 0x316   : > { %v2901_v29 = vpop.f32.mrf.mxu0  ;;  %3214 = vmatprep.mubr.f32.mxu1 %v6566_v36  ;;  %3430 = vmatmul.mubr.f32.gmra.mxu0 %v6512_v11  ;;  %v2682_v49 = vadd.f32 %v6661_v52, %v2681_v33  ;;  %v7417_v11 = vld [vmem:[#allocation70_spill] sm:$0xff] }
 0x317   : > { %v6728_v34 = vadd.f32 %v2901_v29, %v2677_v51  ;;  %v2683_v18 = vpop.f32.mrf.mxu1  ;;  %3434 = vmatprep.mubr.f32.mxu0 %v6551_v46 }
 0x318   : > { %v2903_v43 = vpop.f32.mrf.mxu0  ;;  %v2396_v18 = vrot.slane %v6591_v27, 2 }
 0x319   : > { %v2686_v62 = vpop.f32.mrf.mxu1  ;;  %3215 = vmatmul.mubr.f32.gmra.mxu1 %v7415_v45 }
 0x31a   : > { %v2906_v21 = vpop.f32.mrf.mxu0  ;;  %3219 = vmatprep.mubr.f32.mxu1 %v6576_v37  ;;  %3435 = vmatmul.mubr.f32.gmra.mxu0 %v7416_v23  ;;  %v2687_v39 = vadd.f32 %v6661_v52, %v2686_v62 }
 0x31b   : > { %v6735_v5 = vadd.f32 %v2906_v21, %v2682_v49  ;;  %v2688_v24 = vpop.f32.mrf.mxu1  ;;  %3439 = vmatprep.mubr.f32.mxu0 %v7417_v11  ;;  %v2390_v49 = vsel %vm340_vm0, %v2388_v58, %v2389_v55 }
 0x31c   : > { %v2908_v7 = vpop.f32.mrf.mxu0 }
 0x31d   : > { %v2691_v0 = vpop.f32.mrf.mxu1  ;;  %3220 = vmatmul.mubr.f32.gmra.mxu1 %v6551_v46  ;;  %v2395_v46 = vrot.slane %v6582_v1, 2  ;;  %v7418_v7 = vld [vmem:[#allocation24_spill] sm:$0xff] }
 0x31e   : > { %v2911_v42 = vpop.f32.mrf.mxu0  ;;  %3224 = vmatprep.mubr.f32.mxu1 %v6587_v41  ;;  %3440 = vmatmul.mubr.f32.gmra.mxu0 %v6540_v61  ;;  %v2692_v33 = vadd.f32 %v6661_v52, %v2691_v0  ;;  %v2109_v61 = vld [vmem:[#allocation2 + $0x190] sm:$0x3] }
 0x31f   : > { %v6744_v45 = vadd.f32 %v2911_v42, %v2687_v39  ;;  %v2693_v50 = vpop.f32.mrf.mxu1  ;;  %3444 = vmatprep.mubr.f32.mxu0 %v6573_v38  ;;  %v2391_v24 = vrot.slane %v2109_v61, 1  ;;  %v6760_v42 = vsel %vm453_vm1, %v2395_v46, %v2396_v18 }
 0x320   : > { %v2913_v51 = vpop.f32.mrf.mxu0  ;;  %v6762_v50 = vld [vmem:[#allocation2 + $0x1a8] sm:$0x3] }
 0x321   : > { %v2696_v29 = vpop.f32.mrf.mxu1  ;;  %3225 = vmatmul.mubr.f32.gmra.mxu1 %v7417_v11  ;;  %v2405_v11 = vrot.slane %v7418_v7, 1  ;;  %v2392_v58 = vsel %vm340_vm0, %v2389_v55, %v2391_v24 }
 0x322   : > { %v2916_v43 = vpop.f32.mrf.mxu0  ;;  %3229 = vmatprep.mubr.f32.mxu1 %v6596_v56  ;;  %3445 = vmatmul.mubr.f32.gmra.mxu0 %v6542_v40  ;;  %v2697_v39 = vadd.f32 %v6661_v52, %v2696_v29  ;;  %v2398_v29 = vrot.slane %v2109_v61, 2 }
 0x323   : > { %v6754_v62 = vadd.f32 %v2916_v43, %v2692_v33  ;;  %v2698_v21 = vpop.f32.mrf.mxu1  ;;  %3449 = vmatprep.mubr.f32.mxu0 %v2390_v49 }
 0x324   : > { %v2918_v23 = vpop.f32.mrf.mxu0 }
 0x325   : > { %v2701_v0 = vpop.f32.mrf.mxu1  ;;  %3230 = vmatmul.mubr.f32.gmra.mxu1 %v6573_v38  ;;  %v2408_v38 = vrot.slane %v6762_v50, 1  ;;  %v6772_v23 = vsel %vm453_vm1, %v2396_v18, %v2398_v29 }
 0x326   : > { %v2921_v40 = vpop.f32.mrf.mxu0  ;;  %3234 = vmatprep.mubr.f32.mxu1 %v6760_v42  ;;  %3450 = vmatmul.mubr.f32.gmra.mxu0 %v6582_v1  ;;  %v2702_v46 = vadd.f32 %v6661_v52, %v2701_v0 }
 0x327   : > { %v6767_v51 = vadd.f32 %v2921_v40, %v2697_v39  ;;  %v2703_v33 = vpop.f32.mrf.mxu1  ;;  %3454 = vmatprep.mubr.f32.mxu0 %v2392_v58  ;;  %v2409_v24 = vsel %vm340_vm0, %v2405_v11, %v2408_v38  ;;  %v6780_v40 = vld [vmem:[#allocation2] sm:$0xff] }
 0x328   : > { %v2923_v43 = vpop.f32.mrf.mxu0 }
 0x329   : > { %v2706_v21 = vpop.f32.mrf.mxu1  ;;  %3235 = vmatmul.mubr.f32.gmra.mxu1 %v2390_v49 }
 0x32a   : > { %v2926_v7 = vpop.f32.mrf.mxu0  ;;  %3239 = vmatprep.mubr.f32.mxu1 %v6772_v23  ;;  %3455 = vmatmul.mubr.f32.gmra.mxu0 %v6591_v27  ;;  %v2707_v39 = vadd.f32 %v6661_v52, %v2706_v21 }
 0x32b   : > { %v6776_v1 = vadd.f32 %v2926_v7, %v2702_v46  ;;  %v2708_v55 = vpop.f32.mrf.mxu1  ;;  %3459 = vmatprep.mubr.f32.mxu0 %v2405_v11 }
 0x32c   : > { %v2928_v61 = vpop.f32.mrf.mxu0 }
 0x32d   : > { %v2711_v0 = vpop.f32.mrf.mxu1  ;;  %3240 = vmatmul.mubr.f32.gmra.mxu1 %v2392_v58 }
 0x32e   : > { %v2931_v49 = vpop.f32.mrf.mxu0  ;;  %3460 = vmatmul.mubr.f32.gmra.mxu0 %v6780_v40  ;;  %4167 = vmatprep.mubr.f32.mxu1 %v6161_v30  ;;  %v2712_v29 = vadd.f32 %v6661_v52, %v2711_v0 }
 0x32f   : > { %v6784_v18 = vadd.f32 %v2931_v49, %v2707_v39  ;;  %v2713_v27 = vpop.f32.mrf.mxu1  ;;  %3464 = vmatprep.mubr.f32.mxu0 %v2409_v24 }
 0x330   : > { %v2933_v33 = vpop.f32.mrf.mxu0 }
 0x331   : > { %v2716_v43 = vpop.f32.mrf.mxu1  ;;  %4168 = vmatmul.mubr.f32.vlgmr.msra.gmra.mxu1 %v6178_v32 }
 0x332   : > { %v2936_v11 = vpop.f32.mrf.mxu0  ;;  %3465 = vmatmul.mubr.f32.gmra.mxu0 %v6780_v40  ;;  %4170 = vmatprep.mubr.f32.mxu1 %v6200_v28  ;;  %v2717_v30 = vadd.f32 %v6661_v52, %v2716_v43 }
 0x333   : > { %v6790_v58 = vadd.f32 %v2936_v11, %v2712_v29  ;;  %v2718_v38 = vpop.f32.mrf.mxu1 }
 0x334   : > { %v2938_v46 = vpop.f32.mrf.mxu0 }
 0x335   : > { %v2721_v21 = vpop.f32.mrf.mxu1  ;;  %4171 = vmatmul.mubr.f32.gmra.mxu1 %v6217_v14 }
 0x336   : > { %v2941_v7 = vpop.f32.mrf.mxu0  ;;  %4173 = vmatprep.mubr.f32.mxu1 %v6239_v19  ;;  %v2722_v24 = vadd.f32 %v6661_v52, %v2721_v21 }
 0x337   : > { %v6795_v55 = vadd.f32 %v2941_v7, %v2717_v30  ;;  %v2723_v32 = vpop.f32.mrf.mxu1 }
 0x338   : > { %v2943_v61 = vpop.f32.mrf.mxu0 }
 0x339   : > { %v2726_v39 = vpop.f32.mrf.mxu1  ;;  %4174 = vmatmul.mubr.f32.gmra.mxu1 %v6256_v31 }
 0x33a   : > { %v2946_v28 = vpop.f32.mrf.mxu0  ;;  %4176 = vmatprep.mubr.f32.mxu1 %v6280_v15  ;;  %v2727_v14 = vadd.f32 %v6661_v52, %v2726_v39 }
 0x33b   : > { %v6800_v0 = vadd.f32 %v2946_v28, %v2722_v24  ;;  %v2728_v49 = vpop.f32.mrf.mxu1 }
 0x33c   : > { %v2948_v27 = vpop.f32.mrf.mxu0 }
 0x33d   : > { %v2731_v33 = vpop.f32.mrf.mxu1  ;;  %4177 = vmatmul.mubr.f32.gmra.mxu1 %v6298_v47 }
 0x33e   : > { %v2951_v19 = vpop.f32.mrf.mxu0  ;;  %4179 = vmatprep.mubr.f32.mxu1 %v6321_v17  ;;  %v2732_v31 = vadd.f32 %v6661_v52, %v2731_v33 }
 0x33f   : > { %v6805_v29 = vadd.f32 %v2951_v19, %v2727_v14  ;;  %v2733_v43 = vpop.f32.mrf.mxu1 }
 0x340   : > { %v2953_v11 = vpop.f32.mrf.mxu0 }
 0x341   : > { %v2736_v38 = vpop.f32.mrf.mxu1  ;;  %4180 = vmatmul.mubr.f32.gmra.mxu1 %v6337_v60 }
 0x342   : > { %v2956_v15 = vpop.f32.mrf.mxu0  ;;  %4182 = vmatprep.mubr.f32.mxu1 %v6354_v13  ;;  %v2737_v47 = vadd.f32 %v6661_v52, %v2736_v38 }
 0x343   : > { %v6810_v46 = vadd.f32 %v2956_v15, %v2732_v31  ;;  %v2738_v30 = vpop.f32.mrf.mxu1 }
 0x344   : > { %v2958_v21 = vpop.f32.mrf.mxu0 }
 0x345   : > { %v2741_v7 = vpop.f32.mrf.mxu1  ;;  %4183 = vmatmul.mubr.f32.gmra.mxu1 %v6369_v35 }
 0x346   : > { %v2961_v17 = vpop.f32.mrf.mxu0  ;;  %4185 = vmatprep.mubr.f32.mxu1 %v6390_v3  ;;  %v2742_v60 = vadd.f32 %v6661_v52, %v2741_v7 }
 0x347   : > { %v6815_v32 = vadd.f32 %v2961_v17, %v2737_v47  ;;  %v2743_v61 = vpop.f32.mrf.mxu1 }
 0x348   : > { %v2963_v24 = vpop.f32.mrf.mxu0 }
 0x349   : > { %v2746_v39 = vpop.f32.mrf.mxu1  ;;  %4186 = vmatmul.mubr.f32.gmra.mxu1 %v6404_v25 }
 0x34a   : > { %v2966_v13 = vpop.f32.mrf.mxu0  ;;  %4188 = vmatprep.mubr.f32.mxu1 %v6421_v12  ;;  %v2747_v35 = vadd.f32 %v6661_v52, %v2746_v39 }
 0x34b   : > { %v6820_v28 = vadd.f32 %v2966_v13, %v2742_v60  ;;  %v2748_v49 = vpop.f32.mrf.mxu1 }
 0x34c   : > { %v2968_v27 = vpop.f32.mrf.mxu0 }
 0x34d   : > { %v2751_v14 = vpop.f32.mrf.mxu1  ;;  %4189 = vmatmul.mubr.f32.gmra.mxu1 %v7390_v44 }
 0x34e   : > { %v2971_v3 = vpop.f32.mrf.mxu0  ;;  %4191 = vmatprep.mubr.f32.mxu1 %v7394_v20  ;;  %v2752_v25 = vadd.f32 %v6661_v52, %v2751_v14 }
 0x34f   : > { %v6825_v33 = vadd.f32 %v2971_v3, %v2747_v35  ;;  %v2753_v19 = vpop.f32.mrf.mxu1 }
 0x350   : > { %v2973_v43 = vpop.f32.mrf.mxu0 }
 0x351   : > { %v2756_v11 = vpop.f32.mrf.mxu1  ;;  %4192 = vmatmul.mubr.f32.gmra.mxu1 %v6469_v53 }
 0x352   : > { %v2976_v12 = vpop.f32.mrf.mxu0  ;;  %4194 = vmatprep.mubr.f32.mxu1 %v6482_v22  ;;  %v2757_v44 = vadd.f32 %v6661_v52, %v2756_v11  ;;  %v2415_v11 = vrot.slane %v6762_v50, 2 }
 0x353   : > { %v6830_v31 = vadd.f32 %v2976_v12, %v2752_v25  ;;  %v2758_v38 = vpop.f32.mrf.mxu1 }
 0x354   : > { %v2978_v15 = vpop.f32.mrf.mxu0 }
 0x355   : > { %v2761_v30 = vpop.f32.mrf.mxu1  ;;  %4195 = vmatmul.mubr.f32.gmra.mxu1 %v7402_v59 }
 0x356   : > { %v2981_v20 = vpop.f32.mrf.mxu0  ;;  %4197 = vmatprep.mubr.f32.mxu1 %v7405_v57  ;;  %v2762_v53 = vadd.f32 %v6661_v52, %v2761_v30 }
 0x357   : > { %v6835_v21 = vadd.f32 %v2981_v20, %v2757_v44  ;;  %v2763_v47 = vpop.f32.mrf.mxu1 }
 0x358   : > { %v2983_v7 = vpop.f32.mrf.mxu0 }
 0x359   : > { %v2766_v17 = vpop.f32.mrf.mxu1  ;;  %4198 = vmatmul.mubr.f32.gmra.mxu1 %v7408_v16 }
 0x35a   : > { %v2986_v22 = vpop.f32.mrf.mxu0  ;;  %4200 = vmatprep.mubr.f32.mxu1 %v7411_v8  ;;  %v2767_v59 = vadd.f32 %v6661_v52, %v2766_v17 }
 0x35b   : > { %v6840_v61 = vadd.f32 %v2986_v22, %v2762_v53  ;;  %v2768_v24 = vpop.f32.mrf.mxu1 }
 0x35c   : > { %v2988_v60 = vpop.f32.mrf.mxu0 }
 0x35d   : > { %v2771_v39 = vpop.f32.mrf.mxu1  ;;  %4201 = vmatmul.mubr.f32.gmra.mxu1 %v6554_v26  ;;  %v2412_v26 = vrot.slane %v6780_v40, 2 }
 0x35e   : > { %v2991_v57 = vpop.f32.mrf.mxu0  ;;  %4203 = vmatprep.mubr.f32.mxu1 %v6566_v36  ;;  %v2772_v16 = vadd.f32 %v6661_v52, %v2771_v39 }
 0x35f   : > { %v6845_v13 = vadd.f32 %v2991_v57, %v2767_v59  ;;  %v2773_v49 = vpop.f32.mrf.mxu1  ;;  %v2416_v44 = vsel %vm453_vm1, %v2412_v26, %v2415_v11 }
 0x360   : > { %v2993_v27 = vpop.f32.mrf.mxu0 }
 0x361   : > { %v2776_v35 = vpop.f32.mrf.mxu1  ;;  %4204 = vmatmul.mubr.f32.gmra.mxu1 %v6576_v37 }
 0x362   : > { %v2996_v8 = vpop.f32.mrf.mxu0  ;;  %4206 = vmatprep.mubr.f32.mxu1 %v6587_v41  ;;  %v2777_v36 = vadd.f32 %v6661_v52, %v2776_v35 }
 0x363   : > { %v6850_v14 = vadd.f32 %v2996_v8, %v2772_v16  ;;  %v2778_v3 = vpop.f32.mrf.mxu1 }
 0x364   : > { %v2998_v19 = vpop.f32.mrf.mxu0 }
 0x365   : > { %v2781_v43 = vpop.f32.mrf.mxu1  ;;  %4207 = vmatmul.mubr.f32.gmra.mxu1 %v6596_v56 }
 0x366   : > { %v3001_v25 = vpop.f32.mrf.mxu0  ;;  %4209 = vmatprep.mubr.f32.mxu1 %v6760_v42  ;;  %v2782_v38 = vadd.f32 %v6661_v52, %v2781_v43 }
 0x367   : > { %v6857_v37 = vadd.f32 %v3001_v25, %v2777_v36  ;;  %v2783_v12 = vpop.f32.mrf.mxu1 }
 0x368   : > { %v3003_v41 = vpop.f32.mrf.mxu0 }
 0x369   : > { %v2786_v15 = vpop.f32.mrf.mxu1  ;;  %4210 = vmatmul.mubr.f32.gmra.mxu1 %v6772_v23 }
 0x36a   : > { %v3006_v40 = vpop.f32.mrf.mxu0  ;;  %4212 = vmatprep.mubr.f32.mxu1 %v2412_v26  ;;  %v2787_v42 = vadd.f32 %v6661_v52, %v2786_v15 }
 0x36b   : > { %v6862_v30 = vadd.f32 %v3006_v40, %v2782_v38  ;;  %v2788_v56 = vpop.f32.mrf.mxu1 }
 0x36c   : > { %v3008_v20 = vpop.f32.mrf.mxu0 }
 0x36d   : > { %v2791_v50 = vpop.f32.mrf.mxu1  ;;  %4213 = vmatmul.mubr.f32.gmra.mxu1 %v2416_v44 }
 0x36e   : > { %v3011_v47 = vpop.f32.mrf.mxu0  ;;  %v2792_v22 = vadd.f32 %v6661_v52, %v2791_v50 }
 0x36f   : > { %v6865_v7 = vadd.f32 %v3011_v47, %v2787_v42  ;;  %v2793_v53 = vpop.f32.mrf.mxu1 }
 0x370   : > { %v3013_v17 = vpop.f32.mrf.mxu0 }
 0x371   : > { %v3086_v23 = vpop.f32.mrf.mxu1 }
 0x372   : > { %v3087_v24 = vadd.f32 %v3086_v23, %v6671_v4  ;;  %v3016_v60 = vpop.f32.mrf.mxu0 }
 0x373   : > { %v6869_v59 = vadd.f32 %v3016_v60, %v2792_v22  ;;  %v3088_v39 = vpop.f32.mrf.mxu1 }
 0x374   : > { %v3018_v57 = vpop.f32.mrf.mxu0 }
 0x375   : > { %v3091_v49 = vpop.f32.mrf.mxu1 }
 0x376   : > { %v3092_v27 = vadd.f32 %v3091_v49, %v6679_v6  ;;  %v3311_v16 = vpop.f32.mrf.mxu0 }
 0x377   : > { %v6872_v35 = vadd.f32 %v3311_v16, %v3087_v24  ;;  %v3093_v8 = vpop.f32.mrf.mxu1 }
 0x378   : > { %v3313_v3 = vpop.f32.mrf.mxu0 }
 0x379   : > { %v3096_v26 = vpop.f32.mrf.mxu1 }
 0x37a   : > { %v3097_v19 = vadd.f32 %v3096_v26, %v6686_v9  ;;  %v3316_v52 = vpop.f32.mrf.mxu0 }
 0x37b   : > { %v6875_v36 = vadd.f32 %v3316_v52, %v3092_v27  ;;  %v3098_v4 = vpop.f32.mrf.mxu1 }
 0x37c   : > { %v3318_v43 = vpop.f32.mrf.mxu0 }
 0x37d   : > { %v3101_v25 = vpop.f32.mrf.mxu1 }
 0x37e   : > { %v3102_v11 = vadd.f32 %v3101_v25, %v6693_v54  ;;  %v3321_v12 = vpop.f32.mrf.mxu0 }
 0x37f   : > { %v6878_v41 = vadd.f32 %v3321_v12, %v3097_v19  ;;  %v3103_v6 = vpop.f32.mrf.mxu1 }
 0x380   : > { %v3323_v38 = vpop.f32.mrf.mxu0 }
 0x381   : > { %v3106_v15 = vpop.f32.mrf.mxu1 }
 0x382   : > { %v3107_v40 = vadd.f32 %v3106_v15, %v6700_v2  ;;  %v3326_v44 = vpop.f32.mrf.mxu0 }
 0x383   : > { %v6881_v56 = vadd.f32 %v3326_v44, %v3102_v11  ;;  %v3108_v9 = vpop.f32.mrf.mxu1 }
 0x384   : > { %v3328_v20 = vpop.f32.mrf.mxu0 }
 0x385   : > { %v3111_v42 = vpop.f32.mrf.mxu1 }
 0x386   : > { %v3112_v50 = vadd.f32 %v3111_v42, %v6707_v48  ;;  %v3331_v47 = vpop.f32.mrf.mxu0 }
 0x387   : > { %v6884_v53 = vadd.f32 %v3331_v47, %v3107_v40  ;;  %v3113_v54 = vpop.f32.mrf.mxu1 }
 0x388   : > { %v3333_v17 = vpop.f32.mrf.mxu0 }
 0x389   : > { %v3116_v22 = vpop.f32.mrf.mxu1 }
 0x38a   : > { %v3117_v23 = vadd.f32 %v3116_v22, %v6714_v63  ;;  %v3336_v24 = vpop.f32.mrf.mxu0 }
 0x38b   : > { %v6887_v60 = vadd.f32 %v3336_v24, %v3112_v50  ;;  %v3118_v2 = vpop.f32.mrf.mxu1 }
 0x38c   : > { %v3338_v39 = vpop.f32.mrf.mxu0 }
 0x38d   : > { %v3121_v57 = vpop.f32.mrf.mxu1 }
 0x38e   : > { %v3122_v49 = vadd.f32 %v3121_v57, %v6721_v10  ;;  %v3341_v27 = vpop.f32.mrf.mxu0 }
 0x38f   : > { %v6890_v16 = vadd.f32 %v3341_v27, %v3117_v23  ;;  %v3123_v48 = vpop.f32.mrf.mxu1 }
 0x390   : > { %v3343_v8 = vpop.f32.mrf.mxu0 }
 0x391   : > { %v3126_v3 = vpop.f32.mrf.mxu1 }
 0x392   : > { %v3127_v26 = vadd.f32 %v3126_v3, %v6728_v34  ;;  %v3346_v19 = vpop.f32.mrf.mxu0 }
 0x393   : > { %v6893_v52 = vadd.f32 %v3346_v19, %v3122_v49  ;;  %v3128_v63 = vpop.f32.mrf.mxu1 }
 0x394   : > { %v3348_v4 = vpop.f32.mrf.mxu0 }
 0x395   : > { %v3131_v43 = vpop.f32.mrf.mxu1 }
 0x396   : > { %v3132_v25 = vadd.f32 %v3131_v43, %v6735_v5  ;;  %v3351_v11 = vpop.f32.mrf.mxu0 }
 0x397   : > { %v6896_v12 = vadd.f32 %v3351_v11, %v3127_v26  ;;  %v3133_v10 = vpop.f32.mrf.mxu1 }
 0x398   : > { %v3353_v6 = vpop.f32.mrf.mxu0 }
 0x399   : > { %v3136_v38 = vpop.f32.mrf.mxu1 }
 0x39a   : > { %v3137_v15 = vadd.f32 %v3136_v38, %v6744_v45  ;;  %v3356_v40 = vpop.f32.mrf.mxu0 }
 0x39b   : > { %v6899_v44 = vadd.f32 %v3356_v40, %v3132_v25  ;;  %v3138_v34 = vpop.f32.mrf.mxu1 }
 0x39c   : > { %v3358_v9 = vpop.f32.mrf.mxu0 }
 0x39d   : > { %v3141_v20 = vpop.f32.mrf.mxu1 }
 0x39e   : > { %v3142_v42 = vadd.f32 %v3141_v20, %v6754_v62  ;;  %v3361_v50 = vpop.f32.mrf.mxu0 }
 0x39f   : > { %v6902_v47 = vadd.f32 %v3361_v50, %v3137_v15  ;;  %v3143_v5 = vpop.f32.mrf.mxu1 }
 0x3a0   : > { %v3363_v54 = vpop.f32.mrf.mxu0 }
 0x3a1   : > { %v3146_v17 = vpop.f32.mrf.mxu1 }
 0x3a2   : > { %v3147_v22 = vadd.f32 %v3146_v17, %v6767_v51  ;;  %v3366_v23 = vpop.f32.mrf.mxu0 }
 0x3a3   : > { %v6905_v24 = vadd.f32 %v3366_v23, %v3142_v42  ;;  %v3148_v45 = vpop.f32.mrf.mxu1 }
 0x3a4   : > { %v3368_v2 = vpop.f32.mrf.mxu0 }
 0x3a5   : > { %v3151_v39 = vpop.f32.mrf.mxu1 }
 0x3a6   : > { %v3152_v57 = vadd.f32 %v3151_v39, %v6776_v1  ;;  %v3371_v49 = vpop.f32.mrf.mxu0 }
 0x3a7   : > { %v6908_v27 = vadd.f32 %v3371_v49, %v3147_v22  ;;  %v3153_v62 = vpop.f32.mrf.mxu1 }
 0x3a8   : > { %v3373_v48 = vpop.f32.mrf.mxu0 }
 0x3a9   : > { %v3156_v8 = vpop.f32.mrf.mxu1 }
 0x3aa   : > { %v3157_v3 = vadd.f32 %v3156_v8, %v6784_v18  ;;  %v3376_v26 = vpop.f32.mrf.mxu0 }
 0x3ab   : > { %v6911_v19 = vadd.f32 %v3376_v26, %v3152_v57  ;;  %v3158_v51 = vpop.f32.mrf.mxu1 }
 0x3ac   : > { %v3378_v63 = vpop.f32.mrf.mxu0 }
 0x3ad   : > { %v3161_v4 = vpop.f32.mrf.mxu1 }
 0x3ae   : > { %v3162_v43 = vadd.f32 %v3161_v4, %v6790_v58  ;;  %v3381_v25 = vpop.f32.mrf.mxu0 }
 0x3af   : > { %v6914_v11 = vadd.f32 %v3381_v25, %v3157_v3  ;;  %v3163_v1 = vpop.f32.mrf.mxu1 }
 0x3b0   : > { %v3383_v10 = vpop.f32.mrf.mxu0 }
 0x3b1   : > { %v3166_v6 = vpop.f32.mrf.mxu1 }
 0x3b2   : > { %v3167_v38 = vadd.f32 %v3166_v6, %v6795_v55  ;;  %v3386_v15 = vpop.f32.mrf.mxu0 }
 0x3b3   : > { %v6917_v40 = vadd.f32 %v3386_v15, %v3162_v43  ;;  %v3168_v18 = vpop.f32.mrf.mxu1 }
 0x3b4   : > { %v3388_v34 = vpop.f32.mrf.mxu0 }
 0x3b5   : > { %v3171_v9 = vpop.f32.mrf.mxu1 }
 0x3b6   : > { %v3172_v20 = vadd.f32 %v3171_v9, %v6800_v0  ;;  %v3391_v42 = vpop.f32.mrf.mxu0 }
 0x3b7   : > { %v6920_v50 = vadd.f32 %v3391_v42, %v3167_v38  ;;  %v3173_v58 = vpop.f32.mrf.mxu1 }
 0x3b8   : > { %v3393_v5 = vpop.f32.mrf.mxu0 }
 0x3b9   : > { %v3176_v54 = vpop.f32.mrf.mxu1 }
 0x3ba   : > { %v3177_v17 = vadd.f32 %v3176_v54, %v6805_v29  ;;  %v3396_v22 = vpop.f32.mrf.mxu0 }
 0x3bb   : > { %v6923_v23 = vadd.f32 %v3396_v22, %v3172_v20  ;;  %v3178_v55 = vpop.f32.mrf.mxu1 }
 0x3bc   : > { %v3398_v45 = vpop.f32.mrf.mxu0 }
 0x3bd   : > { %v3181_v2 = vpop.f32.mrf.mxu1 }
 0x3be   : > { %v3182_v39 = vadd.f32 %v3181_v2, %v6810_v46  ;;  %v3401_v57 = vpop.f32.mrf.mxu0 }
 0x3bf   : > { %v6926_v49 = vadd.f32 %v3401_v57, %v3177_v17  ;;  %v3183_v0 = vpop.f32.mrf.mxu1 }
 0x3c0   : > { %v3403_v62 = vpop.f32.mrf.mxu0 }
 0x3c1   : > { %v3186_v48 = vpop.f32.mrf.mxu1 }
 0x3c2   : > { %v3187_v8 = vadd.f32 %v3186_v48, %v6815_v32  ;;  %v3406_v3 = vpop.f32.mrf.mxu0 }
 0x3c3   : > { %v6929_v26 = vadd.f32 %v3406_v3, %v3182_v39  ;;  %v3188_v29 = vpop.f32.mrf.mxu1 }
 0x3c4   : > { %v3408_v51 = vpop.f32.mrf.mxu0 }
 0x3c5   : > { %v3191_v63 = vpop.f32.mrf.mxu1 }
 0x3c6   : > { %v3192_v4 = vadd.f32 %v3191_v63, %v6820_v28  ;;  %v3411_v43 = vpop.f32.mrf.mxu0 }
 0x3c7   : > { %v6932_v25 = vadd.f32 %v3411_v43, %v3187_v8  ;;  %v3193_v46 = vpop.f32.mrf.mxu1 }
 0x3c8   : > { %v3413_v1 = vpop.f32.mrf.mxu0 }
 0x3c9   : > { %v3196_v10 = vpop.f32.mrf.mxu1 }
 0x3ca   : > { %v3197_v6 = vadd.f32 %v3196_v10, %v6825_v33  ;;  %v3416_v38 = vpop.f32.mrf.mxu0 }
 0x3cb   : > { %v6935_v15 = vadd.f32 %v3416_v38, %v3192_v4  ;;  %v3198_v32 = vpop.f32.mrf.mxu1 }
 0x3cc   : > { %v3418_v18 = vpop.f32.mrf.mxu0 }
 0x3cd   : > { %v3201_v34 = vpop.f32.mrf.mxu1 }
 0x3ce   : > { %v3202_v9 = vadd.f32 %v3201_v34, %v6830_v31  ;;  %v3421_v20 = vpop.f32.mrf.mxu0 }
 0x3cf   : > { %v6938_v42 = vadd.f32 %v3421_v20, %v3197_v6  ;;  %v3203_v28 = vpop.f32.mrf.mxu1 }
 0x3d0   : > { %v3423_v58 = vpop.f32.mrf.mxu0 }
 0x3d1   : > { %v3206_v5 = vpop.f32.mrf.mxu1 }
 0x3d2   : > { %v3207_v54 = vadd.f32 %v3206_v5, %v6835_v21  ;;  %v3426_v17 = vpop.f32.mrf.mxu0 }
 0x3d3   : > { %v6941_v22 = vadd.f32 %v3426_v17, %v3202_v9  ;;  %v3208_v33 = vpop.f32.mrf.mxu1 }
 0x3d4   : > { %v3428_v55 = vpop.f32.mrf.mxu0 }
 0x3d5   : > { %v3211_v45 = vpop.f32.mrf.mxu1 }
 0x3d6   : > { %v3212_v2 = vadd.f32 %v3211_v45, %v6840_v61  ;;  %v3431_v39 = vpop.f32.mrf.mxu0 }
 0x3d7   : > { %v6944_v57 = vadd.f32 %v3431_v39, %v3207_v54  ;;  %v3213_v31 = vpop.f32.mrf.mxu1 }
 0x3d8   : > { %v3433_v0 = vpop.f32.mrf.mxu0 }
 0x3d9   : > { %v3216_v62 = vpop.f32.mrf.mxu1 }
 0x3da   : > { %v3217_v48 = vadd.f32 %v3216_v62, %v6845_v13  ;;  %v3436_v8 = vpop.f32.mrf.mxu0  ;;  %v7419_v62 = vld [vmem:[#allocation10_spill] sm:$0xff] }
 0x3db   : > { %v6947_v3 = vadd.f32 %v3436_v8, %v3212_v2  ;;  %v3218_v21 = vpop.f32.mrf.mxu1 }
 0x3dc   : > { %v3438_v29 = vpop.f32.mrf.mxu0 }
 0x3dd   : > { %v3221_v51 = vpop.f32.mrf.mxu1 }
 0x3de   : > { %v3222_v63 = vadd.f32 %v3221_v51, %v6850_v14  ;;  %v3441_v4 = vpop.f32.mrf.mxu0 }
 0x3df   : > { %v6950_v43 = vadd.f32 %v3441_v4, %v3217_v48  ;;  %v3223_v61 = vpop.f32.mrf.mxu1 }
 0x3e0   : > { %v3443_v46 = vpop.f32.mrf.mxu0 }
 0x3e1   : > { %v3226_v1 = vpop.f32.mrf.mxu1 }
 0x3e2   : > { %v3227_v10 = vadd.f32 %v3226_v1, %v6857_v37  ;;  %v3446_v6 = vpop.f32.mrf.mxu0 }
 0x3e3   : > { %v6953_v38 = vadd.f32 %v3446_v6, %v3222_v63  ;;  %v3228_v13 = vpop.f32.mrf.mxu1  ;;  %v7420_v63 = vld [vmem:[#allocation9_spill] sm:$0xff] }
 0x3e4   : > { %v3448_v32 = vpop.f32.mrf.mxu0 }
 0x3e5   : > { %v3231_v18 = vpop.f32.mrf.mxu1 }
 0x3e6   : > { %v6956_v34 = vadd.f32 %v3231_v18, %v6862_v30  ;;  %v3451_v9 = vpop.f32.mrf.mxu0 }
 0x3e7   : > { %v6958_v14 = vadd.f32 %v3451_v9, %v3227_v10  ;;  %v3233_v20 = vpop.f32.mrf.mxu1  ;;  %v7421_v10 = vld [vmem:[#allocation12_spill] sm:$0xff]  ;;  %v7422_v9 = vld [vmem:[#allocation11_spill] sm:$0xff] }
 0x3e8   : > { %v3453_v28 = vpop.f32.mrf.mxu0 }
 0x3e9   : > { %v3236_v58 = vpop.f32.mrf.mxu1 }
 0x3ea   : > { %v3237_v5 = vadd.f32 %v3236_v58, %v6865_v7  ;;  %v6961_v37 = vpop.f32.mrf.mxu0 }
 0x3eb   : > { %v3238_v54 = vpop.f32.mrf.mxu1 }
 0x3ec   : > { %v3458_v17 = vpop.f32.mrf.mxu0 }
 0x3ed   : > { %v6963_v33 = vpop.f32.mrf.mxu1 }
 0x3ee   : > { %v3461_v55 = vpop.f32.mrf.mxu0 }
 0x3ef   : > { %v6965_v45 = vadd.f32 %v3461_v55, %v3237_v5  ;;  %v3243_v30 = vpop.f32.mrf.mxu1  ;;  %v7423_v5 = vld [vmem:[#allocation14_spill] sm:$0xff] }
 0x3f0   : > { %v3463_v2 = vpop.f32.mrf.mxu0 }
 0x3f1   : > { %v4169_v39 = vpop.f32.mrf.mxu1  ;;  %v7424_v2 = vld [vmem:[#allocation13_spill] sm:$0xff] }
 0x3f2   : > { %v3542_v31 = vadd.f32 %v4169_v39, %v6875_v36  ;;  %v6969_v0 = vpop.f32.mrf.mxu0 }
 0x3f3   : > { %v3536_v7 = vpop.f32.mrf.mxu1 }
 0x3f4   : > { %v3696_v48 = vadd.f32 %v3542_v31, %v7419_v62  ;;  %v3537_v8 = vadd.f32 %v3536_v7, %v6872_v35  ;;  %v3468_v21 = vpop.f32.mrf.mxu0 }
 0x3f5   : > { %v4172_v29 = vpop.f32.mrf.mxu1 }
 0x3f6   : > { %vm3728_vm0 = vcmp.gt.f32.partialorder %v3696_v48, 0.0  ;;  %v3760_v51 = vmul.f32 0.2, %v3696_v48  ;;  %v3695_v4 = vadd.f32 %v3537_v8, %v7420_v63  ;;  %v3552_v61 = vadd.f32 %v4172_v29, %v6881_v56 }
 0x3f7   : > { %v3546_v46 = vpop.f32.mrf.mxu1 }
 0x3f8   : > { %v3792_v1 = vsel %vm3728_vm0, %v3696_v48, %v3760_v51  ;;  %vm3727_vm1 = vcmp.gt.f32.partialorder %v3695_v4, 0.0  ;;  %v3759_v36 = vmul.f32 0.2, %v3695_v4  ;;  %v3698_v6 = vadd.f32 %v3552_v61, %v7421_v10 }
 0x3f9   : > { %3824 = vst [vmem:[%s6978_s25 + $0x8] sm:$0xff] %v3792_v1  ;;  %v3547_v35 = vadd.f32 %v3546_v46, %v6878_v41  ;;  %v4175_v13 = vpop.f32.mrf.mxu1 }
 0x3fa   : > { %v3791_v32 = vsel %vm3727_vm1, %v3695_v4, %v3759_v36  ;;  %vm3730_vm6 = vcmp.gt.f32.partialorder %v3698_v6, 0.0  ;;  %v3762_v18 = vmul.f32 0.2, %v3698_v6  ;;  %v3562_v56 = vadd.f32 %v4175_v13, %v6887_v60  ;;  %v7427_v36 = vld [vmem:[#allocation18_spill] sm:$0xff] }
 0x3fb   : > { %3823 = vst [vmem:[%s6978_s25] sm:$0xff] %v3791_v32  ;;  %v3697_v20 = vadd.f32 %v3547_v35, %v7422_v9  ;;  %v3556_v28 = vpop.f32.mrf.mxu1  ;;  %v7428_v32 = vld [vmem:[#allocation17_spill] sm:$0xff] }
 0x3fc   : > { %v3794_v58 = vsel %vm3730_vm6, %v3698_v6, %v3762_v18  ;;  %v3700_v54 = vadd.f32 %v3562_v56, %v7423_v5  ;;  %v3557_v17 = vadd.f32 %v3556_v28, %v6884_v53  ;;  %v7425_v53 = vld [vmem:[#allocation16_spill] sm:$0xff] }
 0x3fd   : > { %3826 = vst [vmem:[%s6978_s25 + $0x18] sm:$0xff] %v3794_v58  ;;  %vm3729_vm7 = vcmp.gt.f32.partialorder %v3697_v20, 0.0  ;;  %v3761_v41 = vmul.f32 0.2, %v3697_v20  ;;  %v4178_v55 = vpop.f32.mrf.mxu1 }
 0x3fe   : > { %vm3732_vm8 = vcmp.gt.f32.partialorder %v3700_v54, 0.0  ;;  %v3764_v30 = vmul.f32 0.2, %v3700_v54  ;;  %v3699_v39 = vadd.f32 %v3557_v17, %v7424_v2  ;;  %v3572_v60 = vadd.f32 %v4178_v55, %v6893_v52  ;;  %v7426_v52 = vld [vmem:[#allocation15_spill] sm:$0xff] }
 0x3ff   : > { %v3793_v31 = vsel %vm3729_vm7, %v3697_v20, %v3761_v41  ;;  %v3566_v7 = vpop.f32.mrf.mxu1 }
 0x400   : > { %3825 = vst [vmem:[%s6978_s25 + $0x10] sm:$0xff] %v3793_v31  ;;  %v3796_v62 = vsel %vm3732_vm8, %v3700_v54, %v3764_v30  ;;  %vm3731_vm9 = vcmp.gt.f32.partialorder %v3699_v39, 0.0  ;;  %v3763_v48 = vmul.f32 0.2, %v3699_v39  ;;  %v3702_v8 = vadd.f32 %v3572_v60, %v7425_v53  ;;  %v7431_v60 = vld [vmem:[#allocation22_spill] sm:$0xff]  ;;  %v7432_v53 = vld [vmem:[#allocation21_spill] sm:$0xff] }
 0x401   : > { %3828 = vst [vmem:[%s6978_s25 + $0x28] sm:$0xff] %v3796_v62  ;;  %v3567_v21 = vadd.f32 %v3566_v7, %v6890_v16  ;;  %v4181_v29 = vpop.f32.mrf.mxu1 }
 0x402   : > { %v3795_v51 = vsel %vm3731_vm9, %v3699_v39, %v3763_v48  ;;  %vm3734_vm10 = vcmp.gt.f32.partialorder %v3702_v8, 0.0  ;;  %v3766_v63 = vmul.f32 0.2, %v3702_v8  ;;  %v3582_v4 = vadd.f32 %v4181_v29, %v6899_v44 }
 0x403   : > { %3827 = vst [vmem:[%s6978_s25 + $0x20] sm:$0xff] %v3795_v51  ;;  %v3701_v61 = vadd.f32 %v3567_v21, %v7426_v52  ;;  %v3576_v46 = vpop.f32.mrf.mxu1 }
 0x404   : > { %v3798_v1 = vsel %vm3734_vm10, %v3702_v8, %v3766_v63  ;;  %v3704_v10 = vadd.f32 %v3582_v4, %v7427_v36  ;;  %v3577_v6 = vadd.f32 %v3576_v46, %v6896_v12  ;;  %v7429_v12 = vld [vmem:[#allocation20_spill] sm:$0xff] }
 0x405   : > { %3830 = vst [vmem:[%s6978_s25 + $0x38] sm:$0xff] %v3798_v1  ;;  %vm3733_vm11 = vcmp.gt.f32.partialorder %v3701_v61, 0.0  ;;  %v3765_v16 = vmul.f32 0.2, %v3701_v61  ;;  %v4184_v35 = vpop.f32.mrf.mxu1 }
 0x406   : > { %vm3736_vm12 = vcmp.gt.f32.partialorder %v3704_v10, 0.0  ;;  %v3768_v13 = vmul.f32 0.2, %v3704_v10  ;;  %v3703_v18 = vadd.f32 %v3577_v6, %v7428_v32  ;;  %v3592_v44 = vadd.f32 %v4184_v35, %v6905_v24  ;;  %v7430_v24 = vld [vmem:[#allocation19_spill] sm:$0xff] }
 0x407   : > { %v3797_v56 = vsel %vm3733_vm11, %v3701_v61, %v3765_v16  ;;  %v3586_v9 = vpop.f32.mrf.mxu1  ;;  %v7435_v35 = vld [vmem:[#allocation31_spill] sm:$0xff] }
 0x408   : > { %3829 = vst [vmem:[%s6978_s25 + $0x30] sm:$0xff] %v3797_v56  ;;  %v3800_v20 = vsel %vm3736_vm12, %v3704_v10, %v3768_v13  ;;  %vm3735_vm13 = vcmp.gt.f32.partialorder %v3703_v18, 0.0  ;;  %v3767_v28 = vmul.f32 0.2, %v3703_v18  ;;  %v3706_v58 = vadd.f32 %v3592_v44, %v7429_v12  ;;  %v7436_v56 = vld [vmem:[#allocation27_spill] sm:$0xff] }
 0x409   : > { %3832 = vst [vmem:[%s6978_s25 + $0x48] sm:$0xff] %v3800_v20  ;;  %v3587_v5 = vadd.f32 %v3586_v9, %v6902_v47  ;;  %v4187_v54 = vpop.f32.mrf.mxu1 }
 0x40a   : > { %v3799_v17 = vsel %vm3735_vm13, %v3703_v18, %v3767_v28  ;;  %vm3738_vm14 = vcmp.gt.f32.partialorder %v3706_v58, 0.0  ;;  %v3770_v41 = vmul.f32 0.2, %v3706_v58  ;;  %v3602_v55 = vadd.f32 %v4187_v54, %v6911_v19 }
 0x40b   : > { %3831 = vst [vmem:[%s6978_s25 + $0x40] sm:$0xff] %v3799_v17  ;;  %v3705_v30 = vadd.f32 %v3587_v5, %v7430_v24  ;;  %v3596_v2 = vpop.f32.mrf.mxu1 }
 0x40c   : > { %v3802_v39 = vsel %vm3738_vm14, %v3706_v58, %v3770_v41  ;;  %v3708_v31 = vadd.f32 %v3602_v55, %v7431_v60  ;;  %v3597_v7 = vadd.f32 %v3596_v2, %v6908_v27  ;;  %v7433_v27 = vld [vmem:[#allocation26_spill] sm:$0xff]  ;;  %v7439_v60 = vld [vmem:[#allocation43_spill] sm:$0xff] }
 0x40d   : > { %3834 = vst [vmem:[%s6978_s25 + $0x58] sm:$0xff] %v3802_v39  ;;  %vm3737_vm15 = vcmp.gt.f32.partialorder %v3705_v30, 0.0  ;;  %v3769_v47 = vmul.f32 0.2, %v3705_v30  ;;  %v4190_v62 = vpop.f32.mrf.mxu1 }
 0x40e   : > { %vm3740_vm2 = vcmp.gt.f32.partialorder %v3708_v31, 0.0  ;;  %v3772_v48 = vmul.f32 0.2, %v3708_v31  ;;  %v3707_v8 = vadd.f32 %v3597_v7, %v7432_v53  ;;  %v3612_v19 = vadd.f32 %v4190_v62, %v6917_v40  ;;  %v7434_v40 = vld [vmem:[#allocation23_spill] sm:$0xff] }
 0x40f   : > { %v3801_v21 = vsel %vm3737_vm15, %v3705_v30, %v3769_v47  ;;  %v3606_v29 = vpop.f32.mrf.mxu1 }
 0x410   : > { %3833 = vst [vmem:[%s6978_s25 + $0x50] sm:$0xff] %v3801_v21  ;;  %v3804_v51 = vsel %vm3740_vm2, %v3708_v31, %v3772_v48  ;;  %vm3739_vm3 = vcmp.gt.f32.partialorder %v3707_v8, 0.0  ;;  %v3771_v63 = vmul.f32 0.2, %v3707_v8  ;;  %v3710_v4 = vadd.f32 %v3612_v19, %v7433_v27  ;;  %v7440_v48 = vld [vmem:[#allocation39_spill] sm:$0xff] }
 0x411   : > { %3836 = vst [vmem:[%s6978_s25 + $0x68] sm:$0xff] %v3804_v51  ;;  %v3607_v52 = vadd.f32 %v3606_v29, %v6914_v11  ;;  %v4193_v61 = vpop.f32.mrf.mxu1 }
 0x412   : > { %v3803_v46 = vsel %vm3739_vm3, %v3707_v8, %v3771_v63  ;;  %vm3742_vm4 = vcmp.gt.f32.partialorder %v3710_v4, 0.0  ;;  %v3774_v1 = vmul.f32 0.2, %v3710_v4  ;;  %v3622_v36 = vadd.f32 %v4193_v61, %v6923_v23 }
 0x413   : > { %3835 = vst [vmem:[%s6978_s25 + $0x60] sm:$0xff] %v3803_v46  ;;  %v3709_v10 = vadd.f32 %v3607_v52, %v7434_v40  ;;  %v3616_v6 = vpop.f32.mrf.mxu1  ;;  %v7443_v40 = vld [vmem:[#allocation54_spill] sm:$0xff] }
 0x414   : > { %v3806_v16 = vsel %vm3742_vm4, %v3710_v4, %v3774_v1  ;;  %v3712_v13 = vadd.f32 %v3622_v36, %v7435_v35  ;;  %v3617_v32 = vadd.f32 %v3616_v6, %v6920_v50  ;;  %v7437_v50 = vld [vmem:[#allocation37_spill] sm:$0xff] }
 0x415   : > { %3838 = vst [vmem:[%s6978_s25 + $0x78] sm:$0xff] %v3806_v16  ;;  %vm3741_vm5 = vcmp.gt.f32.partialorder %v3709_v10, 0.0  ;;  %v3773_v11 = vmul.f32 0.2, %v3709_v10  ;;  %v4196_v18 = vpop.f32.mrf.mxu1 }
 0x416   : > { %vm3744_vm0 = vcmp.gt.f32.partialorder %v3712_v13, 0.0  ;;  %v3776_v44 = vmul.f32 0.2, %v3712_v13  ;;  %v3711_v9 = vadd.f32 %v3617_v32, %v7436_v56  ;;  %v3632_v23 = vadd.f32 %v4196_v18, %v6929_v26  ;;  %v7438_v26 = vld [vmem:[#allocation33_spill] sm:$0xff] }
 0x417   : > { %v3805_v20 = vsel %vm3741_vm5, %v3709_v10, %v3773_v11  ;;  %v3626_v28 = vpop.f32.mrf.mxu1  ;;  %v3457_v11 = vadd.f32 %v6961_v37, %v6956_v34 }
 0x418   : > { %3837 = vst [vmem:[%s6978_s25 + $0x70] sm:$0xff] %v3805_v20  ;;  %v3808_v12 = vsel %vm3744_vm0, %v3712_v13, %v3776_v44  ;;  %vm3743_vm1 = vcmp.gt.f32.partialorder %v3711_v9, 0.0  ;;  %v3775_v58 = vmul.f32 0.2, %v3711_v9  ;;  %v3714_v5 = vadd.f32 %v3632_v23, %v7437_v50  ;;  %v7444_v13 = vld [vmem:[#allocation50_spill] sm:$0xff] }
 0x419   : > { %3840 = vst [vmem:[%s6978_s25 + $0x88] sm:$0xff] %v3808_v12  ;;  %v3627_v54 = vadd.f32 %v3626_v28, %v6926_v49  ;;  %v4199_v17 = vpop.f32.mrf.mxu1  ;;  %v3242_v20 = vadd.f32 %v6963_v33, %v6869_v59 }
 0x41a   : > { %v3807_v41 = vsel %vm3743_vm1, %v3711_v9, %v3775_v58  ;;  %vm3746_vm6 = vcmp.gt.f32.partialorder %v3714_v5, 0.0  ;;  %v3778_v55 = vmul.f32 0.2, %v3714_v5  ;;  %v3642_v24 = vadd.f32 %v4199_v17, %v6935_v15  ;;  %v7445_v9 = vld [vmem:[#allocation58_spill] sm:$0xff]  ;;  %v7446_v58 = vld [vmem:[#allocation56_spill] sm:$0xff] }
 0x41b   : > { %3839 = vst [vmem:[%s6978_s25 + $0x80] sm:$0xff] %v3807_v41  ;;  %v3713_v30 = vadd.f32 %v3627_v54, %v7438_v26  ;;  %v3636_v2 = vpop.f32.mrf.mxu1  ;;  %v3467_v54 = vadd.f32 %v6969_v0, %v3242_v20  ;;  %v7447_v41 = vld [vmem:[#allocation62_spill] sm:$0xff]  ;;  %v7448_v26 = vld [vmem:[#allocation60_spill] sm:$0xff] }
 0x41c   : > { %v3810_v39 = vsel %vm3746_vm6, %v3714_v5, %v3778_v55  ;;  %v3716_v31 = vadd.f32 %v3642_v24, %v7439_v60  ;;  %v3637_v7 = vadd.f32 %v3636_v2, %v6932_v25  ;;  %v7441_v25 = vld [vmem:[#allocation48_spill] sm:$0xff] }
 0x41d   : > { %3842 = vst [vmem:[%s6978_s25 + $0x98] sm:$0xff] %v3810_v39  ;;  %vm3745_vm7 = vcmp.gt.f32.partialorder %v3713_v30, 0.0  ;;  %v3777_v49 = vmul.f32 0.2, %v3713_v30  ;;  %v4202_v47 = vpop.f32.mrf.mxu1 }
 0x41e   : > { %vm3748_vm8 = vcmp.gt.f32.partialorder %v3716_v31, 0.0  ;;  %v3780_v62 = vmul.f32 0.2, %v3716_v31  ;;  %v3715_v53 = vadd.f32 %v3637_v7, %v7440_v48  ;;  %v3652_v15 = vadd.f32 %v4202_v47, %v6941_v22  ;;  %v7442_v22 = vld [vmem:[#allocation45_spill] sm:$0xff]  ;;  %v7450_v48 = vld [vmem:[#allocation28_spill] sm:$0xff] }
 0x41f   : > { %v3809_v8 = vsel %vm3745_vm7, %v3713_v30, %v3777_v49  ;;  %v3646_v19 = vpop.f32.mrf.mxu1 }
 0x420   : > { %3841 = vst [vmem:[%s6978_s25 + $0x90] sm:$0xff] %v3809_v8  ;;  %v3812_v21 = vsel %vm3748_vm8, %v3716_v31, %v3780_v62  ;;  %vm3747_vm9 = vcmp.gt.f32.partialorder %v3715_v53, 0.0  ;;  %v3779_v29 = vmul.f32 0.2, %v3715_v53  ;;  %v3718_v51 = vadd.f32 %v3652_v15, %v7441_v25  ;;  %v7449_v31 = vld [vmem:[#allocation32_spill] sm:$0xff] }
 0x421   : > { %3844 = vst [vmem:[%s6978_s25 + $0xa8] sm:$0xff] %v3812_v21  ;;  %v3647_v63 = vadd.f32 %v3646_v19, %v6938_v42  ;;  %v4205_v27 = vpop.f32.mrf.mxu1 }
 0x422   : > { %v3811_v4 = vsel %vm3747_vm9, %v3715_v53, %v3779_v29  ;;  %vm3750_vm10 = vcmp.gt.f32.partialorder %v3718_v51, 0.0  ;;  %v3782_v52 = vmul.f32 0.2, %v3718_v51  ;;  %v3662_v61 = vadd.f32 %v4205_v27, %v6947_v3 }
 0x423   : > { %3843 = vst [vmem:[%s6978_s25 + $0xa0] sm:$0xff] %v3811_v4  ;;  %v3717_v46 = vadd.f32 %v3647_v63, %v7442_v22  ;;  %v3656_v1 = vpop.f32.mrf.mxu1 }
 0x424   : > { %v3814_v36 = vsel %vm3750_vm10, %v3718_v51, %v3782_v52  ;;  %v3720_v10 = vadd.f32 %v3662_v61, %v7443_v40  ;;  %v3657_v6 = vadd.f32 %v3656_v1, %v6944_v57 }
 0x425   : > { %3846 = vst [vmem:[%s6978_s25 + $0xb8] sm:$0xff] %v3814_v36  ;;  %vm3749_vm11 = vcmp.gt.f32.partialorder %v3717_v46, 0.0  ;;  %v3781_v42 = vmul.f32 0.2, %v3717_v46  ;;  %v4208_v16 = vpop.f32.mrf.mxu1 }
 0x426   : > { %vm3752_vm12 = vcmp.gt.f32.partialorder %v3720_v10, 0.0  ;;  %v3784_v35 = vmul.f32 0.2, %v3720_v10  ;;  %v3719_v32 = vadd.f32 %v3657_v6, %v7444_v13  ;;  %v3672_v3 = vadd.f32 %v4208_v16, %v6953_v38 }
 0x427   : > { %v3813_v18 = vsel %vm3749_vm11, %v3717_v46, %v3781_v42  ;;  %v3666_v44 = vpop.f32.mrf.mxu1 }
 0x428   : > { %3845 = vst [vmem:[%s6978_s25 + $0xb0] sm:$0xff] %v3813_v18  ;;  %v3816_v56 = vsel %vm3752_vm12, %v3720_v10, %v3784_v35  ;;  %vm3751_vm13 = vcmp.gt.f32.partialorder %v3719_v32, 0.0  ;;  %v3783_v57 = vmul.f32 0.2, %v3719_v32  ;;  %v3722_v23 = vadd.f32 %v3672_v3, %v7445_v9 }
 0x429   : > { %3848 = vst [vmem:[%s6978_s25 + $0xc8] sm:$0xff] %v3816_v56  ;;  %v3667_v28 = vadd.f32 %v3666_v44, %v6950_v43  ;;  %v4211_v38 = vpop.f32.mrf.mxu1 }
 0x42a   : > { %v3815_v12 = vsel %vm3751_vm13, %v3719_v32, %v3783_v57  ;;  %vm3754_vm14 = vcmp.gt.f32.partialorder %v3722_v23, 0.0  ;;  %v3786_v34 = vmul.f32 0.2, %v3722_v23  ;;  %v3682_v37 = vadd.f32 %v4211_v38, %v3457_v11 }
 0x42b   : > { %3847 = vst [vmem:[%s6978_s25 + $0xc0] sm:$0xff] %v3815_v12  ;;  %v3721_v50 = vadd.f32 %v3667_v28, %v7446_v58  ;;  %v3676_v5 = vpop.f32.mrf.mxu1 }
 0x42c   : > { %v3818_v17 = vsel %vm3754_vm14, %v3722_v23, %v3786_v34  ;;  %v3724_v55 = vadd.f32 %v3682_v37, %v7447_v41  ;;  %v3677_v59 = vadd.f32 %v3676_v5, %v6958_v14 }
 0x42d   : > { %3850 = vst [vmem:[%s6978_s25 + $0xd8] sm:$0xff] %v3818_v17  ;;  %vm3753_vm15 = vcmp.gt.f32.partialorder %v3721_v50, 0.0  ;;  %v3785_v43 = vmul.f32 0.2, %v3721_v50  ;;  %v4214_v33 = vpop.f32.mrf.mxu1 }
 0x42e   : > { %vm3756_vm2 = vcmp.gt.f32.partialorder %v3724_v55, 0.0  ;;  %v3788_v24 = vmul.f32 0.2, %v3724_v55  ;;  %v3723_v30 = vadd.f32 %v3677_v59, %v7448_v26  ;;  %v3692_v2 = vadd.f32 %v4214_v33, %v3467_v54 }
 0x42f   : > { %v3817_v39 = vsel %vm3753_vm15, %v3721_v50, %v3785_v43  ;;  %v3686_v0 = vpop.f32.mrf.mxu1 }
 0x430   : > { %3849 = vst [vmem:[%s6978_s25 + $0xd0] sm:$0xff] %v3817_v39  ;;  %v3820_v60 = vsel %vm3756_vm2, %v3724_v55, %v3788_v24  ;;  %vm3755_vm3 = vcmp.gt.f32.partialorder %v3723_v30, 0.0  ;;  %v3787_v14 = vmul.f32 0.2, %v3723_v30  ;;  %v3726_v7 = vadd.f32 %v3692_v2, %v7449_v31 }
 0x431   : > { %3852 = vst [vmem:[%s6978_s25 + $0xe8] sm:$0xff] %v3820_v60  ;;  %v3687_v49 = vadd.f32 %v3686_v0, %v6965_v45 }
 0x432   : > { %v3819_v47 = vsel %vm3755_vm3, %v3723_v30, %v3787_v14  ;;  %vm3758_vm4 = vcmp.gt.f32.partialorder %v3726_v7, 0.0  ;;  %v3790_v62 = vmul.f32 0.2, %v3726_v7 }
 0x433   : > { %3851 = vst [vmem:[%s6978_s25 + $0xe0] sm:$0xff] %v3819_v47  ;;  %v3725_v53 = vadd.f32 %v3687_v49, %v7450_v48 }
 0x434   : > { %v3822_v15 = vsel %vm3758_vm4, %v3726_v7, %v3790_v62 }
 0x435   : > { %3854 = vst [vmem:[%s6978_s25 + $0xf8] sm:$0xff] %v3822_v15  ;;  %vm3757_vm5 = vcmp.gt.f32.partialorder %v3725_v53, 0.0  ;;  %v3789_v8 = vmul.f32 0.2, %v3725_v53 }
 0x437   : > { %v3821_v45 = vsel %vm3757_vm5, %v3725_v53, %v3789_v8 }
 0x438   : > { %3853 = vst [vmem:[%s6978_s25 + $0xf0] sm:$0xff] %v3821_v45 }
 0x439   : > { %4321 = shalt.err (!%p4318_p0)
}
 0x43a   : > { %s4322_s14 = scalar_lea.hbm %s7077_s8, 4096  ;;  %s4326_s16 = scalar_lea.hbm %s7129_s5, 8192 }
 0x43b   : > { %p4323_p1 = scmp.ne.s32.totalorder %s7077_s8, %s4322_s14  ;;  %p4327_p4 = scmp.lt.s32.totalorder %s7077_s8, %s7129_s5 }
 0x43c   : > { %p4328_p7 = scmp.lt.s32.totalorder %s4326_s16, %s4322_s14 }
 0x43d   : > { %p4324_p2 = pnand %p4323_p1, %p4449_p5 }
 0x43e   : > { %p4329_p6 = por %p4328_p7, %p4327_p4 }
 0x43f   : > { %p4325_p3 = pneg %p4324_p2 }
 0x441   : > { %p4330_p8 = pnand %p4329_p6, %p4325_p3 }
 0x443   : > { %4333 = shalt.err (!%p4330_p8)
}
 0x444   : > { %s4379_s25 = smov 128   ;;  %s4380_s26 = smov 8  }
 0x445   : > { %4220 = dma.vmem_to_hbm [thread:$0]  (%p4449_p5), %s7079_s30, 4096, %s7077_s8, %s7084_s22, %s4379_s25, %s4379_s25, %s4380_s26  }
 0x446 PF: > { %p4232_p9 = scmp.ge.s32.totalorder %s4372_s21, 2  ;;  %s3884_s6 = sand.u32 1, %s4360_s18  }
 0x447   : > { %p7451_p10 = scmp.ne.s32.totalorder %s7265_s29, 0  ;;  %s3885_s7 = scalar_lea.sflag [#allocation5], %s3884_s6 }
 0x449   : > { %p4227_p11 = pnand %p4232_p9, %p7451_p10 }
 0x44b   : > { %p4228_p12 = pneg %p4227_p11 }
 0x44d   : > { %4355 = dma.done.wait (%p4228_p12), %s3885_s7, 4096  }
 0x44e   : > { %4357 = vsyncadd (%p4228_p12), %s3885_s7, 4294963200  ;;  %p16_p13 = scmp.ge.s32.totalorder %s4436_s24, 4   ;;  %s7452_s18 = smov %s4364_s19 }
 0x44f   : > { %s7453_s19 = smov %s4368_s20  ;;  %s7454_s20 = smov %s4447_s27 }
 0x450   : > { %s7455_s21 = smov %s4436_s24  ;;  %18 = sbr.rel (!%p16_p13) target bundleno = 4 (0x4), region = 81 }
 0x455   :  { %3890 = vsyncpa [#allocation4], 1 }
 0x456   :  { %3892 = vsyncpa [#allocation4 + $0x1], 1 }
 0x457   :  { %3893 = vsyncpa [#allocation5], 1 }
 0x458   :  { %3895 = vsyncpa [#allocation5 + $0x1], 1 }

</bundles_post_ra>
